<compile_context>
chip_gen: v7x
topology: tpu7x:2x2x1
jax: 0.10.0
libtpu: 0.0.40
codegen_flags: <defaults>
</compile_context>

<pallas_src>
import functools

import jax
import jax.numpy as jnp
from jax.experimental import pallas as pl
from jax.experimental.pallas import tpu as pltpu

EPS = 1e-5  # nn.LayerNorm default


# ----------------------------- fused kernel ----------------------------------


def _decoder_layer_kernel(x_ref, cross_ref, self_w_ref, cross_w_ref,
                          tcn_w1_ref, tcn_b1_ref, tcn_w2_ref, tcn_b2_ref,
                          ffn_w1_ref, ffn_w2_ref, ln_g_ref, ln_b_ref,
                          o_ref, *, n_heads, n_tcn):
    f32 = jnp.float32
    bf16 = jnp.bfloat16

    x = x_ref[...].astype(f32)          # (L, D)
    cross = cross_ref[...].astype(f32)  # (S, D)
    L, D = x.shape
    head_dim = D // n_heads
    scale = 1.0 / (head_dim ** 0.5)

    def mm(a, b):
        # MXU matmul: bf16 operands, f32 accumulation.
        return jnp.dot(a.astype(bf16), b.astype(bf16), preferred_element_type=f32)

    def mm_nt(a, b):
        # a @ b.T without materializing the transpose (contract last dims).
        return jax.lax.dot_general(a.astype(bf16), b.astype(bf16),
                                   (((1,), (1,)), ((), ())),
                                   preferred_element_type=f32)

    def layer_norm(s, idx):
        mu = jnp.mean(s, axis=-1, keepdims=True)
        var = jnp.mean(jnp.square(s - mu), axis=-1, keepdims=True)
        xn = (s - mu) * jax.lax.rsqrt(var + EPS)
        return xn * ln_g_ref[idx] + ln_b_ref[idx]

    def mha(q_in, kv_in, w_ref):
        q = mm(q_in, w_ref[0])          # (L, D)
        k = mm(kv_in, w_ref[1])         # (S, D)
        v = mm(kv_in, w_ref[2])         # (S, D)
        heads = []
        for h in range(n_heads):        # static unroll; per-head score/softmax/PV
            sl = slice(h * head_dim, (h + 1) * head_dim)
            s = mm_nt(q[:, sl], k[:, sl]) * scale          # (L, S) f32
            s = s - jnp.max(s, axis=-1, keepdims=True)
            p = jnp.exp(s)
            p = p * pl.reciprocal(jnp.sum(p, axis=-1, keepdims=True), approx=True)
            heads.append(mm(p, v[:, sl]))                  # (L, dh)
        o = jnp.concatenate(heads, axis=-1)                # (L, D)
        return mm(o, w_ref[3])          # single full-width output projection

    # ---- TCN branch: n_tcn TemporalBlocks (dilated causal conv k=3, dil=2^i) ----
    def shifted_rows(a, shift):
        # rows shifted down by `shift`, zero-filled at the top (causal left pad)
        if shift == 0:
            return a
        if shift >= L:
            return jnp.zeros_like(a)
        rolled = pltpu.roll(a, shift=shift, axis=0)        # XLU sublane rotate
        row = jax.lax.broadcasted_iota(jnp.int32, a.shape, 0)
        return jnp.where(row >= shift, rolled, 0.0)

    def causal_conv(inp, w, b, dil):
        # Three taps folded into a single (L, 3D) @ (3D, D) MXU matmul.
        slab = jnp.concatenate(
            [shifted_rows(inp, 2 * dil), shifted_rows(inp, dil), inp], axis=-1)
        return mm(slab, w) + b

    t = x
    for i in range(n_tcn):
        dil = 2 ** i
        h1 = jnp.maximum(causal_conv(t, tcn_w1_ref[i], tcn_b1_ref[i], dil), 0.0)
        h2 = jnp.maximum(causal_conv(h1, tcn_w2_ref[i], tcn_b2_ref[i], dil), 0.0)
        t = jnp.maximum(h2 + t, 0.0)    # relu(out + residual)

    # ---- self-attention + norm1 ----
    sa = mha(x, x, self_w_ref)
    x1 = layer_norm(x + sa + t, 0)

    # ---- cross-attention + norm2 (no zero-tensor operand) ----
    ca = mha(x1, cross, cross_w_ref)
    x2 = layer_norm(x1 + ca, 1)

    # ---- 1x1-conv FFN + norm3 ----
    hdn = jnp.maximum(mm(x2, ffn_w1_ref[...]), 0.0)
    y = mm(hdn, ffn_w2_ref[...])
    o_ref[...] = layer_norm(x2 + y, 2).astype(o_ref.dtype)


# ----------------------------- wrapper ----------------------------------------


def decoder_layer_forward(x, cross, params, n_heads):
    B, L, D = x.shape
    S = cross.shape[1]
    n_tcn = params["tcn_w1"].shape[0]
    DFF = params["ffn_w1"].shape[1]

    kernel = functools.partial(_decoder_layer_kernel, n_heads=n_heads, n_tcn=n_tcn)

    def full(shape):
        zeros = (0,) * len(shape)
        return pl.BlockSpec(shape, lambda b, z=zeros: z)

    return pl.pallas_call(
        kernel,
        out_shape=jax.ShapeDtypeStruct((B, L, D), x.dtype),
        grid=(B,),
        in_specs=[
            pl.BlockSpec((None, L, D), lambda b: (b, 0, 0)),   # x (per batch element)
            pl.BlockSpec((None, S, D), lambda b: (b, 0, 0)),   # cross
            full((4, D, D)),                                   # self_w  [Wq,Wk,Wv,Wo]
            full((4, D, D)),                                   # cross_w
            full((n_tcn, 3 * D, D)),                           # tcn_w1
            full((n_tcn, 1, D)),                               # tcn_b1
            full((n_tcn, 3 * D, D)),                           # tcn_w2
            full((n_tcn, 1, D)),                               # tcn_b2
            full((D, DFF)),                                    # ffn_w1 (conv1, bias=False)
            full((DFF, D)),                                    # ffn_w2 (conv2, bias=False)
            full((3, 1, D)),                                   # LN gammas [norm1..3]
            full((3, 1, D)),                                   # LN betas
        ],
        out_specs=pl.BlockSpec((None, L, D), lambda b: (b, 0, 0)),
        compiler_params=pltpu.CompilerParams(
            dimension_semantics=("parallel",)),                # shard batch on v7x's 2 TCs
    )(x, cross,
      params["self_w"], params["cross_w"],
      params["tcn_w1"], params["tcn_b1"], params["tcn_w2"], params["tcn_b2"],
      params["ffn_w1"], params["ffn_w2"],
      params["ln_g"], params["ln_b"])


# ----------------------------- deterministic params ---------------------------


def init_params(key, d_model, d_ff, n_tcn=5, ksize=3):
    keys = iter(jax.random.split(key, 32))

    def nrm(shape, scale=0.1):
        return scale * jax.random.normal(next(keys), shape, jnp.float32)

    p = {}
    # Attention weights stacked [Wq, Wk, Wv, Wo]; stored bf16 for the MXU path.
    p["self_w"] = nrm((4, d_model, d_model)).astype(jnp.bfloat16)
    p["cross_w"] = nrm((4, d_model, d_model)).astype(jnp.bfloat16)

    # TCN conv weights flattened to (3*in, out); rows [k*in:(k+1)*in] correspond to
    # PyTorch Conv1d weight[:, :, k].T (tap k pairs with left shift (2-k)*dilation).
    # weight_norm folded into plain weights (synthetic init).
    p["tcn_w1"] = nrm((n_tcn, ksize * d_model, d_model)).astype(jnp.bfloat16)
    p["tcn_b1"] = nrm((n_tcn, 1, d_model), 0.05)
    p["tcn_w2"] = nrm((n_tcn, ksize * d_model, d_model)).astype(jnp.bfloat16)
    p["tcn_b2"] = nrm((n_tcn, 1, d_model), 0.05)

    # 1x1 convs (bias=False): conv1 (d_model -> d_ff), conv2 (d_ff -> d_model).
    p["ffn_w1"] = nrm((d_model, d_ff)).astype(jnp.bfloat16)
    p["ffn_w2"] = nrm((d_ff, d_model)).astype(jnp.bfloat16)

    # LayerNorm affine params (PyTorch default init), stacked [norm1, norm2, norm3].
    p["ln_g"] = jnp.ones((3, 1, d_model), jnp.float32)
    p["ln_b"] = jnp.zeros((3, 1, d_model), jnp.float32)
    return p


# ----------------------------- main --------------------------------------------

if __name__ == "__main__":
    B, L, S, D, H, DFF = 2, 16, 16, 32, 4, 128  # d_ff = 4 * d_model

    key = jax.random.PRNGKey(0)
    k_x, k_c, k_p = jax.random.split(key, 3)
    x = jax.random.normal(k_x, (B, L, D), jnp.float32)
    cross = jax.random.normal(k_c, (B, S, D), jnp.float32)
    params = init_params(k_p, D, DFF)

    fwd = jax.jit(lambda xx, cc, pp: decoder_layer_forward(xx, cc, pp, n_heads=H))
    out = fwd(x, cross, params)
    jax.block_until_ready(out)

    assert out.shape == (B, L, D), out.shape
    assert bool(jnp.all(jnp.isfinite(out)))
    print("KERNEL_OK")
</pallas_src>

<mosaic_0001>
module attributes {stable_mosaic.version = 11 : i64} {
  func.func @_decoder_layer_kernel(%arg0: i32, %arg1: memref<1x16x32xf32, #tpu.memory_space<vmem>>, %arg2: memref<1x16x32xf32, #tpu.memory_space<vmem>>, %arg3: memref<4x32x32xbf16, #tpu.memory_space<vmem>>, %arg4: memref<4x32x32xbf16, #tpu.memory_space<vmem>>, %arg5: memref<5x96x32xbf16, #tpu.memory_space<vmem>>, %arg6: memref<5x1x32xf32, #tpu.memory_space<vmem>>, %arg7: memref<5x96x32xbf16, #tpu.memory_space<vmem>>, %arg8: memref<5x1x32xf32, #tpu.memory_space<vmem>>, %arg9: memref<32x128xbf16, #tpu.memory_space<vmem>>, %arg10: memref<128x32xbf16, #tpu.memory_space<vmem>>, %arg11: memref<3x1x32xf32, #tpu.memory_space<vmem>>, %arg12: memref<3x1x32xf32, #tpu.memory_space<vmem>>, %arg13: memref<1x16x32xf32, #tpu.memory_space<vmem>>) attributes {dimension_semantics = [#tpu.dimension_semantics<parallel>], iteration_bounds = array<i64: 2>, scalar_prefetch = 0 : i64, scratch_operands = 0 : i64, tpu.core_type = #tpu.core_type<tc>, window_params = [{transform_indices = @transform_0, window_bounds = array<i64: 1, 16, 32>}, {transform_indices = @transform_1, window_bounds = array<i64: 1, 16, 32>}, {pipeline_mode = #tpu.pipeline_mode<synchronous>, transform_indices = @transform_2, window_bounds = array<i64: 4, 32, 32>}, {pipeline_mode = #tpu.pipeline_mode<synchronous>, transform_indices = @transform_3, window_bounds = array<i64: 4, 32, 32>}, {pipeline_mode = #tpu.pipeline_mode<synchronous>, transform_indices = @transform_4, window_bounds = array<i64: 5, 96, 32>}, {pipeline_mode = #tpu.pipeline_mode<synchronous>, transform_indices = @transform_5, window_bounds = array<i64: 5, 1, 32>}, {pipeline_mode = #tpu.pipeline_mode<synchronous>, transform_indices = @transform_6, window_bounds = array<i64: 5, 96, 32>}, {pipeline_mode = #tpu.pipeline_mode<synchronous>, transform_indices = @transform_7, window_bounds = array<i64: 5, 1, 32>}, {pipeline_mode = #tpu.pipeline_mode<synchronous>, transform_indices = @transform_8, window_bounds = array<i64: 32, 128>}, {pipeline_mode = #tpu.pipeline_mode<synchronous>, transform_indices = @transform_9, window_bounds = array<i64: 128, 32>}, {pipeline_mode = #tpu.pipeline_mode<synchronous>, transform_indices = @transform_10, window_bounds = array<i64: 3, 1, 32>}, {pipeline_mode = #tpu.pipeline_mode<synchronous>, transform_indices = @transform_11, window_bounds = array<i64: 3, 1, 32>}, {transform_indices = @transform_12, window_bounds = array<i64: 1, 16, 32>}]} {
    %c0 = arith.constant 0 : index
    %c0_0 = arith.constant 0 : index
    %c0_1 = arith.constant 0 : index
    %0 = vector.load %arg1[%c0, %c0_0, %c0_1] : memref<1x16x32xf32, #tpu.memory_space<vmem>>, vector<1x16x32xf32>
    %1 = vector.shape_cast %0 : vector<1x16x32xf32> to vector<16x32xf32>
    %c0_2 = arith.constant 0 : index
    %c0_3 = arith.constant 0 : index
    %c0_4 = arith.constant 0 : index
    %2 = vector.load %arg2[%c0_2, %c0_3, %c0_4] : memref<1x16x32xf32, #tpu.memory_space<vmem>>, vector<1x16x32xf32>
    %3 = vector.shape_cast %2 : vector<1x16x32xf32> to vector<16x32xf32>
    %c0_5 = arith.constant 0 : index
    %c0_6 = arith.constant 0 : index
    %c0_7 = arith.constant 0 : index
    %4 = vector.load %arg5[%c0_5, %c0_6, %c0_7] : memref<5x96x32xbf16, #tpu.memory_space<vmem>>, vector<1x96x32xbf16>
    %5 = vector.shape_cast %4 : vector<1x96x32xbf16> to vector<96x32xbf16>
    %c0_8 = arith.constant 0 : index
    %c0_9 = arith.constant 0 : index
    %c0_10 = arith.constant 0 : index
    %6 = vector.load %arg6[%c0_8, %c0_9, %c0_10] : memref<5x1x32xf32, #tpu.memory_space<vmem>>, vector<1x1x32xf32>
    %7 = vector.shape_cast %6 : vector<1x1x32xf32> to vector<1x32xf32>
    %c2_i32 = arith.constant 2 : i32
    %8 = tpu.dynamic_rotate %1 by %c2_i32 dim 0 : vector<16x32xf32>, i32 -> vector<16x32xf32>
    %9 = tpu.iota {dimensions = array<i32: 0>} : vector<16x32xi32>
    %c2_i32_11 = arith.constant 2 : i32
    %10 = vector.broadcast %c2_i32_11 : i32 to vector<16x32xi32>
    %11 = arith.cmpi sge, %9, %10 : vector<16x32xi32>
    %cst = arith.constant 0.000000e+00 : f32
    %12 = vector.broadcast %cst : f32 to vector<16x32xf32>
    %13 = arith.select %11, %8, %12 : vector<16x32xi1>, vector<16x32xf32>
    %c1_i32 = arith.constant 1 : i32
    %14 = tpu.dynamic_rotate %1 by %c1_i32 dim 0 : vector<16x32xf32>, i32 -> vector<16x32xf32>
    %15 = tpu.iota {dimensions = array<i32: 0>} : vector<16x32xi32>
    %c1_i32_12 = arith.constant 1 : i32
    %16 = vector.broadcast %c1_i32_12 : i32 to vector<16x32xi32>
    %17 = arith.cmpi sge, %15, %16 : vector<16x32xi32>
    %cst_13 = arith.constant 0.000000e+00 : f32
    %18 = vector.broadcast %cst_13 : f32 to vector<16x32xf32>
    %19 = arith.select %17, %14, %18 : vector<16x32xi1>, vector<16x32xf32>
    %20 = tpu.concatenate %13, %19, %1 in 1 : vector<16x32xf32>, vector<16x32xf32>, vector<16x32xf32> -> vector<16x96xf32>
    %21 = arith.truncf %20 : vector<16x96xf32> to vector<16x96xbf16>
    %cst_14 = arith.constant dense<0.000000e+00> : vector<16x32xf32>
    %22 = tpu.matmul %21, %5, %cst_14 {dimension_numbers = #tpu.dot_dimension_numbers<[1], [0], [0], [1], [0, 0, 1, 1], [], []>} : vector<16x96xbf16>, vector<96x32xbf16>, vector<16x32xf32> -> vector<16x32xf32>
    %23 = vector.broadcast %7 : vector<1x32xf32> to vector<16x32xf32>
    %24 = arith.addf %22, %23 : vector<16x32xf32>
    %cst_15 = arith.constant 0.000000e+00 : f32
    %25 = vector.broadcast %cst_15 : f32 to vector<16x32xf32>
    %26 = arith.maximumf %24, %25 : vector<16x32xf32>
    %c0_16 = arith.constant 0 : index
    %c0_17 = arith.constant 0 : index
    %c0_18 = arith.constant 0 : index
    %27 = vector.load %arg7[%c0_16, %c0_17, %c0_18] : memref<5x96x32xbf16, #tpu.memory_space<vmem>>, vector<1x96x32xbf16>
    %28 = vector.shape_cast %27 : vector<1x96x32xbf16> to vector<96x32xbf16>
    %c0_19 = arith.constant 0 : index
    %c0_20 = arith.constant 0 : index
    %c0_21 = arith.constant 0 : index
    %29 = vector.load %arg8[%c0_19, %c0_20, %c0_21] : memref<5x1x32xf32, #tpu.memory_space<vmem>>, vector<1x1x32xf32>
    %30 = vector.shape_cast %29 : vector<1x1x32xf32> to vector<1x32xf32>
    %c2_i32_22 = arith.constant 2 : i32
    %31 = tpu.dynamic_rotate %26 by %c2_i32_22 dim 0 : vector<16x32xf32>, i32 -> vector<16x32xf32>
    %32 = tpu.iota {dimensions = array<i32: 0>} : vector<16x32xi32>
    %c2_i32_23 = arith.constant 2 : i32
    %33 = vector.broadcast %c2_i32_23 : i32 to vector<16x32xi32>
    %34 = arith.cmpi sge, %32, %33 : vector<16x32xi32>
    %cst_24 = arith.constant 0.000000e+00 : f32
    %35 = vector.broadcast %cst_24 : f32 to vector<16x32xf32>
    %36 = arith.select %34, %31, %35 : vector<16x32xi1>, vector<16x32xf32>
    %c1_i32_25 = arith.constant 1 : i32
    %37 = tpu.dynamic_rotate %26 by %c1_i32_25 dim 0 : vector<16x32xf32>, i32 -> vector<16x32xf32>
    %38 = tpu.iota {dimensions = array<i32: 0>} : vector<16x32xi32>
    %c1_i32_26 = arith.constant 1 : i32
    %39 = vector.broadcast %c1_i32_26 : i32 to vector<16x32xi32>
    %40 = arith.cmpi sge, %38, %39 : vector<16x32xi32>
    %cst_27 = arith.constant 0.000000e+00 : f32
    %41 = vector.broadcast %cst_27 : f32 to vector<16x32xf32>
    %42 = arith.select %40, %37, %41 : vector<16x32xi1>, vector<16x32xf32>
    %43 = tpu.concatenate %36, %42, %26 in 1 : vector<16x32xf32>, vector<16x32xf32>, vector<16x32xf32> -> vector<16x96xf32>
    %44 = arith.truncf %43 : vector<16x96xf32> to vector<16x96xbf16>
    %cst_28 = arith.constant dense<0.000000e+00> : vector<16x32xf32>
    %45 = tpu.matmul %44, %28, %cst_28 {dimension_numbers = #tpu.dot_dimension_numbers<[1], [0], [0], [1], [0, 0, 1, 1], [], []>} : vector<16x96xbf16>, vector<96x32xbf16>, vector<16x32xf32> -> vector<16x32xf32>
    %46 = vector.broadcast %30 : vector<1x32xf32> to vector<16x32xf32>
    %47 = arith.addf %45, %46 : vector<16x32xf32>
    %cst_29 = arith.constant 0.000000e+00 : f32
    %48 = vector.broadcast %cst_29 : f32 to vector<16x32xf32>
    %49 = arith.maximumf %47, %48 : vector<16x32xf32>
    %50 = arith.addf %49, %1 : vector<16x32xf32>
    %cst_30 = arith.constant 0.000000e+00 : f32
    %51 = vector.broadcast %cst_30 : f32 to vector<16x32xf32>
    %52 = arith.maximumf %50, %51 : vector<16x32xf32>
    %c1 = arith.constant 1 : index
    %c0_31 = arith.constant 0 : index
    %c0_32 = arith.constant 0 : index
    %53 = vector.load %arg5[%c1, %c0_31, %c0_32] : memref<5x96x32xbf16, #tpu.memory_space<vmem>>, vector<1x96x32xbf16>
    %54 = vector.shape_cast %53 : vector<1x96x32xbf16> to vector<96x32xbf16>
    %c1_33 = arith.constant 1 : index
    %c0_34 = arith.constant 0 : index
    %c0_35 = arith.constant 0 : index
    %55 = vector.load %arg6[%c1_33, %c0_34, %c0_35] : memref<5x1x32xf32, #tpu.memory_space<vmem>>, vector<1x1x32xf32>
    %56 = vector.shape_cast %55 : vector<1x1x32xf32> to vector<1x32xf32>
    %c4_i32 = arith.constant 4 : i32
    %57 = tpu.dynamic_rotate %52 by %c4_i32 dim 0 : vector<16x32xf32>, i32 -> vector<16x32xf32>
    %58 = tpu.iota {dimensions = array<i32: 0>} : vector<16x32xi32>
    %c4_i32_36 = arith.constant 4 : i32
    %59 = vector.broadcast %c4_i32_36 : i32 to vector<16x32xi32>
    %60 = arith.cmpi sge, %58, %59 : vector<16x32xi32>
    %cst_37 = arith.constant 0.000000e+00 : f32
    %61 = vector.broadcast %cst_37 : f32 to vector<16x32xf32>
    %62 = arith.select %60, %57, %61 : vector<16x32xi1>, vector<16x32xf32>
    %c2_i32_38 = arith.constant 2 : i32
    %63 = tpu.dynamic_rotate %52 by %c2_i32_38 dim 0 : vector<16x32xf32>, i32 -> vector<16x32xf32>
    %64 = tpu.iota {dimensions = array<i32: 0>} : vector<16x32xi32>
    %c2_i32_39 = arith.constant 2 : i32
    %65 = vector.broadcast %c2_i32_39 : i32 to vector<16x32xi32>
    %66 = arith.cmpi sge, %64, %65 : vector<16x32xi32>
    %cst_40 = arith.constant 0.000000e+00 : f32
    %67 = vector.broadcast %cst_40 : f32 to vector<16x32xf32>
    %68 = arith.select %66, %63, %67 : vector<16x32xi1>, vector<16x32xf32>
    %69 = tpu.concatenate %62, %68, %52 in 1 : vector<16x32xf32>, vector<16x32xf32>, vector<16x32xf32> -> vector<16x96xf32>
    %70 = arith.truncf %69 : vector<16x96xf32> to vector<16x96xbf16>
    %cst_41 = arith.constant dense<0.000000e+00> : vector<16x32xf32>
    %71 = tpu.matmul %70, %54, %cst_41 {dimension_numbers = #tpu.dot_dimension_numbers<[1], [0], [0], [1], [0, 0, 1, 1], [], []>} : vector<16x96xbf16>, vector<96x32xbf16>, vector<16x32xf32> -> vector<16x32xf32>
    %72 = vector.broadcast %56 : vector<1x32xf32> to vector<16x32xf32>
    %73 = arith.addf %71, %72 : vector<16x32xf32>
    %cst_42 = arith.constant 0.000000e+00 : f32
    %74 = vector.broadcast %cst_42 : f32 to vector<16x32xf32>
    %75 = arith.maximumf %73, %74 : vector<16x32xf32>
    %c1_43 = arith.constant 1 : index
    %c0_44 = arith.constant 0 : index
    %c0_45 = arith.constant 0 : index
    %76 = vector.load %arg7[%c1_43, %c0_44, %c0_45] : memref<5x96x32xbf16, #tpu.memory_space<vmem>>, vector<1x96x32xbf16>
    %77 = vector.shape_cast %76 : vector<1x96x32xbf16> to vector<96x32xbf16>
    %c1_46 = arith.constant 1 : index
    %c0_47 = arith.constant 0 : index
    %c0_48 = arith.constant 0 : index
    %78 = vector.load %arg8[%c1_46, %c0_47, %c0_48] : memref<5x1x32xf32, #tpu.memory_space<vmem>>, vector<1x1x32xf32>
    %79 = vector.shape_cast %78 : vector<1x1x32xf32> to vector<1x32xf32>
    %c4_i32_49 = arith.constant 4 : i32
    %80 = tpu.dynamic_rotate %75 by %c4_i32_49 dim 0 : vector<16x32xf32>, i32 -> vector<16x32xf32>
    %81 = tpu.iota {dimensions = array<i32: 0>} : vector<16x32xi32>
    %c4_i32_50 = arith.constant 4 : i32
    %82 = vector.broadcast %c4_i32_50 : i32 to vector<16x32xi32>
    %83 = arith.cmpi sge, %81, %82 : vector<16x32xi32>
    %cst_51 = arith.constant 0.000000e+00 : f32
    %84 = vector.broadcast %cst_51 : f32 to vector<16x32xf32>
    %85 = arith.select %83, %80, %84 : vector<16x32xi1>, vector<16x32xf32>
    %c2_i32_52 = arith.constant 2 : i32
    %86 = tpu.dynamic_rotate %75 by %c2_i32_52 dim 0 : vector<16x32xf32>, i32 -> vector<16x32xf32>
    %87 = tpu.iota {dimensions = array<i32: 0>} : vector<16x32xi32>
    %c2_i32_53 = arith.constant 2 : i32
    %88 = vector.broadcast %c2_i32_53 : i32 to vector<16x32xi32>
    %89 = arith.cmpi sge, %87, %88 : vector<16x32xi32>
    %cst_54 = arith.constant 0.000000e+00 : f32
    %90 = vector.broadcast %cst_54 : f32 to vector<16x32xf32>
    %91 = arith.select %89, %86, %90 : vector<16x32xi1>, vector<16x32xf32>
    %92 = tpu.concatenate %85, %91, %75 in 1 : vector<16x32xf32>, vector<16x32xf32>, vector<16x32xf32> -> vector<16x96xf32>
    %93 = arith.truncf %92 : vector<16x96xf32> to vector<16x96xbf16>
    %cst_55 = arith.constant dense<0.000000e+00> : vector<16x32xf32>
    %94 = tpu.matmul %93, %77, %cst_55 {dimension_numbers = #tpu.dot_dimension_numbers<[1], [0], [0], [1], [0, 0, 1, 1], [], []>} : vector<16x96xbf16>, vector<96x32xbf16>, vector<16x32xf32> -> vector<16x32xf32>
    %95 = vector.broadcast %79 : vector<1x32xf32> to vector<16x32xf32>
    %96 = arith.addf %94, %95 : vector<16x32xf32>
    %cst_56 = arith.constant 0.000000e+00 : f32
    %97 = vector.broadcast %cst_56 : f32 to vector<16x32xf32>
    %98 = arith.maximumf %96, %97 : vector<16x32xf32>
    %99 = arith.addf %98, %52 : vector<16x32xf32>
    %cst_57 = arith.constant 0.000000e+00 : f32
    %100 = vector.broadcast %cst_57 : f32 to vector<16x32xf32>
    %101 = arith.maximumf %99, %100 : vector<16x32xf32>
    %c2 = arith.constant 2 : index
    %c0_58 = arith.constant 0 : index
    %c0_59 = arith.constant 0 : index
    %102 = vector.load %arg5[%c2, %c0_58, %c0_59] : memref<5x96x32xbf16, #tpu.memory_space<vmem>>, vector<1x96x32xbf16>
    %103 = vector.shape_cast %102 : vector<1x96x32xbf16> to vector<96x32xbf16>
    %c2_60 = arith.constant 2 : index
    %c0_61 = arith.constant 0 : index
    %c0_62 = arith.constant 0 : index
    %104 = vector.load %arg6[%c2_60, %c0_61, %c0_62] : memref<5x1x32xf32, #tpu.memory_space<vmem>>, vector<1x1x32xf32>
    %105 = vector.shape_cast %104 : vector<1x1x32xf32> to vector<1x32xf32>
    %c8_i32 = arith.constant 8 : i32
    %106 = tpu.dynamic_rotate %101 by %c8_i32 dim 0 : vector<16x32xf32>, i32 -> vector<16x32xf32>
    %107 = tpu.iota {dimensions = array<i32: 0>} : vector<16x32xi32>
    %c8_i32_63 = arith.constant 8 : i32
    %108 = vector.broadcast %c8_i32_63 : i32 to vector<16x32xi32>
    %109 = arith.cmpi sge, %107, %108 : vector<16x32xi32>
    %cst_64 = arith.constant 0.000000e+00 : f32
    %110 = vector.broadcast %cst_64 : f32 to vector<16x32xf32>
    %111 = arith.select %109, %106, %110 : vector<16x32xi1>, vector<16x32xf32>
    %c4_i32_65 = arith.constant 4 : i32
    %112 = tpu.dynamic_rotate %101 by %c4_i32_65 dim 0 : vector<16x32xf32>, i32 -> vector<16x32xf32>
    %113 = tpu.iota {dimensions = array<i32: 0>} : vector<16x32xi32>
    %c4_i32_66 = arith.constant 4 : i32
    %114 = vector.broadcast %c4_i32_66 : i32 to vector<16x32xi32>
    %115 = arith.cmpi sge, %113, %114 : vector<16x32xi32>
    %cst_67 = arith.constant 0.000000e+00 : f32
    %116 = vector.broadcast %cst_67 : f32 to vector<16x32xf32>
    %117 = arith.select %115, %112, %116 : vector<16x32xi1>, vector<16x32xf32>
    %118 = tpu.concatenate %111, %117, %101 in 1 : vector<16x32xf32>, vector<16x32xf32>, vector<16x32xf32> -> vector<16x96xf32>
    %119 = arith.truncf %118 : vector<16x96xf32> to vector<16x96xbf16>
    %cst_68 = arith.constant dense<0.000000e+00> : vector<16x32xf32>
    %120 = tpu.matmul %119, %103, %cst_68 {dimension_numbers = #tpu.dot_dimension_numbers<[1], [0], [0], [1], [0, 0, 1, 1], [], []>} : vector<16x96xbf16>, vector<96x32xbf16>, vector<16x32xf32> -> vector<16x32xf32>
    %121 = vector.broadcast %105 : vector<1x32xf32> to vector<16x32xf32>
    %122 = arith.addf %120, %121 : vector<16x32xf32>
    %cst_69 = arith.constant 0.000000e+00 : f32
    %123 = vector.broadcast %cst_69 : f32 to vector<16x32xf32>
    %124 = arith.maximumf %122, %123 : vector<16x32xf32>
    %c2_70 = arith.constant 2 : index
    %c0_71 = arith.constant 0 : index
    %c0_72 = arith.constant 0 : index
    %125 = vector.load %arg7[%c2_70, %c0_71, %c0_72] : memref<5x96x32xbf16, #tpu.memory_space<vmem>>, vector<1x96x32xbf16>
    %126 = vector.shape_cast %125 : vector<1x96x32xbf16> to vector<96x32xbf16>
    %c2_73 = arith.constant 2 : index
    %c0_74 = arith.constant 0 : index
    %c0_75 = arith.constant 0 : index
    %127 = vector.load %arg8[%c2_73, %c0_74, %c0_75] : memref<5x1x32xf32, #tpu.memory_space<vmem>>, vector<1x1x32xf32>
    %128 = vector.shape_cast %127 : vector<1x1x32xf32> to vector<1x32xf32>
    %c8_i32_76 = arith.constant 8 : i32
    %129 = tpu.dynamic_rotate %124 by %c8_i32_76 dim 0 : vector<16x32xf32>, i32 -> vector<16x32xf32>
    %130 = tpu.iota {dimensions = array<i32: 0>} : vector<16x32xi32>
    %c8_i32_77 = arith.constant 8 : i32
    %131 = vector.broadcast %c8_i32_77 : i32 to vector<16x32xi32>
    %132 = arith.cmpi sge, %130, %131 : vector<16x32xi32>
    %cst_78 = arith.constant 0.000000e+00 : f32
    %133 = vector.broadcast %cst_78 : f32 to vector<16x32xf32>
    %134 = arith.select %132, %129, %133 : vector<16x32xi1>, vector<16x32xf32>
    %c4_i32_79 = arith.constant 4 : i32
    %135 = tpu.dynamic_rotate %124 by %c4_i32_79 dim 0 : vector<16x32xf32>, i32 -> vector<16x32xf32>
    %136 = tpu.iota {dimensions = array<i32: 0>} : vector<16x32xi32>
    %c4_i32_80 = arith.constant 4 : i32
    %137 = vector.broadcast %c4_i32_80 : i32 to vector<16x32xi32>
    %138 = arith.cmpi sge, %136, %137 : vector<16x32xi32>
    %cst_81 = arith.constant 0.000000e+00 : f32
    %139 = vector.broadcast %cst_81 : f32 to vector<16x32xf32>
    %140 = arith.select %138, %135, %139 : vector<16x32xi1>, vector<16x32xf32>
    %141 = tpu.concatenate %134, %140, %124 in 1 : vector<16x32xf32>, vector<16x32xf32>, vector<16x32xf32> -> vector<16x96xf32>
    %142 = arith.truncf %141 : vector<16x96xf32> to vector<16x96xbf16>
    %cst_82 = arith.constant dense<0.000000e+00> : vector<16x32xf32>
    %143 = tpu.matmul %142, %126, %cst_82 {dimension_numbers = #tpu.dot_dimension_numbers<[1], [0], [0], [1], [0, 0, 1, 1], [], []>} : vector<16x96xbf16>, vector<96x32xbf16>, vector<16x32xf32> -> vector<16x32xf32>
    %144 = vector.broadcast %128 : vector<1x32xf32> to vector<16x32xf32>
    %145 = arith.addf %143, %144 : vector<16x32xf32>
    %cst_83 = arith.constant 0.000000e+00 : f32
    %146 = vector.broadcast %cst_83 : f32 to vector<16x32xf32>
    %147 = arith.maximumf %145, %146 : vector<16x32xf32>
    %148 = arith.addf %147, %101 : vector<16x32xf32>
    %cst_84 = arith.constant 0.000000e+00 : f32
    %149 = vector.broadcast %cst_84 : f32 to vector<16x32xf32>
    %150 = arith.maximumf %148, %149 : vector<16x32xf32>
    %c3 = arith.constant 3 : index
    %c0_85 = arith.constant 0 : index
    %c0_86 = arith.constant 0 : index
    %151 = vector.load %arg5[%c3, %c0_85, %c0_86] : memref<5x96x32xbf16, #tpu.memory_space<vmem>>, vector<1x96x32xbf16>
    %152 = vector.shape_cast %151 : vector<1x96x32xbf16> to vector<96x32xbf16>
    %c3_87 = arith.constant 3 : index
    %c0_88 = arith.constant 0 : index
    %c0_89 = arith.constant 0 : index
    %153 = vector.load %arg6[%c3_87, %c0_88, %c0_89] : memref<5x1x32xf32, #tpu.memory_space<vmem>>, vector<1x1x32xf32>
    %154 = vector.shape_cast %153 : vector<1x1x32xf32> to vector<1x32xf32>
    %cst_90 = arith.constant 0.000000e+00 : f32
    %155 = vector.broadcast %cst_90 : f32 to vector<16x32xf32>
    %c8_i32_91 = arith.constant 8 : i32
    %156 = tpu.dynamic_rotate %150 by %c8_i32_91 dim 0 : vector<16x32xf32>, i32 -> vector<16x32xf32>
    %157 = tpu.iota {dimensions = array<i32: 0>} : vector<16x32xi32>
    %c8_i32_92 = arith.constant 8 : i32
    %158 = vector.broadcast %c8_i32_92 : i32 to vector<16x32xi32>
    %159 = arith.cmpi sge, %157, %158 : vector<16x32xi32>
    %cst_93 = arith.constant 0.000000e+00 : f32
    %160 = vector.broadcast %cst_93 : f32 to vector<16x32xf32>
    %161 = arith.select %159, %156, %160 : vector<16x32xi1>, vector<16x32xf32>
    %162 = tpu.concatenate %155, %161, %150 in 1 : vector<16x32xf32>, vector<16x32xf32>, vector<16x32xf32> -> vector<16x96xf32>
    %163 = arith.truncf %162 : vector<16x96xf32> to vector<16x96xbf16>
    %cst_94 = arith.constant dense<0.000000e+00> : vector<16x32xf32>
    %164 = tpu.matmul %163, %152, %cst_94 {dimension_numbers = #tpu.dot_dimension_numbers<[1], [0], [0], [1], [0, 0, 1, 1], [], []>} : vector<16x96xbf16>, vector<96x32xbf16>, vector<16x32xf32> -> vector<16x32xf32>
    %165 = vector.broadcast %154 : vector<1x32xf32> to vector<16x32xf32>
    %166 = arith.addf %164, %165 : vector<16x32xf32>
    %cst_95 = arith.constant 0.000000e+00 : f32
    %167 = vector.broadcast %cst_95 : f32 to vector<16x32xf32>
    %168 = arith.maximumf %166, %167 : vector<16x32xf32>
    %c3_96 = arith.constant 3 : index
    %c0_97 = arith.constant 0 : index
    %c0_98 = arith.constant 0 : index
    %169 = vector.load %arg7[%c3_96, %c0_97, %c0_98] : memref<5x96x32xbf16, #tpu.memory_space<vmem>>, vector<1x96x32xbf16>
    %170 = vector.shape_cast %169 : vector<1x96x32xbf16> to vector<96x32xbf16>
    %c3_99 = arith.constant 3 : index
    %c0_100 = arith.constant 0 : index
    %c0_101 = arith.constant 0 : index
    %171 = vector.load %arg8[%c3_99, %c0_100, %c0_101] : memref<5x1x32xf32, #tpu.memory_space<vmem>>, vector<1x1x32xf32>
    %172 = vector.shape_cast %171 : vector<1x1x32xf32> to vector<1x32xf32>
    %cst_102 = arith.constant 0.000000e+00 : f32
    %173 = vector.broadcast %cst_102 : f32 to vector<16x32xf32>
    %c8_i32_103 = arith.constant 8 : i32
    %174 = tpu.dynamic_rotate %168 by %c8_i32_103 dim 0 : vector<16x32xf32>, i32 -> vector<16x32xf32>
    %175 = tpu.iota {dimensions = array<i32: 0>} : vector<16x32xi32>
    %c8_i32_104 = arith.constant 8 : i32
    %176 = vector.broadcast %c8_i32_104 : i32 to vector<16x32xi32>
    %177 = arith.cmpi sge, %175, %176 : vector<16x32xi32>
    %cst_105 = arith.constant 0.000000e+00 : f32
    %178 = vector.broadcast %cst_105 : f32 to vector<16x32xf32>
    %179 = arith.select %177, %174, %178 : vector<16x32xi1>, vector<16x32xf32>
    %180 = tpu.concatenate %173, %179, %168 in 1 : vector<16x32xf32>, vector<16x32xf32>, vector<16x32xf32> -> vector<16x96xf32>
    %181 = arith.truncf %180 : vector<16x96xf32> to vector<16x96xbf16>
    %cst_106 = arith.constant dense<0.000000e+00> : vector<16x32xf32>
    %182 = tpu.matmul %181, %170, %cst_106 {dimension_numbers = #tpu.dot_dimension_numbers<[1], [0], [0], [1], [0, 0, 1, 1], [], []>} : vector<16x96xbf16>, vector<96x32xbf16>, vector<16x32xf32> -> vector<16x32xf32>
    %183 = vector.broadcast %172 : vector<1x32xf32> to vector<16x32xf32>
    %184 = arith.addf %182, %183 : vector<16x32xf32>
    %cst_107 = arith.constant 0.000000e+00 : f32
    %185 = vector.broadcast %cst_107 : f32 to vector<16x32xf32>
    %186 = arith.maximumf %184, %185 : vector<16x32xf32>
    %187 = arith.addf %186, %150 : vector<16x32xf32>
    %cst_108 = arith.constant 0.000000e+00 : f32
    %188 = vector.broadcast %cst_108 : f32 to vector<16x32xf32>
    %189 = arith.maximumf %187, %188 : vector<16x32xf32>
    %c4 = arith.constant 4 : index
    %c0_109 = arith.constant 0 : index
    %c0_110 = arith.constant 0 : index
    %190 = vector.load %arg5[%c4, %c0_109, %c0_110] : memref<5x96x32xbf16, #tpu.memory_space<vmem>>, vector<1x96x32xbf16>
    %191 = vector.shape_cast %190 : vector<1x96x32xbf16> to vector<96x32xbf16>
    %c4_111 = arith.constant 4 : index
    %c0_112 = arith.constant 0 : index
    %c0_113 = arith.constant 0 : index
    %192 = vector.load %arg6[%c4_111, %c0_112, %c0_113] : memref<5x1x32xf32, #tpu.memory_space<vmem>>, vector<1x1x32xf32>
    %193 = vector.shape_cast %192 : vector<1x1x32xf32> to vector<1x32xf32>
    %cst_114 = arith.constant 0.000000e+00 : f32
    %194 = vector.broadcast %cst_114 : f32 to vector<16x32xf32>
    %cst_115 = arith.constant 0.000000e+00 : f32
    %195 = vector.broadcast %cst_115 : f32 to vector<16x32xf32>
    %196 = tpu.concatenate %194, %195, %189 in 1 : vector<16x32xf32>, vector<16x32xf32>, vector<16x32xf32> -> vector<16x96xf32>
    %197 = arith.truncf %196 : vector<16x96xf32> to vector<16x96xbf16>
    %cst_116 = arith.constant dense<0.000000e+00> : vector<16x32xf32>
    %198 = tpu.matmul %197, %191, %cst_116 {dimension_numbers = #tpu.dot_dimension_numbers<[1], [0], [0], [1], [0, 0, 1, 1], [], []>} : vector<16x96xbf16>, vector<96x32xbf16>, vector<16x32xf32> -> vector<16x32xf32>
    %199 = vector.broadcast %193 : vector<1x32xf32> to vector<16x32xf32>
    %200 = arith.addf %198, %199 : vector<16x32xf32>
    %cst_117 = arith.constant 0.000000e+00 : f32
    %201 = vector.broadcast %cst_117 : f32 to vector<16x32xf32>
    %202 = arith.maximumf %200, %201 : vector<16x32xf32>
    %c4_118 = arith.constant 4 : index
    %c0_119 = arith.constant 0 : index
    %c0_120 = arith.constant 0 : index
    %203 = vector.load %arg7[%c4_118, %c0_119, %c0_120] : memref<5x96x32xbf16, #tpu.memory_space<vmem>>, vector<1x96x32xbf16>
    %204 = vector.shape_cast %203 : vector<1x96x32xbf16> to vector<96x32xbf16>
    %c4_121 = arith.constant 4 : index
    %c0_122 = arith.constant 0 : index
    %c0_123 = arith.constant 0 : index
    %205 = vector.load %arg8[%c4_121, %c0_122, %c0_123] : memref<5x1x32xf32, #tpu.memory_space<vmem>>, vector<1x1x32xf32>
    %206 = vector.shape_cast %205 : vector<1x1x32xf32> to vector<1x32xf32>
    %cst_124 = arith.constant 0.000000e+00 : f32
    %207 = vector.broadcast %cst_124 : f32 to vector<16x32xf32>
    %cst_125 = arith.constant 0.000000e+00 : f32
    %208 = vector.broadcast %cst_125 : f32 to vector<16x32xf32>
    %209 = tpu.concatenate %207, %208, %202 in 1 : vector<16x32xf32>, vector<16x32xf32>, vector<16x32xf32> -> vector<16x96xf32>
    %210 = arith.truncf %209 : vector<16x96xf32> to vector<16x96xbf16>
    %cst_126 = arith.constant dense<0.000000e+00> : vector<16x32xf32>
    %211 = tpu.matmul %210, %204, %cst_126 {dimension_numbers = #tpu.dot_dimension_numbers<[1], [0], [0], [1], [0, 0, 1, 1], [], []>} : vector<16x96xbf16>, vector<96x32xbf16>, vector<16x32xf32> -> vector<16x32xf32>
    %212 = vector.broadcast %206 : vector<1x32xf32> to vector<16x32xf32>
    %213 = arith.addf %211, %212 : vector<16x32xf32>
    %cst_127 = arith.constant 0.000000e+00 : f32
    %214 = vector.broadcast %cst_127 : f32 to vector<16x32xf32>
    %215 = arith.maximumf %213, %214 : vector<16x32xf32>
    %216 = arith.addf %215, %189 : vector<16x32xf32>
    %cst_128 = arith.constant 0.000000e+00 : f32
    %217 = vector.broadcast %cst_128 : f32 to vector<16x32xf32>
    %218 = arith.maximumf %216, %217 : vector<16x32xf32>
    %c0_129 = arith.constant 0 : index
    %c0_130 = arith.constant 0 : index
    %c0_131 = arith.constant 0 : index
    %219 = vector.load %arg3[%c0_129, %c0_130, %c0_131] : memref<4x32x32xbf16, #tpu.memory_space<vmem>>, vector<1x32x32xbf16>
    %220 = vector.shape_cast %219 : vector<1x32x32xbf16> to vector<32x32xbf16>
    %221 = arith.truncf %1 : vector<16x32xf32> to vector<16x32xbf16>
    %cst_132 = arith.constant dense<0.000000e+00> : vector<16x32xf32>
    %222 = tpu.matmul %221, %220, %cst_132 {dimension_numbers = #tpu.dot_dimension_numbers<[1], [0], [0], [1], [0, 0, 1, 1], [], []>} : vector<16x32xbf16>, vector<32x32xbf16>, vector<16x32xf32> -> vector<16x32xf32>
    %c1_133 = arith.constant 1 : index
    %c0_134 = arith.constant 0 : index
    %c0_135 = arith.constant 0 : index
    %223 = vector.load %arg3[%c1_133, %c0_134, %c0_135] : memref<4x32x32xbf16, #tpu.memory_space<vmem>>, vector<1x32x32xbf16>
    %224 = vector.shape_cast %223 : vector<1x32x32xbf16> to vector<32x32xbf16>
    %225 = arith.truncf %1 : vector<16x32xf32> to vector<16x32xbf16>
    %cst_136 = arith.constant dense<0.000000e+00> : vector<16x32xf32>
    %226 = tpu.matmul %225, %224, %cst_136 {dimension_numbers = #tpu.dot_dimension_numbers<[1], [0], [0], [1], [0, 0, 1, 1], [], []>} : vector<16x32xbf16>, vector<32x32xbf16>, vector<16x32xf32> -> vector<16x32xf32>
    %c2_137 = arith.constant 2 : index
    %c0_138 = arith.constant 0 : index
    %c0_139 = arith.constant 0 : index
    %227 = vector.load %arg3[%c2_137, %c0_138, %c0_139] : memref<4x32x32xbf16, #tpu.memory_space<vmem>>, vector<1x32x32xbf16>
    %228 = vector.shape_cast %227 : vector<1x32x32xbf16> to vector<32x32xbf16>
    %229 = arith.truncf %1 : vector<16x32xf32> to vector<16x32xbf16>
    %cst_140 = arith.constant dense<0.000000e+00> : vector<16x32xf32>
    %230 = tpu.matmul %229, %228, %cst_140 {dimension_numbers = #tpu.dot_dimension_numbers<[1], [0], [0], [1], [0, 0, 1, 1], [], []>} : vector<16x32xbf16>, vector<32x32xbf16>, vector<16x32xf32> -> vector<16x32xf32>
    %231 = vector.extract_strided_slice %222 {offsets = [0, 0], sizes = [16, 8], strides = [1, 1]} : vector<16x32xf32> to vector<16x8xf32>
    %232 = vector.extract_strided_slice %226 {offsets = [0, 0], sizes = [16, 8], strides = [1, 1]} : vector<16x32xf32> to vector<16x8xf32>
    %233 = arith.truncf %231 : vector<16x8xf32> to vector<16x8xbf16>
    %234 = arith.truncf %232 : vector<16x8xf32> to vector<16x8xbf16>
    %cst_141 = arith.constant dense<0.000000e+00> : vector<16x16xf32>
    %235 = tpu.matmul %233, %234, %cst_141 {dimension_numbers = #tpu.dot_dimension_numbers<[1], [1], [0], [0], [0, 0, 1, 0], [], []>} : vector<16x8xbf16>, vector<16x8xbf16>, vector<16x16xf32> -> vector<16x16xf32>
    %cst_142 = arith.constant 0.353553385 : f32
    %236 = vector.broadcast %cst_142 : f32 to vector<16x16xf32>
    %237 = arith.mulf %235, %236 : vector<16x16xf32>
    %cst_143 = arith.constant dense<0xFF800000> : vector<16xf32>
    %238 = vector.multi_reduction <maximumf>, %237, %cst_143 [1] : vector<16x16xf32> to vector<16xf32>
    %239 = vector.shape_cast %238 : vector<16xf32> to vector<16x1xf32>
    %240 = vector.broadcast %239 : vector<16x1xf32> to vector<16x16xf32>
    %241 = arith.subf %237, %240 : vector<16x16xf32>
    %242 = math.exp %241 : vector<16x16xf32>
    %cst_144 = arith.constant dense<0.000000e+00> : vector<16xf32>
    %243 = vector.multi_reduction <add>, %242, %cst_144 [1] : vector<16x16xf32> to vector<16xf32>
    %244 = vector.shape_cast %243 : vector<16xf32> to vector<16x1xf32>
    %245 = tpu.reciprocal %244 {approx = true} : vector<16x1xf32> -> vector<16x1xf32>
    %246 = vector.broadcast %245 : vector<16x1xf32> to vector<16x16xf32>
    %247 = arith.mulf %242, %246 : vector<16x16xf32>
    %248 = vector.extract_strided_slice %230 {offsets = [0, 0], sizes = [16, 8], strides = [1, 1]} : vector<16x32xf32> to vector<16x8xf32>
    %249 = arith.truncf %247 : vector<16x16xf32> to vector<16x16xbf16>
    %250 = arith.truncf %248 : vector<16x8xf32> to vector<16x8xbf16>
    %cst_145 = arith.constant dense<0.000000e+00> : vector<16x8xf32>
    %251 = tpu.matmul %249, %250, %cst_145 {dimension_numbers = #tpu.dot_dimension_numbers<[1], [0], [0], [1], [0, 0, 1, 1], [], []>} : vector<16x16xbf16>, vector<16x8xbf16>, vector<16x8xf32> -> vector<16x8xf32>
    %252 = vector.extract_strided_slice %222 {offsets = [0, 8], sizes = [16, 8], strides = [1, 1]} : vector<16x32xf32> to vector<16x8xf32>
    %253 = vector.extract_strided_slice %226 {offsets = [0, 8], sizes = [16, 8], strides = [1, 1]} : vector<16x32xf32> to vector<16x8xf32>
    %254 = arith.truncf %252 : vector<16x8xf32> to vector<16x8xbf16>
    %255 = arith.truncf %253 : vector<16x8xf32> to vector<16x8xbf16>
    %cst_146 = arith.constant dense<0.000000e+00> : vector<16x16xf32>
    %256 = tpu.matmul %254, %255, %cst_146 {dimension_numbers = #tpu.dot_dimension_numbers<[1], [1], [0], [0], [0, 0, 1, 0], [], []>} : vector<16x8xbf16>, vector<16x8xbf16>, vector<16x16xf32> -> vector<16x16xf32>
    %cst_147 = arith.constant 0.353553385 : f32
    %257 = vector.broadcast %cst_147 : f32 to vector<16x16xf32>
    %258 = arith.mulf %256, %257 : vector<16x16xf32>
    %cst_148 = arith.constant dense<0xFF800000> : vector<16xf32>
    %259 = vector.multi_reduction <maximumf>, %258, %cst_148 [1] : vector<16x16xf32> to vector<16xf32>
    %260 = vector.shape_cast %259 : vector<16xf32> to vector<16x1xf32>
    %261 = vector.broadcast %260 : vector<16x1xf32> to vector<16x16xf32>
    %262 = arith.subf %258, %261 : vector<16x16xf32>
    %263 = math.exp %262 : vector<16x16xf32>
    %cst_149 = arith.constant dense<0.000000e+00> : vector<16xf32>
    %264 = vector.multi_reduction <add>, %263, %cst_149 [1] : vector<16x16xf32> to vector<16xf32>
    %265 = vector.shape_cast %264 : vector<16xf32> to vector<16x1xf32>
    %266 = tpu.reciprocal %265 {approx = true} : vector<16x1xf32> -> vector<16x1xf32>
    %267 = vector.broadcast %266 : vector<16x1xf32> to vector<16x16xf32>
    %268 = arith.mulf %263, %267 : vector<16x16xf32>
    %269 = vector.extract_strided_slice %230 {offsets = [0, 8], sizes = [16, 8], strides = [1, 1]} : vector<16x32xf32> to vector<16x8xf32>
    %270 = arith.truncf %268 : vector<16x16xf32> to vector<16x16xbf16>
    %271 = arith.truncf %269 : vector<16x8xf32> to vector<16x8xbf16>
    %cst_150 = arith.constant dense<0.000000e+00> : vector<16x8xf32>
    %272 = tpu.matmul %270, %271, %cst_150 {dimension_numbers = #tpu.dot_dimension_numbers<[1], [0], [0], [1], [0, 0, 1, 1], [], []>} : vector<16x16xbf16>, vector<16x8xbf16>, vector<16x8xf32> -> vector<16x8xf32>
    %273 = vector.extract_strided_slice %222 {offsets = [0, 16], sizes = [16, 8], strides = [1, 1]} : vector<16x32xf32> to vector<16x8xf32>
    %274 = vector.extract_strided_slice %226 {offsets = [0, 16], sizes = [16, 8], strides = [1, 1]} : vector<16x32xf32> to vector<16x8xf32>
    %275 = arith.truncf %273 : vector<16x8xf32> to vector<16x8xbf16>
    %276 = arith.truncf %274 : vector<16x8xf32> to vector<16x8xbf16>
    %cst_151 = arith.constant dense<0.000000e+00> : vector<16x16xf32>
    %277 = tpu.matmul %275, %276, %cst_151 {dimension_numbers = #tpu.dot_dimension_numbers<[1], [1], [0], [0], [0, 0, 1, 0], [], []>} : vector<16x8xbf16>, vector<16x8xbf16>, vector<16x16xf32> -> vector<16x16xf32>
    %cst_152 = arith.constant 0.353553385 : f32
    %278 = vector.broadcast %cst_152 : f32 to vector<16x16xf32>
    %279 = arith.mulf %277, %278 : vector<16x16xf32>
    %cst_153 = arith.constant dense<0xFF800000> : vector<16xf32>
    %280 = vector.multi_reduction <maximumf>, %279, %cst_153 [1] : vector<16x16xf32> to vector<16xf32>
    %281 = vector.shape_cast %280 : vector<16xf32> to vector<16x1xf32>
    %282 = vector.broadcast %281 : vector<16x1xf32> to vector<16x16xf32>
    %283 = arith.subf %279, %282 : vector<16x16xf32>
    %284 = math.exp %283 : vector<16x16xf32>
    %cst_154 = arith.constant dense<0.000000e+00> : vector<16xf32>
    %285 = vector.multi_reduction <add>, %284, %cst_154 [1] : vector<16x16xf32> to vector<16xf32>
    %286 = vector.shape_cast %285 : vector<16xf32> to vector<16x1xf32>
    %287 = tpu.reciprocal %286 {approx = true} : vector<16x1xf32> -> vector<16x1xf32>
    %288 = vector.broadcast %287 : vector<16x1xf32> to vector<16x16xf32>
    %289 = arith.mulf %284, %288 : vector<16x16xf32>
    %290 = vector.extract_strided_slice %230 {offsets = [0, 16], sizes = [16, 8], strides = [1, 1]} : vector<16x32xf32> to vector<16x8xf32>
    %291 = arith.truncf %289 : vector<16x16xf32> to vector<16x16xbf16>
    %292 = arith.truncf %290 : vector<16x8xf32> to vector<16x8xbf16>
    %cst_155 = arith.constant dense<0.000000e+00> : vector<16x8xf32>
    %293 = tpu.matmul %291, %292, %cst_155 {dimension_numbers = #tpu.dot_dimension_numbers<[1], [0], [0], [1], [0, 0, 1, 1], [], []>} : vector<16x16xbf16>, vector<16x8xbf16>, vector<16x8xf32> -> vector<16x8xf32>
    %294 = vector.extract_strided_slice %222 {offsets = [0, 24], sizes = [16, 8], strides = [1, 1]} : vector<16x32xf32> to vector<16x8xf32>
    %295 = vector.extract_strided_slice %226 {offsets = [0, 24], sizes = [16, 8], strides = [1, 1]} : vector<16x32xf32> to vector<16x8xf32>
    %296 = arith.truncf %294 : vector<16x8xf32> to vector<16x8xbf16>
    %297 = arith.truncf %295 : vector<16x8xf32> to vector<16x8xbf16>
    %cst_156 = arith.constant dense<0.000000e+00> : vector<16x16xf32>
    %298 = tpu.matmul %296, %297, %cst_156 {dimension_numbers = #tpu.dot_dimension_numbers<[1], [1], [0], [0], [0, 0, 1, 0], [], []>} : vector<16x8xbf16>, vector<16x8xbf16>, vector<16x16xf32> -> vector<16x16xf32>
    %cst_157 = arith.constant 0.353553385 : f32
    %299 = vector.broadcast %cst_157 : f32 to vector<16x16xf32>
    %300 = arith.mulf %298, %299 : vector<16x16xf32>
    %cst_158 = arith.constant dense<0xFF800000> : vector<16xf32>
    %301 = vector.multi_reduction <maximumf>, %300, %cst_158 [1] : vector<16x16xf32> to vector<16xf32>
    %302 = vector.shape_cast %301 : vector<16xf32> to vector<16x1xf32>
    %303 = vector.broadcast %302 : vector<16x1xf32> to vector<16x16xf32>
    %304 = arith.subf %300, %303 : vector<16x16xf32>
    %305 = math.exp %304 : vector<16x16xf32>
    %cst_159 = arith.constant dense<0.000000e+00> : vector<16xf32>
    %306 = vector.multi_reduction <add>, %305, %cst_159 [1] : vector<16x16xf32> to vector<16xf32>
    %307 = vector.shape_cast %306 : vector<16xf32> to vector<16x1xf32>
    %308 = tpu.reciprocal %307 {approx = true} : vector<16x1xf32> -> vector<16x1xf32>
    %309 = vector.broadcast %308 : vector<16x1xf32> to vector<16x16xf32>
    %310 = arith.mulf %305, %309 : vector<16x16xf32>
    %311 = vector.extract_strided_slice %230 {offsets = [0, 24], sizes = [16, 8], strides = [1, 1]} : vector<16x32xf32> to vector<16x8xf32>
    %312 = arith.truncf %310 : vector<16x16xf32> to vector<16x16xbf16>
    %313 = arith.truncf %311 : vector<16x8xf32> to vector<16x8xbf16>
    %cst_160 = arith.constant dense<0.000000e+00> : vector<16x8xf32>
    %314 = tpu.matmul %312, %313, %cst_160 {dimension_numbers = #tpu.dot_dimension_numbers<[1], [0], [0], [1], [0, 0, 1, 1], [], []>} : vector<16x16xbf16>, vector<16x8xbf16>, vector<16x8xf32> -> vector<16x8xf32>
    %315 = tpu.concatenate %251, %272, %293, %314 in 1 : vector<16x8xf32>, vector<16x8xf32>, vector<16x8xf32>, vector<16x8xf32> -> vector<16x32xf32>
    %c3_161 = arith.constant 3 : index
    %c0_162 = arith.constant 0 : index
    %c0_163 = arith.constant 0 : index
    %316 = vector.load %arg3[%c3_161, %c0_162, %c0_163] : memref<4x32x32xbf16, #tpu.memory_space<vmem>>, vector<1x32x32xbf16>
    %317 = vector.shape_cast %316 : vector<1x32x32xbf16> to vector<32x32xbf16>
    %318 = arith.truncf %315 : vector<16x32xf32> to vector<16x32xbf16>
    %cst_164 = arith.constant dense<0.000000e+00> : vector<16x32xf32>
    %319 = tpu.matmul %318, %317, %cst_164 {dimension_numbers = #tpu.dot_dimension_numbers<[1], [0], [0], [1], [0, 0, 1, 1], [], []>} : vector<16x32xbf16>, vector<32x32xbf16>, vector<16x32xf32> -> vector<16x32xf32>
    %320 = arith.addf %1, %319 : vector<16x32xf32>
    %321 = arith.addf %320, %218 : vector<16x32xf32>
    %cst_165 = arith.constant dense<0.000000e+00> : vector<16xf32>
    %322 = vector.multi_reduction <add>, %321, %cst_165 [1] : vector<16x32xf32> to vector<16xf32>
    %323 = vector.shape_cast %322 : vector<16xf32> to vector<16x1xf32>
    %cst_166 = arith.constant 3.200000e+01 : f32
    %324 = vector.broadcast %cst_166 : f32 to vector<16x1xf32>
    %325 = arith.divf %323, %324 : vector<16x1xf32>
    %326 = vector.broadcast %325 : vector<16x1xf32> to vector<16x32xf32>
    %327 = arith.subf %321, %326 : vector<16x32xf32>
    %328 = arith.mulf %327, %327 : vector<16x32xf32>
    %cst_167 = arith.constant dense<0.000000e+00> : vector<16xf32>
    %329 = vector.multi_reduction <add>, %328, %cst_167 [1] : vector<16x32xf32> to vector<16xf32>
    %330 = vector.shape_cast %329 : vector<16xf32> to vector<16x1xf32>
    %cst_168 = arith.constant 3.200000e+01 : f32
    %331 = vector.broadcast %cst_168 : f32 to vector<16x1xf32>
    %332 = arith.divf %330, %331 : vector<16x1xf32>
    %333 = vector.broadcast %325 : vector<16x1xf32> to vector<16x32xf32>
    %334 = arith.subf %321, %333 : vector<16x32xf32>
    %cst_169 = arith.constant 9.99999974E-6 : f32
    %335 = vector.broadcast %cst_169 : f32 to vector<16x1xf32>
    %336 = arith.addf %332, %335 : vector<16x1xf32>
    %337 = math.rsqrt %336 : vector<16x1xf32>
    %338 = vector.broadcast %337 : vector<16x1xf32> to vector<16x32xf32>
    %339 = arith.mulf %334, %338 : vector<16x32xf32>
    %c0_170 = arith.constant 0 : index
    %c0_171 = arith.constant 0 : index
    %c0_172 = arith.constant 0 : index
    %340 = vector.load %arg11[%c0_170, %c0_171, %c0_172] : memref<3x1x32xf32, #tpu.memory_space<vmem>>, vector<1x1x32xf32>
    %341 = vector.shape_cast %340 : vector<1x1x32xf32> to vector<1x32xf32>
    %342 = vector.broadcast %341 : vector<1x32xf32> to vector<16x32xf32>
    %343 = arith.mulf %339, %342 : vector<16x32xf32>
    %c0_173 = arith.constant 0 : index
    %c0_174 = arith.constant 0 : index
    %c0_175 = arith.constant 0 : index
    %344 = vector.load %arg12[%c0_173, %c0_174, %c0_175] : memref<3x1x32xf32, #tpu.memory_space<vmem>>, vector<1x1x32xf32>
    %345 = vector.shape_cast %344 : vector<1x1x32xf32> to vector<1x32xf32>
    %346 = vector.broadcast %345 : vector<1x32xf32> to vector<16x32xf32>
    %347 = arith.addf %343, %346 : vector<16x32xf32>
    %c0_176 = arith.constant 0 : index
    %c0_177 = arith.constant 0 : index
    %c0_178 = arith.constant 0 : index
    %348 = vector.load %arg4[%c0_176, %c0_177, %c0_178] : memref<4x32x32xbf16, #tpu.memory_space<vmem>>, vector<1x32x32xbf16>
    %349 = vector.shape_cast %348 : vector<1x32x32xbf16> to vector<32x32xbf16>
    %350 = arith.truncf %347 : vector<16x32xf32> to vector<16x32xbf16>
    %cst_179 = arith.constant dense<0.000000e+00> : vector<16x32xf32>
    %351 = tpu.matmul %350, %349, %cst_179 {dimension_numbers = #tpu.dot_dimension_numbers<[1], [0], [0], [1], [0, 0, 1, 1], [], []>} : vector<16x32xbf16>, vector<32x32xbf16>, vector<16x32xf32> -> vector<16x32xf32>
    %c1_180 = arith.constant 1 : index
    %c0_181 = arith.constant 0 : index
    %c0_182 = arith.constant 0 : index
    %352 = vector.load %arg4[%c1_180, %c0_181, %c0_182] : memref<4x32x32xbf16, #tpu.memory_space<vmem>>, vector<1x32x32xbf16>
    %353 = vector.shape_cast %352 : vector<1x32x32xbf16> to vector<32x32xbf16>
    %354 = arith.truncf %3 : vector<16x32xf32> to vector<16x32xbf16>
    %cst_183 = arith.constant dense<0.000000e+00> : vector<16x32xf32>
    %355 = tpu.matmul %354, %353, %cst_183 {dimension_numbers = #tpu.dot_dimension_numbers<[1], [0], [0], [1], [0, 0, 1, 1], [], []>} : vector<16x32xbf16>, vector<32x32xbf16>, vector<16x32xf32> -> vector<16x32xf32>
    %c2_184 = arith.constant 2 : index
    %c0_185 = arith.constant 0 : index
    %c0_186 = arith.constant 0 : index
    %356 = vector.load %arg4[%c2_184, %c0_185, %c0_186] : memref<4x32x32xbf16, #tpu.memory_space<vmem>>, vector<1x32x32xbf16>
    %357 = vector.shape_cast %356 : vector<1x32x32xbf16> to vector<32x32xbf16>
    %358 = arith.truncf %3 : vector<16x32xf32> to vector<16x32xbf16>
    %cst_187 = arith.constant dense<0.000000e+00> : vector<16x32xf32>
    %359 = tpu.matmul %358, %357, %cst_187 {dimension_numbers = #tpu.dot_dimension_numbers<[1], [0], [0], [1], [0, 0, 1, 1], [], []>} : vector<16x32xbf16>, vector<32x32xbf16>, vector<16x32xf32> -> vector<16x32xf32>
    %360 = vector.extract_strided_slice %351 {offsets = [0, 0], sizes = [16, 8], strides = [1, 1]} : vector<16x32xf32> to vector<16x8xf32>
    %361 = vector.extract_strided_slice %355 {offsets = [0, 0], sizes = [16, 8], strides = [1, 1]} : vector<16x32xf32> to vector<16x8xf32>
    %362 = arith.truncf %360 : vector<16x8xf32> to vector<16x8xbf16>
    %363 = arith.truncf %361 : vector<16x8xf32> to vector<16x8xbf16>
    %cst_188 = arith.constant dense<0.000000e+00> : vector<16x16xf32>
    %364 = tpu.matmul %362, %363, %cst_188 {dimension_numbers = #tpu.dot_dimension_numbers<[1], [1], [0], [0], [0, 0, 1, 0], [], []>} : vector<16x8xbf16>, vector<16x8xbf16>, vector<16x16xf32> -> vector<16x16xf32>
    %cst_189 = arith.constant 0.353553385 : f32
    %365 = vector.broadcast %cst_189 : f32 to vector<16x16xf32>
    %366 = arith.mulf %364, %365 : vector<16x16xf32>
    %cst_190 = arith.constant dense<0xFF800000> : vector<16xf32>
    %367 = vector.multi_reduction <maximumf>, %366, %cst_190 [1] : vector<16x16xf32> to vector<16xf32>
    %368 = vector.shape_cast %367 : vector<16xf32> to vector<16x1xf32>
    %369 = vector.broadcast %368 : vector<16x1xf32> to vector<16x16xf32>
    %370 = arith.subf %366, %369 : vector<16x16xf32>
    %371 = math.exp %370 : vector<16x16xf32>
    %cst_191 = arith.constant dense<0.000000e+00> : vector<16xf32>
    %372 = vector.multi_reduction <add>, %371, %cst_191 [1] : vector<16x16xf32> to vector<16xf32>
    %373 = vector.shape_cast %372 : vector<16xf32> to vector<16x1xf32>
    %374 = tpu.reciprocal %373 {approx = true} : vector<16x1xf32> -> vector<16x1xf32>
    %375 = vector.broadcast %374 : vector<16x1xf32> to vector<16x16xf32>
    %376 = arith.mulf %371, %375 : vector<16x16xf32>
    %377 = vector.extract_strided_slice %359 {offsets = [0, 0], sizes = [16, 8], strides = [1, 1]} : vector<16x32xf32> to vector<16x8xf32>
    %378 = arith.truncf %376 : vector<16x16xf32> to vector<16x16xbf16>
    %379 = arith.truncf %377 : vector<16x8xf32> to vector<16x8xbf16>
    %cst_192 = arith.constant dense<0.000000e+00> : vector<16x8xf32>
    %380 = tpu.matmul %378, %379, %cst_192 {dimension_numbers = #tpu.dot_dimension_numbers<[1], [0], [0], [1], [0, 0, 1, 1], [], []>} : vector<16x16xbf16>, vector<16x8xbf16>, vector<16x8xf32> -> vector<16x8xf32>
    %381 = vector.extract_strided_slice %351 {offsets = [0, 8], sizes = [16, 8], strides = [1, 1]} : vector<16x32xf32> to vector<16x8xf32>
    %382 = vector.extract_strided_slice %355 {offsets = [0, 8], sizes = [16, 8], strides = [1, 1]} : vector<16x32xf32> to vector<16x8xf32>
    %383 = arith.truncf %381 : vector<16x8xf32> to vector<16x8xbf16>
    %384 = arith.truncf %382 : vector<16x8xf32> to vector<16x8xbf16>
    %cst_193 = arith.constant dense<0.000000e+00> : vector<16x16xf32>
    %385 = tpu.matmul %383, %384, %cst_193 {dimension_numbers = #tpu.dot_dimension_numbers<[1], [1], [0], [0], [0, 0, 1, 0], [], []>} : vector<16x8xbf16>, vector<16x8xbf16>, vector<16x16xf32> -> vector<16x16xf32>
    %cst_194 = arith.constant 0.353553385 : f32
    %386 = vector.broadcast %cst_194 : f32 to vector<16x16xf32>
    %387 = arith.mulf %385, %386 : vector<16x16xf32>
    %cst_195 = arith.constant dense<0xFF800000> : vector<16xf32>
    %388 = vector.multi_reduction <maximumf>, %387, %cst_195 [1] : vector<16x16xf32> to vector<16xf32>
    %389 = vector.shape_cast %388 : vector<16xf32> to vector<16x1xf32>
    %390 = vector.broadcast %389 : vector<16x1xf32> to vector<16x16xf32>
    %391 = arith.subf %387, %390 : vector<16x16xf32>
    %392 = math.exp %391 : vector<16x16xf32>
    %cst_196 = arith.constant dense<0.000000e+00> : vector<16xf32>
    %393 = vector.multi_reduction <add>, %392, %cst_196 [1] : vector<16x16xf32> to vector<16xf32>
    %394 = vector.shape_cast %393 : vector<16xf32> to vector<16x1xf32>
    %395 = tpu.reciprocal %394 {approx = true} : vector<16x1xf32> -> vector<16x1xf32>
    %396 = vector.broadcast %395 : vector<16x1xf32> to vector<16x16xf32>
    %397 = arith.mulf %392, %396 : vector<16x16xf32>
    %398 = vector.extract_strided_slice %359 {offsets = [0, 8], sizes = [16, 8], strides = [1, 1]} : vector<16x32xf32> to vector<16x8xf32>
    %399 = arith.truncf %397 : vector<16x16xf32> to vector<16x16xbf16>
    %400 = arith.truncf %398 : vector<16x8xf32> to vector<16x8xbf16>
    %cst_197 = arith.constant dense<0.000000e+00> : vector<16x8xf32>
    %401 = tpu.matmul %399, %400, %cst_197 {dimension_numbers = #tpu.dot_dimension_numbers<[1], [0], [0], [1], [0, 0, 1, 1], [], []>} : vector<16x16xbf16>, vector<16x8xbf16>, vector<16x8xf32> -> vector<16x8xf32>
    %402 = vector.extract_strided_slice %351 {offsets = [0, 16], sizes = [16, 8], strides = [1, 1]} : vector<16x32xf32> to vector<16x8xf32>
    %403 = vector.extract_strided_slice %355 {offsets = [0, 16], sizes = [16, 8], strides = [1, 1]} : vector<16x32xf32> to vector<16x8xf32>
    %404 = arith.truncf %402 : vector<16x8xf32> to vector<16x8xbf16>
    %405 = arith.truncf %403 : vector<16x8xf32> to vector<16x8xbf16>
    %cst_198 = arith.constant dense<0.000000e+00> : vector<16x16xf32>
    %406 = tpu.matmul %404, %405, %cst_198 {dimension_numbers = #tpu.dot_dimension_numbers<[1], [1], [0], [0], [0, 0, 1, 0], [], []>} : vector<16x8xbf16>, vector<16x8xbf16>, vector<16x16xf32> -> vector<16x16xf32>
    %cst_199 = arith.constant 0.353553385 : f32
    %407 = vector.broadcast %cst_199 : f32 to vector<16x16xf32>
    %408 = arith.mulf %406, %407 : vector<16x16xf32>
    %cst_200 = arith.constant dense<0xFF800000> : vector<16xf32>
    %409 = vector.multi_reduction <maximumf>, %408, %cst_200 [1] : vector<16x16xf32> to vector<16xf32>
    %410 = vector.shape_cast %409 : vector<16xf32> to vector<16x1xf32>
    %411 = vector.broadcast %410 : vector<16x1xf32> to vector<16x16xf32>
    %412 = arith.subf %408, %411 : vector<16x16xf32>
    %413 = math.exp %412 : vector<16x16xf32>
    %cst_201 = arith.constant dense<0.000000e+00> : vector<16xf32>
    %414 = vector.multi_reduction <add>, %413, %cst_201 [1] : vector<16x16xf32> to vector<16xf32>
    %415 = vector.shape_cast %414 : vector<16xf32> to vector<16x1xf32>
    %416 = tpu.reciprocal %415 {approx = true} : vector<16x1xf32> -> vector<16x1xf32>
    %417 = vector.broadcast %416 : vector<16x1xf32> to vector<16x16xf32>
    %418 = arith.mulf %413, %417 : vector<16x16xf32>
    %419 = vector.extract_strided_slice %359 {offsets = [0, 16], sizes = [16, 8], strides = [1, 1]} : vector<16x32xf32> to vector<16x8xf32>
    %420 = arith.truncf %418 : vector<16x16xf32> to vector<16x16xbf16>
    %421 = arith.truncf %419 : vector<16x8xf32> to vector<16x8xbf16>
    %cst_202 = arith.constant dense<0.000000e+00> : vector<16x8xf32>
    %422 = tpu.matmul %420, %421, %cst_202 {dimension_numbers = #tpu.dot_dimension_numbers<[1], [0], [0], [1], [0, 0, 1, 1], [], []>} : vector<16x16xbf16>, vector<16x8xbf16>, vector<16x8xf32> -> vector<16x8xf32>
    %423 = vector.extract_strided_slice %351 {offsets = [0, 24], sizes = [16, 8], strides = [1, 1]} : vector<16x32xf32> to vector<16x8xf32>
    %424 = vector.extract_strided_slice %355 {offsets = [0, 24], sizes = [16, 8], strides = [1, 1]} : vector<16x32xf32> to vector<16x8xf32>
    %425 = arith.truncf %423 : vector<16x8xf32> to vector<16x8xbf16>
    %426 = arith.truncf %424 : vector<16x8xf32> to vector<16x8xbf16>
    %cst_203 = arith.constant dense<0.000000e+00> : vector<16x16xf32>
    %427 = tpu.matmul %425, %426, %cst_203 {dimension_numbers = #tpu.dot_dimension_numbers<[1], [1], [0], [0], [0, 0, 1, 0], [], []>} : vector<16x8xbf16>, vector<16x8xbf16>, vector<16x16xf32> -> vector<16x16xf32>
    %cst_204 = arith.constant 0.353553385 : f32
    %428 = vector.broadcast %cst_204 : f32 to vector<16x16xf32>
    %429 = arith.mulf %427, %428 : vector<16x16xf32>
    %cst_205 = arith.constant dense<0xFF800000> : vector<16xf32>
    %430 = vector.multi_reduction <maximumf>, %429, %cst_205 [1] : vector<16x16xf32> to vector<16xf32>
    %431 = vector.shape_cast %430 : vector<16xf32> to vector<16x1xf32>
    %432 = vector.broadcast %431 : vector<16x1xf32> to vector<16x16xf32>
    %433 = arith.subf %429, %432 : vector<16x16xf32>
    %434 = math.exp %433 : vector<16x16xf32>
    %cst_206 = arith.constant dense<0.000000e+00> : vector<16xf32>
    %435 = vector.multi_reduction <add>, %434, %cst_206 [1] : vector<16x16xf32> to vector<16xf32>
    %436 = vector.shape_cast %435 : vector<16xf32> to vector<16x1xf32>
    %437 = tpu.reciprocal %436 {approx = true} : vector<16x1xf32> -> vector<16x1xf32>
    %438 = vector.broadcast %437 : vector<16x1xf32> to vector<16x16xf32>
    %439 = arith.mulf %434, %438 : vector<16x16xf32>
    %440 = vector.extract_strided_slice %359 {offsets = [0, 24], sizes = [16, 8], strides = [1, 1]} : vector<16x32xf32> to vector<16x8xf32>
    %441 = arith.truncf %439 : vector<16x16xf32> to vector<16x16xbf16>
    %442 = arith.truncf %440 : vector<16x8xf32> to vector<16x8xbf16>
    %cst_207 = arith.constant dense<0.000000e+00> : vector<16x8xf32>
    %443 = tpu.matmul %441, %442, %cst_207 {dimension_numbers = #tpu.dot_dimension_numbers<[1], [0], [0], [1], [0, 0, 1, 1], [], []>} : vector<16x16xbf16>, vector<16x8xbf16>, vector<16x8xf32> -> vector<16x8xf32>
    %444 = tpu.concatenate %380, %401, %422, %443 in 1 : vector<16x8xf32>, vector<16x8xf32>, vector<16x8xf32>, vector<16x8xf32> -> vector<16x32xf32>
    %c3_208 = arith.constant 3 : index
    %c0_209 = arith.constant 0 : index
    %c0_210 = arith.constant 0 : index
    %445 = vector.load %arg4[%c3_208, %c0_209, %c0_210] : memref<4x32x32xbf16, #tpu.memory_space<vmem>>, vector<1x32x32xbf16>
    %446 = vector.shape_cast %445 : vector<1x32x32xbf16> to vector<32x32xbf16>
    %447 = arith.truncf %444 : vector<16x32xf32> to vector<16x32xbf16>
    %cst_211 = arith.constant dense<0.000000e+00> : vector<16x32xf32>
    %448 = tpu.matmul %447, %446, %cst_211 {dimension_numbers = #tpu.dot_dimension_numbers<[1], [0], [0], [1], [0, 0, 1, 1], [], []>} : vector<16x32xbf16>, vector<32x32xbf16>, vector<16x32xf32> -> vector<16x32xf32>
    %449 = arith.addf %347, %448 : vector<16x32xf32>
    %cst_212 = arith.constant dense<0.000000e+00> : vector<16xf32>
    %450 = vector.multi_reduction <add>, %449, %cst_212 [1] : vector<16x32xf32> to vector<16xf32>
    %451 = vector.shape_cast %450 : vector<16xf32> to vector<16x1xf32>
    %cst_213 = arith.constant 3.200000e+01 : f32
    %452 = vector.broadcast %cst_213 : f32 to vector<16x1xf32>
    %453 = arith.divf %451, %452 : vector<16x1xf32>
    %454 = vector.broadcast %453 : vector<16x1xf32> to vector<16x32xf32>
    %455 = arith.subf %449, %454 : vector<16x32xf32>
    %456 = arith.mulf %455, %455 : vector<16x32xf32>
    %cst_214 = arith.constant dense<0.000000e+00> : vector<16xf32>
    %457 = vector.multi_reduction <add>, %456, %cst_214 [1] : vector<16x32xf32> to vector<16xf32>
    %458 = vector.shape_cast %457 : vector<16xf32> to vector<16x1xf32>
    %cst_215 = arith.constant 3.200000e+01 : f32
    %459 = vector.broadcast %cst_215 : f32 to vector<16x1xf32>
    %460 = arith.divf %458, %459 : vector<16x1xf32>
    %461 = vector.broadcast %453 : vector<16x1xf32> to vector<16x32xf32>
    %462 = arith.subf %449, %461 : vector<16x32xf32>
    %cst_216 = arith.constant 9.99999974E-6 : f32
    %463 = vector.broadcast %cst_216 : f32 to vector<16x1xf32>
    %464 = arith.addf %460, %463 : vector<16x1xf32>
    %465 = math.rsqrt %464 : vector<16x1xf32>
    %466 = vector.broadcast %465 : vector<16x1xf32> to vector<16x32xf32>
    %467 = arith.mulf %462, %466 : vector<16x32xf32>
    %c1_217 = arith.constant 1 : index
    %c0_218 = arith.constant 0 : index
    %c0_219 = arith.constant 0 : index
    %468 = vector.load %arg11[%c1_217, %c0_218, %c0_219] : memref<3x1x32xf32, #tpu.memory_space<vmem>>, vector<1x1x32xf32>
    %469 = vector.shape_cast %468 : vector<1x1x32xf32> to vector<1x32xf32>
    %470 = vector.broadcast %469 : vector<1x32xf32> to vector<16x32xf32>
    %471 = arith.mulf %467, %470 : vector<16x32xf32>
    %c1_220 = arith.constant 1 : index
    %c0_221 = arith.constant 0 : index
    %c0_222 = arith.constant 0 : index
    %472 = vector.load %arg12[%c1_220, %c0_221, %c0_222] : memref<3x1x32xf32, #tpu.memory_space<vmem>>, vector<1x1x32xf32>
    %473 = vector.shape_cast %472 : vector<1x1x32xf32> to vector<1x32xf32>
    %474 = vector.broadcast %473 : vector<1x32xf32> to vector<16x32xf32>
    %475 = arith.addf %471, %474 : vector<16x32xf32>
    %c0_223 = arith.constant 0 : index
    %c0_224 = arith.constant 0 : index
    %476 = vector.load %arg9[%c0_223, %c0_224] : memref<32x128xbf16, #tpu.memory_space<vmem>>, vector<32x128xbf16>
    %477 = arith.truncf %475 : vector<16x32xf32> to vector<16x32xbf16>
    %cst_225 = arith.constant dense<0.000000e+00> : vector<16x128xf32>
    %478 = tpu.matmul %477, %476, %cst_225 {dimension_numbers = #tpu.dot_dimension_numbers<[1], [0], [0], [1], [0, 0, 1, 1], [], []>} : vector<16x32xbf16>, vector<32x128xbf16>, vector<16x128xf32> -> vector<16x128xf32>
    %cst_226 = arith.constant 0.000000e+00 : f32
    %479 = vector.broadcast %cst_226 : f32 to vector<16x128xf32>
    %480 = arith.maximumf %478, %479 : vector<16x128xf32>
    %c0_227 = arith.constant 0 : index
    %c0_228 = arith.constant 0 : index
    %481 = vector.load %arg10[%c0_227, %c0_228] : memref<128x32xbf16, #tpu.memory_space<vmem>>, vector<128x32xbf16>
    %482 = arith.truncf %480 : vector<16x128xf32> to vector<16x128xbf16>
    %cst_229 = arith.constant dense<0.000000e+00> : vector<16x32xf32>
    %483 = tpu.matmul %482, %481, %cst_229 {dimension_numbers = #tpu.dot_dimension_numbers<[1], [0], [0], [1], [0, 0, 1, 1], [], []>} : vector<16x128xbf16>, vector<128x32xbf16>, vector<16x32xf32> -> vector<16x32xf32>
    %484 = arith.addf %475, %483 : vector<16x32xf32>
    %cst_230 = arith.constant dense<0.000000e+00> : vector<16xf32>
    %485 = vector.multi_reduction <add>, %484, %cst_230 [1] : vector<16x32xf32> to vector<16xf32>
    %486 = vector.shape_cast %485 : vector<16xf32> to vector<16x1xf32>
    %cst_231 = arith.constant 3.200000e+01 : f32
    %487 = vector.broadcast %cst_231 : f32 to vector<16x1xf32>
    %488 = arith.divf %486, %487 : vector<16x1xf32>
    %489 = vector.broadcast %488 : vector<16x1xf32> to vector<16x32xf32>
    %490 = arith.subf %484, %489 : vector<16x32xf32>
    %491 = arith.mulf %490, %490 : vector<16x32xf32>
    %cst_232 = arith.constant dense<0.000000e+00> : vector<16xf32>
    %492 = vector.multi_reduction <add>, %491, %cst_232 [1] : vector<16x32xf32> to vector<16xf32>
    %493 = vector.shape_cast %492 : vector<16xf32> to vector<16x1xf32>
    %cst_233 = arith.constant 3.200000e+01 : f32
    %494 = vector.broadcast %cst_233 : f32 to vector<16x1xf32>
    %495 = arith.divf %493, %494 : vector<16x1xf32>
    %496 = vector.broadcast %488 : vector<16x1xf32> to vector<16x32xf32>
    %497 = arith.subf %484, %496 : vector<16x32xf32>
    %cst_234 = arith.constant 9.99999974E-6 : f32
    %498 = vector.broadcast %cst_234 : f32 to vector<16x1xf32>
    %499 = arith.addf %495, %498 : vector<16x1xf32>
    %500 = math.rsqrt %499 : vector<16x1xf32>
    %501 = vector.broadcast %500 : vector<16x1xf32> to vector<16x32xf32>
    %502 = arith.mulf %497, %501 : vector<16x32xf32>
    %c2_235 = arith.constant 2 : index
    %c0_236 = arith.constant 0 : index
    %c0_237 = arith.constant 0 : index
    %503 = vector.load %arg11[%c2_235, %c0_236, %c0_237] : memref<3x1x32xf32, #tpu.memory_space<vmem>>, vector<1x1x32xf32>
    %504 = vector.shape_cast %503 : vector<1x1x32xf32> to vector<1x32xf32>
    %505 = vector.broadcast %504 : vector<1x32xf32> to vector<16x32xf32>
    %506 = arith.mulf %502, %505 : vector<16x32xf32>
    %c2_238 = arith.constant 2 : index
    %c0_239 = arith.constant 0 : index
    %c0_240 = arith.constant 0 : index
    %507 = vector.load %arg12[%c2_238, %c0_239, %c0_240] : memref<3x1x32xf32, #tpu.memory_space<vmem>>, vector<1x1x32xf32>
    %508 = vector.shape_cast %507 : vector<1x1x32xf32> to vector<1x32xf32>
    %509 = vector.broadcast %508 : vector<1x32xf32> to vector<16x32xf32>
    %510 = arith.addf %506, %509 : vector<16x32xf32>
    %c0_241 = arith.constant 0 : index
    %c0_242 = arith.constant 0 : index
    %c0_243 = arith.constant 0 : index
    %511 = vector.load %arg13[%c0_241, %c0_242, %c0_243] : memref<1x16x32xf32, #tpu.memory_space<vmem>>, vector<1x16x32xf32>
    %512 = vector.shape_cast %511 : vector<1x16x32xf32> to vector<16x32xf32>
    %513 = vector.shape_cast %510 : vector<16x32xf32> to vector<1x16x32xf32>
    tpu.vector_store %arg13[%c0_241, %c0_242, %c0_243], %513 {strides = array<i32>} : memref<1x16x32xf32, #tpu.memory_space<vmem>>, vector<1x16x32xf32>,
    return
  }
  func.func @transform_0(%arg0: i32) -> (i32, i32, i32) {
    %c0_i32 = arith.constant 0 : i32
    %c0_i32_0 = arith.constant 0 : i32
    %c0_i32_1 = arith.constant 0 : i32
    return %arg0, %c0_i32, %c0_i32_0 : i32, i32, i32
  }
  func.func @transform_1(%arg0: i32) -> (i32, i32, i32) {
    %c0_i32 = arith.constant 0 : i32
    %c0_i32_0 = arith.constant 0 : i32
    %c0_i32_1 = arith.constant 0 : i32
    return %arg0, %c0_i32, %c0_i32_0 : i32, i32, i32
  }
  func.func @transform_2(%arg0: i32) -> (i32, i32, i32) {
    %c0_i32 = arith.constant 0 : i32
    %c0_i32_0 = arith.constant 0 : i32
    %c0_i32_1 = arith.constant 0 : i32
    %c0_i32_2 = arith.constant 0 : i32
    return %c0_i32, %c0_i32_0, %c0_i32_1 : i32, i32, i32
  }
  func.func @transform_3(%arg0: i32) -> (i32, i32, i32) {
    %c0_i32 = arith.constant 0 : i32
    %c0_i32_0 = arith.constant 0 : i32
    %c0_i32_1 = arith.constant 0 : i32
    %c0_i32_2 = arith.constant 0 : i32
    return %c0_i32, %c0_i32_0, %c0_i32_1 : i32, i32, i32
  }
  func.func @transform_4(%arg0: i32) -> (i32, i32, i32) {
    %c0_i32 = arith.constant 0 : i32
    %c0_i32_0 = arith.constant 0 : i32
    %c0_i32_1 = arith.constant 0 : i32
    %c0_i32_2 = arith.constant 0 : i32
    return %c0_i32, %c0_i32_0, %c0_i32_1 : i32, i32, i32
  }
  func.func @transform_5(%arg0: i32) -> (i32, i32, i32) {
    %c0_i32 = arith.constant 0 : i32
    %c0_i32_0 = arith.constant 0 : i32
    %c0_i32_1 = arith.constant 0 : i32
    %c0_i32_2 = arith.constant 0 : i32
    return %c0_i32, %c0_i32_0, %c0_i32_1 : i32, i32, i32
  }
  func.func @transform_6(%arg0: i32) -> (i32, i32, i32) {
    %c0_i32 = arith.constant 0 : i32
    %c0_i32_0 = arith.constant 0 : i32
    %c0_i32_1 = arith.constant 0 : i32
    %c0_i32_2 = arith.constant 0 : i32
    return %c0_i32, %c0_i32_0, %c0_i32_1 : i32, i32, i32
  }
  func.func @transform_7(%arg0: i32) -> (i32, i32, i32) {
    %c0_i32 = arith.constant 0 : i32
    %c0_i32_0 = arith.constant 0 : i32
    %c0_i32_1 = arith.constant 0 : i32
    %c0_i32_2 = arith.constant 0 : i32
    return %c0_i32, %c0_i32_0, %c0_i32_1 : i32, i32, i32
  }
  func.func @transform_8(%arg0: i32) -> (i32, i32) {
    %c0_i32 = arith.constant 0 : i32
    %c0_i32_0 = arith.constant 0 : i32
    %c0_i32_1 = arith.constant 0 : i32
    return %c0_i32, %c0_i32_0 : i32, i32
  }
  func.func @transform_9(%arg0: i32) -> (i32, i32) {
    %c0_i32 = arith.constant 0 : i32
    %c0_i32_0 = arith.constant 0 : i32
    %c0_i32_1 = arith.constant 0 : i32
    return %c0_i32, %c0_i32_0 : i32, i32
  }
  func.func @transform_10(%arg0: i32) -> (i32, i32, i32) {
    %c0_i32 = arith.constant 0 : i32
    %c0_i32_0 = arith.constant 0 : i32
    %c0_i32_1 = arith.constant 0 : i32
    %c0_i32_2 = arith.constant 0 : i32
    return %c0_i32, %c0_i32_0, %c0_i32_1 : i32, i32, i32
  }
  func.func @transform_11(%arg0: i32) -> (i32, i32, i32) {
    %c0_i32 = arith.constant 0 : i32
    %c0_i32_0 = arith.constant 0 : i32
    %c0_i32_1 = arith.constant 0 : i32
    %c0_i32_2 = arith.constant 0 : i32
    return %c0_i32, %c0_i32_0, %c0_i32_1 : i32, i32, i32
  }
  func.func @transform_12(%arg0: i32) -> (i32, i32, i32) {
    %c0_i32 = arith.constant 0 : i32
    %c0_i32_0 = arith.constant 0 : i32
    %c0_i32_1 = arith.constant 0 : i32
    return %arg0, %c0_i32, %c0_i32_0 : i32, i32, i32
  }
}

</mosaic_0001>

<bundles_post_ra>
// kernel: _lambda_.1
= control target key start
LH: loop header
LB: loop body
LE: loop exit
PB: predicated region body
PF: predicated region fallthrough
CT: control target
= control target key end

     0   :  { %s5895_s0 = inlined_call_operand.vmem [shape: f32[2,16,32], index: 0, kind: input, shape index: {}]   ;;  %s5896_s1 = inlined_call_operand.vmem [shape: f32[2,16,32], index: 1, kind: input, shape index: {}]   ;;  %s5897_s2 = inlined_call_operand.vmem [shape: bf16[4,32,32], index: 2, kind: input, shape index: {}]   ;;  %s5898_s3 = inlined_call_operand.vmem [shape: bf16[4,32,32], index: 3, kind: input, shape index: {}]   ;;  %s5899_s4 = inlined_call_operand.vmem [shape: bf16[5,96,32], index: 4, kind: input, shape index: {}]   ;;  %s5900_s5 = inlined_call_operand.vmem [shape: f32[5,1,32], index: 5, kind: input, shape index: {}]   ;;  %s5901_s6 = inlined_call_operand.vmem [shape: bf16[5,96,32], index: 6, kind: input, shape index: {}]   ;;  %s5902_s7 = inlined_call_operand.vmem [shape: f32[5,1,32], index: 7, kind: input, shape index: {}]   ;;  %s5903_s8 = inlined_call_operand.vmem [shape: bf16[32,128], index: 8, kind: input, shape index: {}]   ;;  %s5904_s9 = inlined_call_operand.vmem [shape: bf16[128,32], index: 9, kind: input, shape index: {}]   ;;  %s5905_s10 = inlined_call_operand.vmem [shape: f32[3,1,32], index: 10, kind: input, shape index: {}]   ;;  %s5906_s11 = inlined_call_operand.vmem [shape: f32[3,1,32], index: 11, kind: input, shape index: {}]   ;;  %s5907_s12 = inlined_call_operand.hbm [shape: f32[2,16,32], index: 12, kind: output, shape index: {}]  }
   0x1   :  { %5918 = sst [smem:[#allocation7_spill]] %s5895_s0 }
   0x2   :  { %5919 = sst [smem:[#allocation8_spill]] %s5896_s1 }
   0x3   :  { %17 = vsyncpa [#allocation3], 0 }
   0x4   :  { %19 = vsyncpa [#allocation3 + $0x1], 0  ;;  %s4936_s21 = smov 0   ;;  %s4938_s22 = smov 0  }
   0x5   :  { %s4940_s23 = smov 0   ;;  %s4942_s24 = smov 0  }
   0x6 LB: > { %5920 = sst [smem:[#allocation5_spill]] %s4853_s23  ;;  %s4957_s25 = sadd.s32 4294967295, %s4857_s24   ;;  %s4857_s24 = sphi %s4942_s24, %s5936_s24   ;;  %s4853_s23 = sphi %s4940_s23, %s5933_s23   ;;  %s4849_s22 = sphi %s4938_s22, %s5935_s22   ;;  %s4845_s21 = sphi %s4936_s21, %s5934_s21  }
   0x7   : > { %s3689_s26 = sadd.s32 4294967294, %s4857_s24   ;;  %s4961_s27 = sadd.s32 1, %s4857_s24  }
   0x8   : > { %s294_s28 = sadd.s32 1, %s4853_s23  ;;  %s291_s29 = ssub.s32 %s4857_s24, %s4961_s27 }
   0x9   : > { %p304_p0 = scmp.ne.s32.totalorder %s4853_s23, %s4849_s22  ;;  %p292_p1 = scmp.eq.s32.totalorder %s291_s29, 0 }
   0xa   : > { %p305_p2 = scmp.eq.s32.totalorder %s4957_s25, 1  ;;  %p310_p3 = scmp.ne.s32.totalorder %s4849_s22, %s4845_s21 }
   0xb   : > { %p311_p4 = scmp.eq.s32.totalorder %s3689_s26, 1  ;;  %p3692_p7 = scmp.ge.s32.totalorder %s4857_s24, 1 }
   0xc   : > { %s4972_s30 = scalar_select %p292_p1, %s4853_s23, %s294_s28  }
   0xd   : > { %p4974_p5 = por %p305_p2, %p304_p0  ;;  %p4978_p6 = por %p311_p4, %p310_p3 }
   0xe   : > { %5921 = sst [smem:[#allocation6_spill]] %s4972_s30  ;;  %p375_p8 = scmp.lt.s32.totalorder %s4857_s24, 3 }
  0x10   : > { %p376_p9 = pnand %p3692_p7, %p375_p8 }
  0x11   : > { %p422_p10 = scmp.lt.s32.totalorder (!%p376_p9), %s4957_s25, 1  ;;  %v452_v0 = vlaneseq (!%p376_p9)  ;;  %v4631_v1 = vld [vmem:[%s5899_s4] sm:$0xff] (!%p376_p9)   ;;  %v4859_v2 = vmov (!%p376_p9), 0.0   ;;  %v4632_v3 = vld [vmem:[%s5899_s4 + $0x8] sm:$0xff] (!%p376_p9)   ;;  %s5924_s0 = sld [smem:[#allocation7_spill]] (!%p376_p9)  ;;  %v4633_v7 = vld [vmem:[%s5899_s4 + $0x10] sm:$0xff] (!%p376_p9)  }
  0x12   : > { %379 = sbr.rel (%p376_p9) target bundleno = 7254 (0x1c56), region = 68  ;;  %4113 = vmatprep.subr.bf16.mxu0 (!%p376_p9), %v4859_v2  ;;  %4129 = vmatprep.subr.bf16.mxu1 (!%p376_p9), %v4859_v2  ;;  %vm4860_vm2 = vmmov (!%p376_p9), 0   ;;  %v4634_v13 = vld [vmem:[%s5899_s4 + $0x18] sm:$0xff] (!%p376_p9)   ;;  %v4635_v15 = vld [vmem:[%s5899_s4 + $0x20] sm:$0xff] (!%p376_p9)   ;;  %s5911_s15 = smov (!%p376_p9), 32   ;;  %v4636_v17 = vld [vmem:[%s5899_s4 + $0x28] sm:$0xff] (!%p376_p9)  }
  0x13   : > { %v4996_v4 = vshrl.u32 (!%p376_p9), %v452_v0, 7  ;;  %4114 = vmatpush3.bf16.msra.mxu0 (!%p376_p9), %v4631_v1  ;;  %4125 = vmatprep.mubr.msk.bf16.mxu0 (!%p376_p9), %vm4860_vm2, %v4859_v2  ;;  %s5909_s17 = smov (!%p376_p9), 64   ;;  %vm487_vm5 = vcmask (!%p376_p9), 261120   ;;  %vm490_vm6 = vcmask (!%p376_p9), 523264   ;;  %vm536_vm7 = vcmask (!%p376_p9), 785408   ;;  %v4637_v34 = vld [vmem:[%s5901_s6] sm:$0xff] (!%p376_p9)  }
  0x14   : > { %4115 = vmatprep.subr.bf16.mxu0 (!%p376_p9), %v4859_v2  ;;  %4141 = vmatprep.mubr.msk.bf16.mxu1 (!%p376_p9), %vm4860_vm2, %v4859_v2  ;;  %v4638_v35 = vld [vmem:[%s5901_s6 + $0x8] sm:$0xff] (!%p376_p9)   ;;  %v4639_v36 = vld [vmem:[%s5901_s6 + $0x10] sm:$0xff] (!%p376_p9)   ;;  %v4640_v37 = vld [vmem:[%s5901_s6 + $0x18] sm:$0xff] (!%p376_p9)   ;;  %s5925_s28 = smov (!%p376_p9), 32   ;;  %s5926_s16 = smov (!%p376_p9), 64   ;;  %vm1937_vm10 = vcmask (!%p376_p9), 64512  }
  0x15   : > { %vm464_vm0 = vcmp.lt.s32.totalorder (!%p376_p9), %v4996_v4, 1  ;;  %vm467_vm1 = vcmp.ge.s32.totalorder (!%p376_p9), %v4996_v4, 1  ;;  %vm454_vm3 = vcmp.lt.s32.totalorder (!%p376_p9), %v4996_v4, 2  ;;  %vm458_vm4 = vcmp.ge.s32.totalorder (!%p376_p9), %v4996_v4, 2  ;;  %4130 = vmatpush3.bf16.msra.mxu1 (!%p376_p9), %v4637_v34  ;;  %v3698_v38 = vld [vmem:[%s5900_s5] ss:$0 sm:$0xff] (!%p376_p9) }
  0x16   : > { %4131 = vmatprep.subr.bf16.mxu1 (!%p376_p9), %v4859_v2  ;;  %v4641_v40 = vld [vmem:[%s5901_s6 + $0x20] sm:$0xff] (!%p376_p9)   ;;  %v4642_v47 = vld [vmem:[%s5901_s6 + $0x28] sm:$0xff] (!%p376_p9)   ;;  %vm738_vm8 = vcmp.lt.s32.totalorder (!%p376_p9), %v4996_v4, 4  ;;  %vm741_vm9 = vcmp.ge.s32.totalorder (!%p376_p9), %v4996_v4, 4  ;;  %v4667_v4 = vld [vmem:[%s5899_s4 + $0x90] sm:$0xff] (!%p376_p9)   ;;  %s4863_s26 = smov (!%p376_p9), 120  }
  0x17   : > { %4116 = vmatpush3.bf16.msra.mxu0 (!%p376_p9), %v4632_v3  ;;  %vm1987_vm11 = vcmask (!%p376_p9), 130048   ;;  %s5915_s23 = smov (!%p376_p9), 16   ;;  %s5914_s30 = smov (!%p376_p9), 24   ;;  %vm2456_vm12 = vcmask (!%p376_p9), 195584  }
  0x18   : > { %4117 = vmatprep.subr.bf16.mxu0 (!%p376_p9), %v4859_v2  ;;  %s5928_s1 = sld [smem:[#allocation8_spill]] (!%p376_p9) }
  0x19   : > { %s4994_s19 = scalar_select %p422_p10, %s4957_s25, 1  ;;  %4132 = vmatpush3.bf16.msra.mxu1 %v4638_v35 }
  0x1a   : > { %4133 = vmatprep.subr.bf16.mxu1 %v4859_v2 }
  0x1b   : > { %s5908_s20 = sshll.u32 %s4994_s19, 4  ;;  %4118 = vmatpush3.bf16.msra.mxu0 %v4633_v7 }
  0x1c   : > { %s5005_s29 = scalar_lea.vmem %s5924_s0, %s5908_s20  ;;  %4119 = vmatprep.subr.bf16.mxu0 %v4859_v2  ;;  %s5916_s20 = smov 8  }
  0x1d   : > { %v5008_v5 = vld [vmem:[%s5005_s29] sm:$0xff]  ;;  %v5011_v6 = vld [vmem:[%s5005_s29 + $0x8] sm:$0xff]  ;;  %4134 = vmatpush3.bf16.msra.mxu1 %v4639_v36 }
  0x1e   : > { %v462_v8 = vrot.slane %v5008_v5, 7  ;;  %v463_v9 = vrot.slane %v5011_v6, 7  ;;  %v4516_v16 = vpack.i.bf16 %v5011_v6, %v5008_v5  ;;  %v451_v18 = vrot.slane %v5011_v6, 6  ;;  %4135 = vmatprep.subr.bf16.mxu1 %v4859_v2 }
  0x1f   : > { %4120 = vmatpush3.bf16.msra.mxu0 %v4634_v13  ;;  %v450_v19 = vrot.slane %v5008_v5, 6  ;;  %v4644_v13 = vld [vmem:[%s5899_s4 + $0x38] sm:$0xff]  }
  0x20   : > { %v465_v10 = vsel %vm464_vm0, %v462_v8, %v463_v9  ;;  %v466_v11 = vsel %vm464_vm0, %v463_v9, %v462_v8  ;;  %4121 = vmatprep.subr.bf16.mxu0 %v4859_v2 }
  0x21   : > { %v469_v12 = vsel %vm467_vm1, %v466_v11, 0.0  ;;  %v456_v21 = vsel %vm454_vm3, %v451_v18, %v450_v19  ;;  %v455_v24 = vsel %vm454_vm3, %v450_v19, %v451_v18  ;;  %4136 = vmatpush3.bf16.msra.mxu1 %v4640_v37  ;;  %v4647_v18 = vld [vmem:[%s5899_s4 + $0x50] sm:$0xff]  }
  0x22   : > { %v4511_v14 = vpack.i.bf16 %v465_v10, %v469_v12  ;;  %v460_v25 = vsel %vm458_vm4, %v456_v21, 0.0  ;;  %4137 = vmatprep.subr.bf16.mxu1 %v4859_v2  ;;  %v4643_v12 = vld [vmem:[%s5899_s4 + $0x30] sm:$0xff]  }
  0x23   : > { %4122 = vmatpush3.bf16.msra.mxu0 %v4635_v15  ;;  %v4646_v15 = vld [vmem:[%s5899_s4 + $0x48] sm:$0xff]  }
  0x24   : > { %4512 = vrot.lane.b32.xlu0 %v4511_v14, %s5911_s15  ;;  %4123 = vmatprep.subr.bf16.mxu0 %v4859_v2  ;;  %v4645_v14 = vld [vmem:[%s5899_s4 + $0x40] sm:$0xff]   ;;  %s419_s15 = sand.u32 1, %s4849_s22  }
  0x25   : > { %4138 = vmatpush3.bf16.msra.mxu1 %v4641_v40  ;;  %s3693_s18 = sshll.u32 %s419_s15, 4 }
  0x26   : > { %4139 = vmatprep.subr.bf16.mxu1 %v4859_v2 }
  0x27   : > { %4124 = vmatpush3.bf16.msra.mxu0 %v4636_v17 }
  0x28   : > { %4517 = vrot.lane.b32.xlu0 %v4516_v16, %s5909_s17  ;;  %4145 = vmatprep.subr.bf16.mxu0 %v4859_v2  ;;  %v3706_v16 = vld [vmem:[%s5902_s7] ss:$0 sm:$0xff]  ;;  %s4864_s17 = smov 112  }
  0x29   : > { %4140 = vmatpush3.bf16.msra.mxu1 %v4642_v47 }
  0x2a   : > { %4161 = vmatprep.subr.bf16.mxu1 %v4859_v2 }
  0x96   : > { %v4513_v20 = vpop.permute.xlu0 %4512 }
  0x97   : > { %v4515_v22 = vunpack.i.h.bf16 %v4513_v20  ;;  %v4514_v23 = vunpack.i.l.bf16 %v4513_v20 }
  0x99   : > { %v488_v29 = vsel %vm487_vm5, %v460_v25, %v4514_v23  ;;  %v489_v30 = vsel %vm487_vm5, %v455_v24, %v4515_v22 }
  0x9a   : > { %v4518_v26 = vpop.permute.xlu0 %4517 }
  0x9b   : > { %v4520_v27 = vunpack.i.h.bf16 %v4518_v26  ;;  %v4519_v28 = vunpack.i.l.bf16 %v4518_v26 }
  0x9d   : > { %v491_v31 = vsel %vm490_vm6, %v488_v29, %v4519_v28  ;;  %v492_v32 = vsel %vm490_vm6, %v489_v30, %v4520_v27  ;;  %v4648_v27 = vld [vmem:[%s5899_s4 + $0x58] sm:$0xff]  }
  0x9e   : > { %v493_v33 = vpack.c.bf16 %v492_v32, %v491_v31 }
  0xa0   : > { %4126 = vmatmul.mubr.msk.bf16.vlgmr.msra.gmra.mrb[0].mxu0 %vm536_vm7, %v493_v33 }
  0xa1   : > { %4157 = vmatprep.mubr.msk.bf16.mxu0 %vm4860_vm2, %v4859_v2  ;;  %4146 = vmatpush3.bf16.msra.mxu0 %v4643_v12 }
  0xa2   : > { %4147 = vmatprep.subr.bf16.mxu0 %v4859_v2 }
  0xa5   : > { %4148 = vmatpush3.bf16.msra.mxu0 %v4644_v13 }
  0xa6   : > { %4149 = vmatprep.subr.bf16.mxu0 %v4859_v2 }
  0xa9   : > { %4150 = vmatpush3.bf16.msra.mxu0 %v4645_v14 }
  0xaa   : > { %4151 = vmatprep.subr.bf16.mxu0 %v4859_v2 }
  0xad   : > { %4152 = vmatpush3.bf16.msra.mxu0 %v4646_v15 }
  0xae   : > { %4153 = vmatprep.subr.bf16.mxu0 %v4859_v2 }
  0xb1   : > { %4154 = vmatpush3.bf16.msra.mxu0 %v4647_v18 }
  0xb2   : > { %4155 = vmatprep.subr.bf16.mxu0 %v4859_v2 }
  0xb5   : > { %4156 = vmatpush3.bf16.msra.mxu0 %v4648_v27 }
  0xb6   : > { %4177 = vmatprep.subr.bf16.mxu0 %v4859_v2 }
 0x173   : > { %v574_v39 = vpop.f32.mrb[0].mxu0 }
 0x174   : > { %v575_v41 = vadd.f32 %v3698_v38, %v574_v39  ;;  %v4127_v42 = vpop.f32.mrb[1].mxu0 }
 0x175   : > { %v577_v43 = vpop.f32.mrb[2].mxu0 }
 0x176   : > { %v581_v44 = vmax.f32 %v575_v41, 0.0  ;;  %v578_v45 = vadd.f32 %v3698_v38, %v577_v43  ;;  %v4128_v46 = vpop.f32.mrb[3].mxu0 }
 0x178   : > { %v582_v48 = vmax.f32 %v578_v45, 0.0  ;;  %v596_v49 = vrot.slane %v581_v44, 6  ;;  %v602_v50 = vrot.slane %v581_v44, 7 }
 0x17a   : > { %v597_v51 = vrot.slane %v582_v48, 6  ;;  %v603_v52 = vrot.slane %v582_v48, 7  ;;  %v4526_v53 = vpack.i.bf16 %v582_v48, %v581_v44 }
 0x17c   : > { %v604_v54 = vsel %vm464_vm0, %v602_v50, %v603_v52  ;;  %v605_v55 = vsel %vm464_vm0, %v603_v52, %v602_v50  ;;  %v598_v56 = vsel %vm454_vm3, %v596_v49, %v597_v51  ;;  %v599_v57 = vsel %vm454_vm3, %v597_v51, %v596_v49  ;;  %v4649_v52 = vld [vmem:[%s5901_s6 + $0x30] sm:$0xff]  }
 0x17d   : > { %v606_v58 = vsel %vm467_vm1, %v605_v55, 0.0  ;;  %v600_v0 = vsel %vm458_vm4, %v599_v57, 0.0  ;;  %v4652_v55 = vld [vmem:[%s5901_s6 + $0x48] sm:$0xff]   ;;  %v3727_v57 = vld [vmem:[%s5900_s5 + $0x1] ss:$0 sm:$0xff] }
 0x17e   : > { %v4521_v59 = vpack.i.bf16 %v604_v54, %v606_v58  ;;  %v4651_v54 = vld [vmem:[%s5901_s6 + $0x40] sm:$0xff]  }
 0x180   : > { %4522 = vrot.lane.b32.xlu1 %v4521_v59, %s5925_s28 }
 0x184   : > { %4527 = vrot.lane.b32.xlu1 %v4526_v53, %s5926_s16  ;;  %v4650_v53 = vld [vmem:[%s5901_s6 + $0x38] sm:$0xff]  }
 0x1f2   : > { %v4523_v60 = vpop.permute.xlu1 %4522 }
 0x1f3   : > { %v4525_v61 = vunpack.i.h.bf16 %v4523_v60  ;;  %v4524_v62 = vunpack.i.l.bf16 %v4523_v60 }
 0x1f5   : > { %v624_v7 = vsel %vm487_vm5, %v600_v0, %v4524_v62  ;;  %v625_v8 = vsel %vm487_vm5, %v598_v56, %v4525_v61  ;;  %v4653_v56 = vld [vmem:[%s5901_s6 + $0x50] sm:$0xff]   ;;  %v4654_v61 = vld [vmem:[%s5901_s6 + $0x58] sm:$0xff]  }
 0x1f6   : > { %v4528_v63 = vpop.permute.xlu1 %4527 }
 0x1f7   : > { %v4530_v1 = vunpack.i.h.bf16 %v4528_v63  ;;  %v4529_v3 = vunpack.i.l.bf16 %v4528_v63 }
 0x1f9   : > { %v626_v9 = vsel %vm490_vm6, %v624_v7, %v4529_v3  ;;  %v627_v10 = vsel %vm490_vm6, %v625_v8, %v4530_v1 }
 0x1fa   : > { %v628_v11 = vpack.c.bf16 %v627_v10, %v626_v9 }
 0x1fc   : > { %4142 = vmatmul.mubr.msk.bf16.vlgmr.msra.gmra.mrb[0].mxu1 %vm536_vm7, %v628_v11 }
 0x1fd   : > { %4173 = vmatprep.mubr.msk.bf16.mxu1 %vm4860_vm2, %v4859_v2  ;;  %4162 = vmatpush3.bf16.msra.mxu1 %v4649_v52 }
 0x1fe   : > { %4163 = vmatprep.subr.bf16.mxu1 %v4859_v2 }
 0x201   : > { %4164 = vmatpush3.bf16.msra.mxu1 %v4650_v53 }
 0x202   : > { %4165 = vmatprep.subr.bf16.mxu1 %v4859_v2 }
 0x205   : > { %4166 = vmatpush3.bf16.msra.mxu1 %v4651_v54 }
 0x206   : > { %4167 = vmatprep.subr.bf16.mxu1 %v4859_v2 }
 0x209   : > { %4168 = vmatpush3.bf16.msra.mxu1 %v4652_v55 }
 0x20a   : > { %4169 = vmatprep.subr.bf16.mxu1 %v4859_v2 }
 0x20d   : > { %4170 = vmatpush3.bf16.msra.mxu1 %v4653_v56 }
 0x20e   : > { %4171 = vmatprep.subr.bf16.mxu1 %v4859_v2 }
 0x211   : > { %4172 = vmatpush3.bf16.msra.mxu1 %v4654_v61 }
 0x212   : > { %4193 = vmatprep.subr.bf16.mxu1 %v4859_v2 }
 0x2cf   : > { %v708_v17 = vpop.f32.mrb[0].mxu1 }
 0x2d0   : > { %v709_v19 = vadd.f32 %v3706_v16, %v708_v17  ;;  %v4143_v20 = vpop.f32.mrb[1].mxu1 }
 0x2d1   : > { %v711_v21 = vpop.f32.mrb[2].mxu1 }
 0x2d2   : > { %v715_v22 = vmax.f32 %v709_v19, 0.0  ;;  %v712_v23 = vadd.f32 %v3706_v16, %v711_v21  ;;  %v4144_v24 = vpop.f32.mrb[3].mxu1 }
 0x2d4   : > { %v717_v25 = vadd.f32 %v715_v22, %v5008_v5  ;;  %v716_v26 = vmax.f32 %v712_v23, 0.0 }
 0x2d6   : > { %v5140_v28 = vmax.f32 %v717_v25, 0.0  ;;  %v718_v29 = vadd.f32 %v716_v26, %v5011_v6 }
 0x2d8   : > { %v5144_v30 = vmax.f32 %v718_v29, 0.0  ;;  %v745_v32 = vrot.slane %v5140_v28, 6  ;;  %v736_v37 = vrot.slane %v5140_v28, 4 }
 0x2da   : > { %v4536_v31 = vpack.i.bf16 %v5144_v30, %v5140_v28  ;;  %v746_v5 = vrot.slane %v5144_v30, 6  ;;  %v737_v36 = vrot.slane %v5144_v30, 4 }
 0x2dc   : > { %4537 = vrot.lane.b32.xlu1 %v4536_v31, %s5926_s16  ;;  %v747_v33 = vsel %vm454_vm3, %v745_v32, %v746_v5  ;;  %v748_v6 = vsel %vm454_vm3, %v746_v5, %v745_v32  ;;  %v740_v39 = vsel %vm738_vm8, %v737_v36, %v736_v37  ;;  %v739_v45 = vsel %vm738_vm8, %v736_v37, %v737_v36  ;;  %v4655_v32 = vld [vmem:[%s5899_s4 + $0x60] sm:$0xff]   ;;  %v4656_v5 = vld [vmem:[%s5899_s4 + $0x68] sm:$0xff]  }
 0x2dd   : > { %v749_v34 = vsel %vm458_vm4, %v748_v6, 0.0  ;;  %v743_v46 = vsel %vm741_vm9, %v740_v39, 0.0  ;;  %v4658_v6 = vld [vmem:[%s5899_s4 + $0x78] sm:$0xff]   ;;  %v4659_v36 = vld [vmem:[%s5899_s4 + $0x80] sm:$0xff]  }
 0x2de   : > { %v4531_v35 = vpack.i.bf16 %v747_v33, %v749_v34  ;;  %v4657_v33 = vld [vmem:[%s5899_s4 + $0x70] sm:$0xff]   ;;  %v3748_v34 = vld [vmem:[%s5902_s7 + $0x1] ss:$0 sm:$0xff] }
 0x2e0   : > { %4532 = vrot.lane.b32.xlu0 %v4531_v35, %s5925_s28 }
 0x34e   : > { %v4538_v38 = vpop.permute.xlu1 %4537 }
 0x34f   : > { %v4540_v43 = vunpack.i.h.bf16 %v4538_v38  ;;  %v4539_v44 = vunpack.i.l.bf16 %v4538_v38 }
 0x352   : > { %v4533_v40 = vpop.permute.xlu0 %4532 }
 0x353   : > { %v4535_v41 = vunpack.i.h.bf16 %v4533_v40  ;;  %v4534_v42 = vunpack.i.l.bf16 %v4533_v40 }
 0x355   : > { %v767_v47 = vsel %vm487_vm5, %v743_v46, %v4534_v42  ;;  %v768_v48 = vsel %vm487_vm5, %v739_v45, %v4535_v41  ;;  %v4660_v45 = vld [vmem:[%s5899_s4 + $0x88] sm:$0xff]  }
 0x356   : > { %v769_v49 = vsel %vm490_vm6, %v767_v47, %v4539_v44  ;;  %v770_v50 = vsel %vm490_vm6, %v768_v48, %v4540_v43 }
 0x357   : > { %v771_v51 = vpack.c.bf16 %v770_v50, %v769_v49 }
 0x359   : > { %4158 = vmatmul.mubr.msk.bf16.vlgmr.msra.gmra.mrb[4].mxu0 %vm536_vm7, %v771_v51 }
 0x35a   : > { %4189 = vmatprep.mubr.msk.bf16.mxu0 %vm4860_vm2, %v4859_v2  ;;  %4178 = vmatpush3.bf16.msra.mxu0 %v4655_v32 }
 0x35b   : > { %4179 = vmatprep.subr.bf16.mxu0 %v4859_v2 }
 0x35e   : > { %4180 = vmatpush3.bf16.msra.mxu0 %v4656_v5 }
 0x35f   : > { %4181 = vmatprep.subr.bf16.mxu0 %v4859_v2 }
 0x362   : > { %4182 = vmatpush3.bf16.msra.mxu0 %v4657_v33 }
 0x363   : > { %4183 = vmatprep.subr.bf16.mxu0 %v4859_v2 }
 0x366   : > { %4184 = vmatpush3.bf16.msra.mxu0 %v4658_v6 }
 0x367   : > { %4185 = vmatprep.subr.bf16.mxu0 %v4859_v2 }
 0x36a   : > { %4186 = vmatpush3.bf16.msra.mxu0 %v4659_v36 }
 0x36b   : > { %4187 = vmatprep.subr.bf16.mxu0 %v4859_v2 }
 0x36e   : > { %4188 = vmatpush3.bf16.msra.mxu0 %v4660_v45 }
 0x36f   : > { %4209 = vmatprep.subr.bf16.mxu0 %v4859_v2 }
 0x42c   : > { %v851_v58 = vpop.f32.mrb[4].mxu0 }
 0x42d   : > { %v852_v59 = vadd.f32 %v3727_v57, %v851_v58  ;;  %v4159_v60 = vpop.f32.mrb[5].mxu0 }
 0x42e   : > { %v854_v62 = vpop.f32.mrb[6].mxu0 }
 0x42f   : > { %v858_v63 = vmax.f32 %v852_v59, 0.0  ;;  %v855_v0 = vadd.f32 %v3727_v57, %v854_v62  ;;  %v4160_v1 = vpop.f32.mrb[7].mxu0 }
 0x430   : > { %v4661_v1 = vld [vmem:[%s5901_s6 + $0x60] sm:$0xff]  }
 0x431   : > { %v859_v3 = vmax.f32 %v855_v0, 0.0  ;;  %v875_v7 = vrot.slane %v858_v63, 4  ;;  %v881_v8 = vrot.slane %v858_v63, 6 }
 0x433   : > { %v876_v9 = vrot.slane %v859_v3, 4  ;;  %v882_v10 = vrot.slane %v859_v3, 6  ;;  %v4546_v11 = vpack.i.bf16 %v859_v3, %v858_v63  ;;  %v4662_v3 = vld [vmem:[%s5901_s6 + $0x68] sm:$0xff]  }
 0x435   : > { %4547 = vrot.lane.b32.xlu1 %v4546_v11, %s5926_s16  ;;  %v883_v12 = vsel %vm454_vm3, %v881_v8, %v882_v10  ;;  %v884_v13 = vsel %vm454_vm3, %v882_v10, %v881_v8  ;;  %v877_v14 = vsel %vm738_vm8, %v875_v7, %v876_v9  ;;  %v878_v15 = vsel %vm738_vm8, %v876_v9, %v875_v7  ;;  %v4663_v7 = vld [vmem:[%s5901_s6 + $0x70] sm:$0xff]   ;;  %v4664_v8 = vld [vmem:[%s5901_s6 + $0x78] sm:$0xff]   ;;  %v4665_v9 = vld [vmem:[%s5901_s6 + $0x80] sm:$0xff]  }
 0x436   : > { %v885_v16 = vsel %vm458_vm4, %v884_v13, 0.0  ;;  %v879_v24 = vsel %vm741_vm9, %v878_v15, 0.0  ;;  %v3769_v10 = vld [vmem:[%s5900_s5 + $0x2] ss:$0 sm:$0xff] }
 0x437   : > { %v4541_v17 = vpack.i.bf16 %v883_v12, %v885_v16 }
 0x439   : > { %4542 = vrot.lane.b32.xlu0 %v4541_v17, %s5925_s28 }
 0x4a7   : > { %v4548_v18 = vpop.permute.xlu1 %4547 }
 0x4a8   : > { %v4550_v22 = vunpack.i.h.bf16 %v4548_v18  ;;  %v4549_v23 = vunpack.i.l.bf16 %v4548_v18 }
 0x4ab   : > { %v4543_v19 = vpop.permute.xlu0 %4542 }
 0x4ac   : > { %v4545_v20 = vunpack.i.h.bf16 %v4543_v19  ;;  %v4544_v21 = vunpack.i.l.bf16 %v4543_v19 }
 0x4ae   : > { %v903_v25 = vsel %vm487_vm5, %v879_v24, %v4544_v21  ;;  %v904_v26 = vsel %vm487_vm5, %v877_v14, %v4545_v20  ;;  %v4666_v14 = vld [vmem:[%s5901_s6 + $0x88] sm:$0xff]  }
 0x4af   : > { %v905_v27 = vsel %vm490_vm6, %v903_v25, %v4549_v23  ;;  %v906_v29 = vsel %vm490_vm6, %v904_v26, %v4550_v22 }
 0x4b0   : > { %v907_v31 = vpack.c.bf16 %v906_v29, %v905_v27 }
 0x4b2   : > { %4174 = vmatmul.mubr.msk.bf16.vlgmr.msra.gmra.mrb[4].mxu1 %vm536_vm7, %v907_v31 }
 0x4b3   : > { %4205 = vmatprep.mubr.msk.bf16.mxu1 %vm4860_vm2, %v4859_v2  ;;  %4194 = vmatpush3.bf16.msra.mxu1 %v4661_v1 }
 0x4b4   : > { %4195 = vmatprep.subr.bf16.mxu1 %v4859_v2 }
 0x4b7   : > { %4196 = vmatpush3.bf16.msra.mxu1 %v4662_v3 }
 0x4b8   : > { %4197 = vmatprep.subr.bf16.mxu1 %v4859_v2 }
 0x4bb   : > { %4198 = vmatpush3.bf16.msra.mxu1 %v4663_v7  ;;  %v4673_v7 = vld [vmem:[%s5901_s6 + $0x90] sm:$0xff]  }
 0x4bc   : > { %4199 = vmatprep.subr.bf16.mxu1 %v4859_v2 }
 0x4bf   : > { %4200 = vmatpush3.bf16.msra.mxu1 %v4664_v8  ;;  %v4674_v8 = vld [vmem:[%s5901_s6 + $0x98] sm:$0xff]  }
 0x4c0   : > { %4201 = vmatprep.subr.bf16.mxu1 %v4859_v2 }
 0x4c3   : > { %4202 = vmatpush3.bf16.msra.mxu1 %v4665_v9  ;;  %v4675_v9 = vld [vmem:[%s5901_s6 + $0xa0] sm:$0xff]  }
 0x4c4   : > { %4203 = vmatprep.subr.bf16.mxu1 %v4859_v2 }
 0x4c7   : > { %4204 = vmatpush3.bf16.msra.mxu1 %v4666_v14 }
 0x4c8   : > { %4225 = vmatprep.subr.bf16.mxu1 %v4859_v2 }
 0x585   : > { %v987_v35 = vpop.f32.mrb[4].mxu1 }
 0x586   : > { %v988_v37 = vadd.f32 %v3748_v34, %v987_v35  ;;  %v4175_v38 = vpop.f32.mrb[5].mxu1 }
 0x587   : > { %v990_v39 = vpop.f32.mrb[6].mxu1  ;;  %v4668_v38 = vld [vmem:[%s5899_s4 + $0x98] sm:$0xff]  }
 0x588   : > { %v994_v40 = vmax.f32 %v988_v37, 0.0  ;;  %v991_v41 = vadd.f32 %v3748_v34, %v990_v39  ;;  %v4176_v42 = vpop.f32.mrb[7].mxu1  ;;  %v4669_v39 = vld [vmem:[%s5899_s4 + $0xa0] sm:$0xff]  }
 0x589   : > { %v3790_v42 = vld [vmem:[%s5902_s7 + $0x2] ss:$0 sm:$0xff] }
 0x58a   : > { %v996_v43 = vadd.f32 %v994_v40, %v5140_v28  ;;  %v995_v44 = vmax.f32 %v991_v41, 0.0  ;;  %v4670_v40 = vld [vmem:[%s5899_s4 + $0xa8] sm:$0xff]   ;;  %v4671_v41 = vld [vmem:[%s5899_s4 + $0xb0] sm:$0xff]  }
 0x58c   : > { %v5250_v46 = vmax.f32 %v996_v43, 0.0  ;;  %v997_v47 = vadd.f32 %v995_v44, %v5144_v30  ;;  %v4672_v44 = vld [vmem:[%s5899_s4 + $0xb8] sm:$0xff]  }
 0x58e   : > { %v5254_v48 = vmax.f32 %v997_v47, 0.0  ;;  %v1019_v28 = vrot.slane %v5250_v46, 4 }
 0x590   : > { %v1020_v49 = vrot.slane %v5254_v48, 4  ;;  %v4556_v50 = vpack.i.bf16 %v5254_v48, %v5250_v46 }
 0x592   : > { %4557 = vrot.lane.b32.xlu1 %v4556_v50, %s5926_s16  ;;  %v1021_v51 = vsel %vm738_vm8, %v1019_v28, %v1020_v49  ;;  %v1022_v30 = vsel %vm738_vm8, %v1020_v49, %v1019_v28 }
 0x593   : > { %v1023_v52 = vsel %vm741_vm9, %v1022_v30, 0.0 }
 0x594   : > { %v4551_v53 = vpack.i.bf16 %v1021_v51, %v1023_v52 }
 0x596   : > { %4552 = vrot.lane.b32.xlu0 %v4551_v53, %s5925_s28 }
 0x604   : > { %v4558_v54 = vpop.permute.xlu1 %4557 }
 0x605   : > { %v4560_v58 = vunpack.i.h.bf16 %v4558_v54  ;;  %v4559_v59 = vunpack.i.l.bf16 %v4558_v54 }
 0x608   : > { %v4553_v55 = vpop.permute.xlu0 %4552 }
 0x609   : > { %v4555_v56 = vunpack.i.h.bf16 %v4553_v55  ;;  %v4554_v57 = vunpack.i.l.bf16 %v4553_v55 }
 0x60b   : > { %v1042_v60 = vsel %vm487_vm5, %v5250_v46, %v4555_v56  ;;  %v1041_v61 = vsel %vm487_vm5, 0.0, %v4554_v57 }
 0x60c   : > { %v1044_v62 = vsel %vm490_vm6, %v1042_v60, %v4560_v58  ;;  %v1043_v63 = vsel %vm490_vm6, %v1041_v61, %v4559_v59 }
 0x60d   : > { %v1045_v0 = vpack.c.bf16 %v1044_v62, %v1043_v63 }
 0x60f   : > { %4190 = vmatmul.mubr.msk.bf16.vlgmr.msra.gmra.mrb[8].mxu0 %vm536_vm7, %v1045_v0 }
 0x610   : > { %4221 = vmatprep.mubr.msk.bf16.mxu0 %vm4860_vm2, %v4859_v2  ;;  %4210 = vmatpush3.bf16.msra.mxu0 %v4667_v4  ;;  %v4682_v4 = vld [vmem:[%s5899_s4 + $0xd8] sm:$0xff]  }
 0x611   : > { %4211 = vmatprep.subr.bf16.mxu0 %v4859_v2 }
 0x614   : > { %4212 = vmatpush3.bf16.msra.mxu0 %v4668_v38  ;;  %v4683_v38 = vld [vmem:[%s5899_s4 + $0xe0] sm:$0xff]  }
 0x615   : > { %4213 = vmatprep.subr.bf16.mxu0 %v4859_v2 }
 0x618   : > { %4214 = vmatpush3.bf16.msra.mxu0 %v4669_v39  ;;  %v3832_v39 = vld [vmem:[%s5902_s7 + $0x3] ss:$0 sm:$0xff] }
 0x619   : > { %4215 = vmatprep.subr.bf16.mxu0 %v4859_v2 }
 0x61c   : > { %4216 = vmatpush3.bf16.msra.mxu0 %v4670_v40 }
 0x61d   : > { %4217 = vmatprep.subr.bf16.mxu0 %v4859_v2 }
 0x620   : > { %4218 = vmatpush3.bf16.msra.mxu0 %v4671_v41  ;;  %v4684_v41 = vld [vmem:[%s5899_s4 + $0xe8] sm:$0xff]  }
 0x621   : > { %4219 = vmatprep.subr.bf16.mxu0 %v4859_v2 }
 0x624   : > { %4220 = vmatpush3.bf16.msra.mxu0 %v4672_v44 }
 0x625   : > { %4241 = vmatprep.subr.bf16.mxu0 %v4859_v2 }
 0x6e2   : > { %v1125_v11 = vpop.f32.mrb[8].mxu0 }
 0x6e3   : > { %v1126_v12 = vadd.f32 %v3769_v10, %v1125_v11  ;;  %v4191_v13 = vpop.f32.mrb[9].mxu0  ;;  %v4677_v11 = vld [vmem:[%s5901_s6 + $0xb0] sm:$0xff]  }
 0x6e4   : > { %v1128_v15 = vpop.f32.mrb[10].mxu0  ;;  %v3811_v13 = vld [vmem:[%s5900_s5 + $0x3] ss:$0 sm:$0xff] }
 0x6e5   : > { %v1132_v16 = vmax.f32 %v1126_v12, 0.0  ;;  %v1129_v17 = vadd.f32 %v3769_v10, %v1128_v15  ;;  %v4192_v18 = vpop.f32.mrb[11].mxu0  ;;  %v4676_v10 = vld [vmem:[%s5901_s6 + $0xa8] sm:$0xff]   ;;  %v4678_v12 = vld [vmem:[%s5901_s6 + $0xb8] sm:$0xff]  }
 0x6e7   : > { %v1133_v19 = vmax.f32 %v1129_v17, 0.0  ;;  %v1151_v20 = vrot.slane %v1132_v16, 4 }
 0x6e9   : > { %v4566_v21 = vpack.i.bf16 %v1133_v19, %v1132_v16  ;;  %v1152_v22 = vrot.slane %v1133_v19, 4 }
 0x6eb   : > { %4567 = vrot.lane.b32.xlu1 %v4566_v21, %s5926_s16  ;;  %v1153_v23 = vsel %vm738_vm8, %v1151_v20, %v1152_v22  ;;  %v1154_v24 = vsel %vm738_vm8, %v1152_v22, %v1151_v20 }
 0x6ec   : > { %v1155_v25 = vsel %vm741_vm9, %v1154_v24, 0.0 }
 0x6ed   : > { %v4561_v26 = vpack.i.bf16 %v1153_v23, %v1155_v25 }
 0x6ef   : > { %4562 = vrot.lane.b32.xlu0 %v4561_v26, %s5925_s28 }
 0x75d   : > { %v4568_v27 = vpop.permute.xlu1 %4567 }
 0x75e   : > { %v4570_v5 = vunpack.i.h.bf16 %v4568_v27  ;;  %v4569_v33 = vunpack.i.l.bf16 %v4568_v27 }
 0x761   : > { %v4563_v29 = vpop.permute.xlu0 %4562 }
 0x762   : > { %v4565_v31 = vunpack.i.h.bf16 %v4563_v29  ;;  %v4564_v32 = vunpack.i.l.bf16 %v4563_v29 }
 0x764   : > { %v1174_v6 = vsel %vm487_vm5, %v1132_v16, %v4565_v31  ;;  %v1173_v34 = vsel %vm487_vm5, 0.0, %v4564_v32 }
 0x765   : > { %v1176_v35 = vsel %vm490_vm6, %v1174_v6, %v4570_v5  ;;  %v1175_v36 = vsel %vm490_vm6, %v1173_v34, %v4569_v33 }
 0x766   : > { %v1177_v37 = vpack.c.bf16 %v1176_v35, %v1175_v36  ;;  %v4679_v35 = vld [vmem:[%s5899_s4 + $0xc0] sm:$0xff]   ;;  %v4680_v36 = vld [vmem:[%s5899_s4 + $0xc8] sm:$0xff]  }
 0x768   : > { %4206 = vmatmul.mubr.msk.bf16.vlgmr.msra.gmra.mrb[8].mxu1 %vm536_vm7, %v1177_v37  ;;  %v4681_v37 = vld [vmem:[%s5899_s4 + $0xd0] sm:$0xff]  }
 0x769   : > { %4237 = vmatprep.mubr.msk.bf16.mxu1 %vm4860_vm2, %v4859_v2  ;;  %4226 = vmatpush3.bf16.msra.mxu1 %v4673_v7  ;;  %v4691_v7 = vld [vmem:[%s5901_s6 + $0xd0] sm:$0xff]  }
 0x76a   : > { %4227 = vmatprep.subr.bf16.mxu1 %v4859_v2 }
 0x76d   : > { %4228 = vmatpush3.bf16.msra.mxu1 %v4674_v8  ;;  %v4692_v8 = vld [vmem:[%s5901_s6 + $0xd8] sm:$0xff]  }
 0x76e   : > { %4229 = vmatprep.subr.bf16.mxu1 %v4859_v2 }
 0x771   : > { %4230 = vmatpush3.bf16.msra.mxu1 %v4675_v9  ;;  %v4693_v9 = vld [vmem:[%s5901_s6 + $0xe0] sm:$0xff]  }
 0x772   : > { %4231 = vmatprep.subr.bf16.mxu1 %v4859_v2 }
 0x775   : > { %4232 = vmatpush3.bf16.msra.mxu1 %v4676_v10  ;;  %v4694_v10 = vld [vmem:[%s5901_s6 + $0xe8] sm:$0xff]  }
 0x776   : > { %4233 = vmatprep.subr.bf16.mxu1 %v4859_v2 }
 0x779   : > { %4234 = vmatpush3.bf16.msra.mxu1 %v4677_v11  ;;  %v3853_v11 = vld [vmem:[%s5900_s5 + $0x4] ss:$0 sm:$0xff] }
 0x77a   : > { %4235 = vmatprep.subr.bf16.mxu1 %v4859_v2 }
 0x77d   : > { %4236 = vmatpush3.bf16.msra.mxu1 %v4678_v12 }
 0x77e   : > { %4257 = vmatprep.subr.bf16.mxu1 %v4859_v2 }
 0x83b   : > { %v1257_v43 = vpop.f32.mrb[8].mxu1 }
 0x83c   : > { %v1258_v45 = vadd.f32 %v3790_v42, %v1257_v43  ;;  %v4207_v47 = vpop.f32.mrb[9].mxu1 }
 0x83d   : > { %v1260_v49 = vpop.f32.mrb[10].mxu1 }
 0x83e   : > { %v1264_v50 = vmax.f32 %v1258_v45, 0.0  ;;  %v1261_v28 = vadd.f32 %v3790_v42, %v1260_v49  ;;  %v4208_v51 = vpop.f32.mrb[11].mxu1 }
 0x840   : > { %v1266_v30 = vadd.f32 %v1264_v50, %v5250_v46  ;;  %v1265_v52 = vmax.f32 %v1261_v28, 0.0 }
 0x842   : > { %v5346_v53 = vmax.f32 %v1266_v30, 0.0  ;;  %v5349_v54 = vadd.f32 %v1265_v52, %v5254_v48 }
 0x844   : > { %v1269_v55 = vmax.f32 %v5349_v54, 0.0  ;;  %v4571_v56 = vpack.i.bf16 %v5346_v53, %v4859_v2 }
 0x846   : > { %4572 = vrot.lane.b32.xlu0 %v4571_v56, %s5925_s28  ;;  %v4576_v57 = vpack.i.bf16 %v1269_v55, %v5346_v53 }
 0x848   : > { %4577 = vrot.lane.b32.xlu1 %v4576_v57, %s5926_s16 }
 0x8b8   : > { %v4573_v46 = vpop.permute.xlu0 %4572 }
 0x8b9   : > { %v4575_v58 = vunpack.i.h.bf16 %v4573_v46  ;;  %v4574_v59 = vunpack.i.l.bf16 %v4573_v46 }
 0x8ba   : > { %v4578_v60 = vpop.permute.xlu1 %4577 }
 0x8bb   : > { %v1304_v48 = vsel %vm487_vm5, 0.0, %v4575_v58  ;;  %v1303_v61 = vsel %vm487_vm5, 0.0, %v4574_v59  ;;  %v4580_v62 = vunpack.i.h.bf16 %v4578_v60  ;;  %v4579_v63 = vunpack.i.l.bf16 %v4578_v60  ;;  %v4685_v58 = vld [vmem:[%s5897_s2] sm:$0xff]   ;;  %v4686_v60 = vld [vmem:[%s5897_s2 + $0x8] sm:$0xff]  }
 0x8bd   : > { %v1306_v0 = vsel %vm490_vm6, %v1304_v48, %v4580_v62  ;;  %v1305_v1 = vsel %vm490_vm6, %v1303_v61, %v4579_v63  ;;  %v5457_v48 = vld [vmem:[%s5005_s29] sm:$0xff]  ;;  %v5460_v61 = vld [vmem:[%s5005_s29 + $0x8] sm:$0xff]  ;;  %v4687_v63 = vld [vmem:[%s5897_s2 + $0x10] sm:$0xff]   ;;  %s5927_s29 = sshll.u32 %s4994_s19, 4  ;;  %s4869_s19 = smov [#allocation2]  }
 0x8be   : > { %v1307_v3 = vpack.c.bf16 %v1306_v0, %v1305_v1  ;;  %v5464_v62 = vpack.c.bf16 %v5460_v61, %v5457_v48  ;;  %v4688_v0 = vld [vmem:[%s5897_s2 + $0x18] sm:$0xff]   ;;  %v4689_v1 = vld [vmem:[%s5901_s6 + $0xc0] sm:$0xff]  }
 0x8c0   : > { %4222 = vmatmul.mubr.msk.bf16.vlgmr.msra.gmra.mrb[12].mxu0 %vm536_vm7, %v1307_v3  ;;  %v4690_v3 = vld [vmem:[%s5901_s6 + $0xc8] sm:$0xff]  }
 0x8c1   : > { %4253 = vmatprep.mubr.msk.bf16.mxu0 %vm4860_vm2, %v4859_v2  ;;  %4242 = vmatpush3.bf16.msra.mxu0 %v4679_v35 }
 0x8c2   : > { %4243 = vmatprep.subr.bf16.mxu0 %v4859_v2 }
 0x8c5   : > { %4244 = vmatpush3.bf16.msra.mxu0 %v4680_v36 }
 0x8c6   : > { %4245 = vmatprep.subr.bf16.mxu0 %v4859_v2 }
 0x8c9   : > { %4246 = vmatpush3.bf16.msra.mxu0 %v4681_v37 }
 0x8ca   : > { %4247 = vmatprep.subr.bf16.mxu0 %v4859_v2 }
 0x8cd   : > { %4248 = vmatpush3.bf16.msra.mxu0 %v4682_v4 }
 0x8ce   : > { %4249 = vmatprep.subr.bf16.mxu0 %v4859_v2 }
 0x8d1   : > { %4250 = vmatpush3.bf16.msra.mxu0 %v4683_v38 }
 0x8d2   : > { %4251 = vmatprep.subr.bf16.mxu0 %v4859_v2 }
 0x8d5   : > { %4252 = vmatpush3.bf16.msra.mxu0 %v4684_v41 }
 0x8d6   : > { %4273 = vmatprep.subr.bf16.mxu0 %v4859_v2 }
 0x993   : > { %v1387_v14 = vpop.f32.mrb[12].mxu0 }
 0x994   : > { %v1388_v15 = vadd.f32 %v3811_v13, %v1387_v14  ;;  %v4223_v16 = vpop.f32.mrb[13].mxu0 }
 0x995   : > { %v1390_v17 = vpop.f32.mrb[14].mxu0 }
 0x996   : > { %v1394_v18 = vmax.f32 %v1388_v15, 0.0  ;;  %v1391_v19 = vadd.f32 %v3811_v13, %v1390_v17  ;;  %v4224_v20 = vpop.f32.mrb[15].mxu0 }
 0x998   : > { %v4581_v21 = vpack.i.bf16 %v1394_v18, %v4859_v2  ;;  %v1395_v22 = vmax.f32 %v1391_v19, 0.0 }
 0x99a   : > { %v4586_v23 = vpack.i.bf16 %v1395_v22, %v1394_v18  ;;  %4582 = vrot.lane.b32.xlu0 %v4581_v21, %s5925_s28  ;;  %s4865_s28 = smov 104  }
 0x99c   : > { %4587 = vrot.lane.b32.xlu1 %v4586_v23, %s5926_s16 }
 0xa0c   : > { %v4583_v24 = vpop.permute.xlu0 %4582 }
 0xa0d   : > { %v4585_v25 = vunpack.i.h.bf16 %v4583_v24  ;;  %v4584_v26 = vunpack.i.l.bf16 %v4583_v24 }
 0xa0e   : > { %v4588_v27 = vpop.permute.xlu1 %4587 }
 0xa0f   : > { %v1430_v29 = vsel %vm487_vm5, 0.0, %v4585_v25  ;;  %v1429_v31 = vsel %vm487_vm5, 0.0, %v4584_v26  ;;  %v4590_v32 = vunpack.i.h.bf16 %v4588_v27  ;;  %v4589_v5 = vunpack.i.l.bf16 %v4588_v27 }
 0xa11   : > { %v1432_v33 = vsel %vm490_vm6, %v1430_v29, %v4590_v32  ;;  %v1431_v6 = vsel %vm490_vm6, %v1429_v31, %v4589_v5  ;;  %v4695_v5 = vld [vmem:[%s5897_s2 + $0x20] sm:$0xff]  }
 0xa12   : > { %v1433_v34 = vpack.c.bf16 %v1432_v33, %v1431_v6  ;;  %v4696_v33 = vld [vmem:[%s5897_s2 + $0x28] sm:$0xff]  }
 0xa14   : > { %4238 = vmatmul.mubr.msk.bf16.vlgmr.msra.gmra.mrb[12].mxu1 %vm536_vm7, %v1433_v34 }
 0xa15   : > { %4269 = vmatprep.mubr.msk.bf16.mxu1 %vm4860_vm2, %v4859_v2  ;;  %4258 = vmatpush3.bf16.msra.mxu1 %v4689_v1 }
 0xa16   : > { %4259 = vmatprep.subr.bf16.mxu1 %v4859_v2 }
 0xa19   : > { %4260 = vmatpush3.bf16.msra.mxu1 %v4690_v3 }
 0xa1a   : > { %4261 = vmatprep.subr.bf16.mxu1 %v4859_v2 }
 0xa1d   : > { %4262 = vmatpush3.bf16.msra.mxu1 %v4691_v7 }
 0xa1e   : > { %4263 = vmatprep.subr.bf16.mxu1 %v4859_v2 }
 0xa21   : > { %4264 = vmatpush3.bf16.msra.mxu1 %v4692_v8 }
 0xa22   : > { %4265 = vmatprep.subr.bf16.mxu1 %v4859_v2 }
 0xa25   : > { %4266 = vmatpush3.bf16.msra.mxu1 %v4693_v9 }
 0xa26   : > { %4267 = vmatprep.subr.bf16.mxu1 %v4859_v2 }
 0xa29   : > { %4268 = vmatpush3.bf16.msra.mxu1 %v4694_v10 }
 0xa2a   : > { %4297 = vmatprep.subr.bf16.mxu1 %v4859_v2 }
 0xae7   : > { %v1513_v40 = vpop.f32.mrb[12].mxu1 }
 0xae8   : > { %v1514_v42 = vadd.f32 %v3832_v39, %v1513_v40  ;;  %v4239_v43 = vpop.f32.mrb[13].mxu1 }
 0xae9   : > { %v1516_v44 = vpop.f32.mrb[14].mxu1 }
 0xaea   : > { %v1520_v45 = vmax.f32 %v1514_v42, 0.0  ;;  %v1517_v47 = vadd.f32 %v3832_v39, %v1516_v44  ;;  %v4240_v49 = vpop.f32.mrb[15].mxu1 }
 0xaec   : > { %v5431_v50 = vadd.f32 %v1520_v45, %v5346_v53  ;;  %v1521_v28 = vmax.f32 %v1517_v47, 0.0 }
 0xaee   : > { %v5435_v51 = vadd.f32 %v1521_v28, %v1269_v55  ;;  %v1524_v30 = vmax.f32 %v5431_v50, 0.0 }
 0xaf0   : > { %v1525_v52 = vmax.f32 %v5435_v51, 0.0 }
 0xaf2   : > { %v4591_v56 = vpack.i.bf16 %v1525_v52, %v1524_v30 }
 0xaf4   : > { %4592 = vrot.lane.b32.xlu0 %v4591_v56, %s5926_s16 }
 0xb66   : > { %v4593_v53 = vpop.permute.xlu0 %4592 }
 0xb67   : > { %v4595_v57 = vunpack.i.h.bf16 %v4593_v53  ;;  %v4594_v46 = vunpack.i.l.bf16 %v4593_v53 }
 0xb69   : > { %v1550_v54 = vsel %vm490_vm6, 0.0, %v4595_v57  ;;  %v1549_v55 = vsel %vm490_vm6, 0.0, %v4594_v46 }
 0xb6a   : > { %v1551_v59 = vpack.c.bf16 %v1550_v54, %v1549_v55 }
 0xb6c   : > { %4254 = vmatmul.mubr.msk.bf16.vlgmr.msra.gmra.mrb[16].mxu0 %vm536_vm7, %v1551_v59 }
 0xb6d   : > { %4274 = vmatpush3.bf16.msra.mxu0 %v4685_v58  ;;  %4277 = vmatprep.mubr.msk.bf16.mxu0 %vm4860_vm2, %v4859_v2 }
 0xb6e   : > { %4275 = vmatprep.subr.bf16.mxu0 %v4859_v2 }
 0xb71   : > { %4276 = vmatpush3.bf16.msra.mxu0 %v4686_v60 }
 0xb72   : > { %4281 = vmatprep.subr.bf16.mxu0 %v4859_v2 }
 0xb74   : > { %4278 = vmatmul.mubr.msk.bf16.vlgmr.msra.gmra.mrb[20].mxu0 %vm487_vm5, %v5464_v62 }
 0xb75   : > { %4282 = vmatpush3.bf16.msra.mxu0 %v4687_v63  ;;  %4285 = vmatprep.mubr.msk.bf16.mxu0 %vm4860_vm2, %v4859_v2 }
 0xb76   : > { %4283 = vmatprep.subr.bf16.mxu0 %v4859_v2 }
 0xb79   : > { %4284 = vmatpush3.bf16.msra.mxu0 %v4688_v0 }
 0xb7a   : > { %4289 = vmatprep.subr.bf16.mxu0 %v4859_v2 }
 0xb7c   : > { %4286 = vmatmul.mubr.msk.bf16.vlgmr.msra.gmra.mrb[24].mxu0 %vm487_vm5, %v5464_v62 }
 0xb7d   : > { %4293 = vmatprep.mubr.msk.bf16.mxu0 %vm4860_vm2, %v4859_v2  ;;  %4290 = vmatpush3.bf16.msra.mxu0 %v4695_v5 }
 0xb7e   : > { %4291 = vmatprep.subr.bf16.mxu0 %v4859_v2 }
 0xb81   : > { %4292 = vmatpush3.bf16.msra.mxu0 %v4696_v33 }
 0xb82   : > { %4303 = vmatprep.subr.bf16.mxu0 %v4859_v2 }
 0xb84   : > { %4294 = vmatmul.mubr.msk.bf16.vlgmr.msra.gmra.mrb[28].mxu0 %vm487_vm5, %v5464_v62 }
 0xb85   : > { %4305 = vmatprep.mubr.msk.bf16.mxu0 %vm4860_vm2, %v4859_v2 }
 0xc3f   : > { %v1631_v12 = vpop.f32.mrb[16].mxu0 }
 0xc40   : > { %v1632_v13 = vadd.f32 %v3853_v11, %v1631_v12  ;;  %v4255_v14 = vpop.f32.mrb[17].mxu0 }
 0xc41   : > { %v1634_v15 = vpop.f32.mrb[18].mxu0 }
 0xc42   : > { %v1635_v16 = vadd.f32 %v3853_v11, %v1634_v15  ;;  %v4256_v17 = vpop.f32.mrb[19].mxu0  ;;  %v1638_v18 = vmax.f32 %v1632_v13, 0.0 }
 0xc44   : > { %v1639_v19 = vmax.f32 %v1635_v16, 0.0 }
 0xc46   : > { %v4596_v20 = vpack.i.bf16 %v1639_v19, %v1638_v18 }
 0xc47   : > { %v1812_v21 = vpop.f32.mrb[20].mxu0 }
 0xc48   : > { %4597 = vrot.lane.b32.xlu1 %v4596_v20, %s5926_s16  ;;  %v4279_v22 = vpop.f32.mrb[21].mxu0 }
 0xc49   : > { %v1815_v23 = vpop.f32.mrb[22].mxu0 }
 0xc4a   : > { %v1935_v24 = vpack.c.bf16 %v1815_v23, %v1812_v21  ;;  %v4280_v25 = vpop.f32.mrb[23].mxu0 }
 0xc4c   : > { %2057 = vrot.lane.b32.xlu1 %v1935_v24, %s4863_s26 }
 0xc4f   : > { %v1870_v26 = vpop.f32.mrb[24].mxu0 }
 0xc50   : > { %v4287_v27 = vpop.f32.mrb[25].mxu0  ;;  %2182 = vrot.lane.b32.xlu1 %v1935_v24, %s4864_s17 }
 0xc51   : > { %v1873_v29 = vpop.f32.mrb[26].mxu0 }
 0xc52   : > { %v1936_v31 = vpack.c.bf16 %v1873_v29, %v1870_v26  ;;  %v4288_v32 = vpop.f32.mrb[27].mxu0 }
 0xc54   : > { %2060 = vrot.lane.b32.xlu0 %v1936_v31, %s4863_s26  ;;  %2305 = vrot.lane.b32.xlu1 %v1935_v24, %s4865_s28  ;;  %v1942_v38 = vsel %vm1937_vm10, %v1936_v31, 0 }
 0xc57   : > { %v1928_v29 = vpop.f32.mrb[28].mxu0 }
 0xc58   : > { %2184 = vrot.lane.b32.xlu0 %v1936_v31, %s4864_s17 }
 0xc5c   : > { %2307 = vrot.lane.b32.xlu0 %v1936_v31, %s4865_s28  ;;  %v4295_v31 = vpop.f32.mrb[29].mxu0 }
 0xc5d   : > { %v1931_v32 = vpop.f32.mrb[30].mxu0 }
 0xc5e   : > { %v4296_v5 = vpop.f32.mrb[31].mxu0  ;;  %v2011_v33 = vpack.c.bf16 %v1931_v32, %v1928_v29 }
 0xc60   : > { %4304 = vmatpush3.bf16.msra.mxu0 %v2011_v33 }
 0xc61   : > { %4315 = vmatprep.subr.bf16.mxu0 %v4859_v2 }
 0xcba   : > { %v4598_v6 = vpop.permute.xlu1 %4597 }
 0xcbb   : > { %v4600_v34 = vunpack.i.h.bf16 %v4598_v6  ;;  %v4599_v35 = vunpack.i.l.bf16 %v4598_v6 }
 0xcbd   : > { %v1664_v36 = vsel %vm490_vm6, 0.0, %v4600_v34  ;;  %v1663_v37 = vsel %vm490_vm6, 0.0, %v4599_v35 }
 0xcbe   : > { %v1665_v4 = vpack.c.bf16 %v1664_v36, %v1663_v37  ;;  %v2058_v42 = vpop.permute.xlu1 %2057 }
 0xcc0   : > { %4270 = vmatmul.mubr.msk.bf16.vlgmr.msra.gmra.mrb[16].mxu1 %vm536_vm7, %v1665_v4 }
 0xcc1   : > { %4298 = vmatpush3.bf16.xpose.msra.mxu1 %v1942_v38  ;;  %4299 = vmatprep.mubr.msk.bf16.mxu1 %vm4860_vm2, %v4859_v2 }
 0xcc2   : > { %4309 = vmatprep.subr.bf16.mxu1 %v4859_v2  ;;  %v2183_v45 = vpop.permute.xlu1 %2182 }
 0xcc6   : > { %v2061_v39 = vpop.permute.xlu0 %2060  ;;  %v2306_v49 = vpop.permute.xlu1 %2305 }
 0xcc7   : > { %v2066_v40 = vsel %vm1937_vm10, %v2061_v39, 0 }
 0xcc8   : > { %4300 = vmatmul.mubr.msk.bf16.vlgmr.msra.gmra.mrb[20].mxu1 %vm1937_vm10, %v1935_v24 }
 0xcc9   : > { %4310 = vmatpush3.bf16.xpose.msra.mxu1 %v2066_v40  ;;  %4311 = vmatprep.mubr.msk.bf16.mxu1 %vm4860_vm2, %v4859_v2 }
 0xcca   : > { %4321 = vmatprep.subr.bf16.mxu1 %v4859_v2  ;;  %v2185_v41 = vpop.permute.xlu0 %2184 }
 0xccb   : > { %v2190_v43 = vsel %vm1937_vm10, %v2185_v41, 0 }
 0xcce   : > { %v2308_v44 = vpop.permute.xlu0 %2307 }
 0xccf   : > { %v2313_v47 = vsel %vm1937_vm10, %v2308_v44, 0 }
 0xcd0   : > { %4312 = vmatmul.mubr.msk.bf16.vlgmr.msra.gmra.mrb[24].mxu1 %vm1937_vm10, %v2058_v42 }
 0xcd1   : > { %4322 = vmatpush3.bf16.xpose.msra.mxu1 %v2190_v43  ;;  %4323 = vmatprep.mubr.msk.bf16.mxu1 %vm4860_vm2, %v4859_v2 }
 0xcd2   : > { %4333 = vmatprep.subr.bf16.mxu1 %v4859_v2 }
 0xcd8   : > { %4324 = vmatmul.mubr.msk.bf16.vlgmr.msra.gmra.mrb[28].mxu1 %vm1937_vm10, %v2183_v45 }
 0xcd9   : > { %4334 = vmatpush3.bf16.xpose.msra.mxu1 %v2313_v47  ;;  %4335 = vmatprep.mubr.msk.bf16.mxu1 %vm4860_vm2, %v4859_v2 }
 0xcda   : > { %4345 = vmatprep.subr.bf16.mxu1 %v4859_v2 }
 0xce0   : > { %4336 = vmatmul.mubr.msk.bf16.vlgmr.msra.gmra.mrb[32].mxu1 %vm1937_vm10, %v2306_v49 }
 0xce1   : > { %4349 = vmatprep.mubr.msk.bf16.mxu1 %vm4860_vm2, %v4859_v2 }
 0xd93   : > { %v5554_v28 = vpop.f32.mrb[16].mxu1 }
 0xd94   : > { %v4271_v56 = vpop.f32.mrb[17].mxu1 }
 0xd95   : > { %v5556_v53 = vpop.f32.mrb[18].mxu1 }
 0xd96   : > { %v4272_v57 = vpop.f32.mrb[19].mxu1 }
 0xd9b   : > { %v1978_v46 = vpop.f32.mrb[20].mxu1 }
 0xd9c   : > { %v1985_v54 = vmul.f32 0.35355338, %v1978_v46  ;;  %v4301_v55 = vpop.f32.mrb[21].mxu1 }
 0xd9d   : > { %v1981_v58 = vpop.f32.mrb[22].mxu1 }
 0xd9e   : > { %v1986_v59 = vmul.f32 0.35355338, %v1981_v58  ;;  %v4302_v60 = vpop.f32.mrb[23].mxu1  ;;  %v1988_v62 = vsel %vm1987_vm11, %v1985_v54, -inf }
 0xd9f   : > { %1989 = vmax.xlane.f32.xlu0 %v1988_v62 }
 0xda0   : > { %v1991_v63 = vsel %vm1987_vm11, %v1986_v59, -inf }
 0xda1   : > { %1992 = vmax.xlane.f32.xlu1 %v1991_v63 }
 0xda3   : > { %v2102_v0 = vpop.f32.mrb[24].mxu1 }
 0xda4   : > { %v5560_v1 = vmul.f32 0.35355338, %v2102_v0  ;;  %v4313_v3 = vpop.f32.mrb[25].mxu1 }
 0xda5   : > { %v2105_v7 = vpop.f32.mrb[26].mxu1 }
 0xda6   : > { %v2111_v8 = vsel %vm1987_vm11, %v5560_v1, -inf  ;;  %v2110_v9 = vmul.f32 0.35355338, %v2105_v7  ;;  %v4314_v10 = vpop.f32.mrb[27].mxu1 }
 0xda7   : > { %2112 = vmax.xlane.f32.xlu0 %v2111_v8 }
 0xda8   : > { %v2114_v11 = vsel %vm1987_vm11, %v2110_v9, -inf }
 0xdab   : > { %2115 = vmax.xlane.f32.xlu0 %v2114_v11  ;;  %v2226_v12 = vpop.f32.mrb[28].mxu1 }
 0xdac   : > { %v5565_v13 = vmul.f32 0.35355338, %v2226_v12  ;;  %v4325_v14 = vpop.f32.mrb[29].mxu1 }
 0xdad   : > { %v2229_v15 = vpop.f32.mrb[30].mxu1 }
 0xdae   : > { %v2234_v16 = vmul.f32 0.35355338, %v2229_v15  ;;  %v2235_v17 = vsel %vm1987_vm11, %v5565_v13, -inf  ;;  %v4326_v18 = vpop.f32.mrb[31].mxu1 }
 0xdaf   : > { %2236 = vmax.xlane.f32.xlu1 %v2235_v17 }
 0xdb0   : > { %v2238_v19 = vsel %vm1987_vm11, %v2234_v16, -inf }
 0xdb1   : > { %2239 = vmax.xlane.f32.xlu0 %v2238_v19 }
 0xdb3   : > { %v2349_v20 = vpop.f32.mrb[32].mxu1 }
 0xdb4   : > { %v2356_v21 = vmul.f32 0.35355338, %v2349_v20  ;;  %v4337_v22 = vpop.f32.mrb[33].mxu1 }
 0xdb5   : > { %v2352_v23 = vpop.f32.mrb[34].mxu1 }
 0xdb6   : > { %v2357_v24 = vmul.f32 0.35355338, %v2352_v23  ;;  %v2358_v25 = vsel %vm1987_vm11, %v2356_v21, -inf  ;;  %v4338_v26 = vpop.f32.mrb[35].mxu1 }
 0xdb7   : > { %2359 = vmax.xlane.f32.xlu1 %v2358_v25 }
 0xdb8   : > { %v2361_v27 = vsel %vm1987_vm11, %v2357_v24, -inf }
 0xdb9   : > { %2362 = vmax.xlane.f32.xlu0 %v2361_v27 }
 0xe2c   : > { %v1990_v6 = vpop.xlane.xlu0 %1989 }
 0xe2d   : > { %v1994_v34 = vsub.f32 %v1985_v54, %v1990_v6 }
 0xe2e   : > { %v1993_v35 = vpop.xlane.xlu1 %1992 }
 0xe2f   : > { %v1996_v36 = vmul.f32 1.442695, %v1994_v34  ;;  %v1995_v37 = vsub.f32 %v1986_v59, %v1993_v35 }
 0xe31   : > { %4717 = vpow2.f32 %v1996_v36  ;;  %v1998_v4 = vmul.f32 1.442695, %v1995_v37 }
 0xe33   : > { %4719 = vpow2.f32 %v1998_v4 }
 0xe34   : > { %v2113_v38 = vpop.xlane.xlu0 %2112 }
 0xe35   : > { %v2117_v0 = vsub.f32 %v5560_v1, %v2113_v38 }
 0xe37   : > { %v2119_v7 = vmul.f32 1.442695, %v2117_v0 }
 0xe38   : > { %v2116_v39 = vpop.xlane.xlu0 %2115 }
 0xe39   : > { %v2118_v40 = vsub.f32 %v2110_v9, %v2116_v39 }
 0xe3b   : > { %v4718_v41 = vpop.eup %4717  ;;  %v2121_v42 = vmul.f32 1.442695, %v2118_v40 }
 0xe3c   : > { %v2000_v43 = vsel %vm1987_vm11, %v4718_v41, 0.0  ;;  %v2237_v3 = vpop.xlane.xlu1 %2236 }
 0xe3d   : > { %v4720_v44 = vpop.eup %4719  ;;  %4721 = vpow2.f32 %v2121_v42  ;;  %2001 = vadd.xlane.f32.xlu1 %v2000_v43  ;;  %v2241_v8 = vsub.f32 %v5565_v13, %v2237_v3 }
 0xe3e   : > { %v2240_v45 = vpop.xlane.xlu0 %2239  ;;  %v2003_v47 = vsel %vm1987_vm11, %v4720_v44, 0.0 }
 0xe3f   : > { %v2242_v49 = vsub.f32 %v2234_v16, %v2240_v45  ;;  %2004 = vadd.xlane.f32.xlu0 %v2003_v47  ;;  %v2243_v10 = vmul.f32 1.442695, %v2241_v8 }
 0xe41   : > { %v2245_v56 = vmul.f32 1.442695, %v2242_v49 }
 0xe43   : > { %4723 = vpow2.f32 %v2245_v56 }
 0xe44   : > { %v2360_v9 = vpop.xlane.xlu1 %2359 }
 0xe45   : > { %v2364_v11 = vsub.f32 %v2356_v21, %v2360_v9 }
 0xe46   : > { %v2363_v57 = vpop.xlane.xlu0 %2362 }
 0xe47   : > { %v4722_v46 = vpop.eup %4721  ;;  %v2365_v54 = vsub.f32 %v2357_v24, %v2363_v57  ;;  %v2366_v12 = vmul.f32 1.442695, %v2364_v11 }
 0xe48   : > { %v2126_v55 = vsel %vm1987_vm11, %v4722_v46, 0.0 }
 0xe49   : > { %v2368_v58 = vmul.f32 1.442695, %v2365_v54  ;;  %2127 = vadd.xlane.f32.xlu0 %v2126_v55 }
 0xe4b   : > { %4725 = vpow2.f32 %v2368_v58 }
 0xe4c   : > { %4727 = vpow2.f32 %v2119_v7  ;;  %v4698_v7 = vld [vmem:[%s5897_s2 + $0x38] sm:$0xff]  }
 0xe4d   : > { %v5576_v59 = vpop.eup %4723  ;;  %4729 = vpow2.f32 %v2243_v10 }
 0xe4e   : > { %2135 = vrot.lane.b32.xlu1 %v2011_v33, %s4863_s26  ;;  %v2250_v60 = vsel %vm1987_vm11, %v5576_v59, 0.0  ;;  %4731 = vpow2.f32 %v2366_v12 }
 0xe4f   : > { %2251 = vadd.xlane.f32.xlu0 %v2250_v60  ;;  %v4697_v60 = vld [vmem:[%s5897_s2 + $0x30] sm:$0xff]  }
 0xe50   : > { %4346 = vmatpush3.bf16.msra.mxu1 %v4697_v60 }
 0xe51   : > { %4347 = vmatprep.subr.bf16.mxu1 %v4859_v2 }
 0xe54   : > { %4348 = vmatpush3.bf16.msra.mxu1 %v4698_v7 }
 0xe55   : > { %v5581_v62 = vpop.eup %4725  ;;  %4361 = vmatprep.subr.bf16.mxu1 %v4859_v2 }
 0xe56   : > { %v2373_v63 = vsel %vm1987_vm11, %v5581_v62, 0.0  ;;  %v4728_v14 = vpop.eup %4727 }
 0xe57   : > { %2374 = vadd.xlane.f32.xlu0 %v2373_v63  ;;  %v2123_v15 = vsel %vm1987_vm11, %v4728_v14, 0.0  ;;  %v4730_v16 = vpop.eup %4729 }
 0xe58   : > { %v2247_v1 = vsel %vm1987_vm11, %v4730_v16, 0.0  ;;  %v4732_v17 = vpop.eup %4731 }
 0xe59   : > { %v2370_v13 = vsel %vm1987_vm11, %v4732_v17, 0.0 }
 0xe6d   : > { %2258 = vrot.lane.b32.xlu0 %v2011_v33, %s4864_s17 }
 0xe72   : > { %2124 = vadd.xlane.f32.xlu1 %v2123_v15 }
 0xe76   : > { %2248 = vadd.xlane.f32.xlu1 %v2247_v1 }
 0xe7a   : > { %2371 = vadd.xlane.f32.xlu1 %v2370_v13 }
 0xe8b   : > { %2381 = vrot.lane.b32.xlu1 %v2011_v33, %s4865_s28 }
 0xeca   : > { %v2002_v18 = vpop.xlane.xlu1 %2001 }
 0xecb   : > { %4733 = vrcp.f32 %v2002_v18 }
 0xecc   : > { %v2005_v19 = vpop.xlane.xlu0 %2004 }
 0xecd   : > { %4735 = vrcp.f32 %v2005_v19 }
 0xece   : > { %v2136_v25 = vpop.permute.xlu1 %2135 }
 0xed5   : > { %v4734_v20 = vpop.eup %4733 }
 0xed6   : > { %v2008_v22 = vmul.f32 %v4734_v20, %v4718_v41  ;;  %v2128_v26 = vpop.xlane.xlu0 %2127 }
 0xed7   : > { %v4736_v21 = vpop.eup %4735  ;;  %4737 = vrcp.f32 %v2128_v26 }
 0xed8   : > { %v2009_v23 = vmul.f32 %v4736_v21, %v4720_v44 }
 0xeda   : > { %v2010_v24 = vpack.c.bf16 %v2009_v23, %v2008_v22 }
 0xedc   : > { %4306 = vmatmul.mubr.msk.bf16.vlgmr.msra.gmra.mrb[32].mxu0 %vm1987_vm11, %v2010_v24  ;;  %v2252_v29 = vpop.xlane.xlu0 %2251 }
 0xedd   : > { %4316 = vmatpush3.bf16.msra.mxu0 %v2136_v25  ;;  %4317 = vmatprep.mubr.msk.bf16.mxu0 %vm4860_vm2, %v4859_v2 }
 0xede   : > { %4327 = vmatprep.subr.bf16.mxu0 %v4859_v2 }
 0xee1   : > { %v4738_v32 = vpop.eup %4737 }
 0xee2   : > { %v2132_v34 = vmul.f32 %v4738_v32, %v4722_v46 }
 0xee4   : > { %v2375_v5 = vpop.xlane.xlu0 %2374 }
 0xee8   : > { %v2259_v4 = vpop.permute.xlu0 %2258 }
 0xeff   : > { %v2125_v27 = vpop.xlane.xlu1 %2124 }
 0xf00   : > { %4739 = vrcp.f32 %v2125_v27 }
 0xf03   : > { %v2249_v31 = vpop.xlane.xlu1 %2248 }
 0xf04   : > { %4741 = vrcp.f32 %v2249_v31 }
 0xf05   : > { %4743 = vrcp.f32 %v2252_v29 }
 0xf07   : > { %v2372_v33 = vpop.xlane.xlu1 %2371 }
 0xf08   : > { %4745 = vrcp.f32 %v2372_v33 }
 0xf09   : > { %4747 = vrcp.f32 %v2375_v5  ;;  %v3874_v5 = vld [vmem:[%s5902_s7 + $0x4] ss:$0 sm:$0xff] }
 0xf0a   : > { %v4740_v6 = vpop.eup %4739  ;;  %v1746_v33 = vadd.f32 %v3874_v5, %v5554_v28 }
 0xf0b   : > { %v2131_v35 = vmul.f32 %v4740_v6, %v4728_v14  ;;  %v2382_v43 = vpop.permute.xlu1 %2381  ;;  %v1749_v6 = vadd.f32 %v3874_v5, %v5556_v53 }
 0xf0d   : > { %v2133_v36 = vpack.c.bf16 %v2132_v34, %v2131_v35  ;;  %v1752_v34 = vmax.f32 %v1746_v33, 0.0  ;;  %v1753_v35 = vmax.f32 %v1749_v6, 0.0 }
 0xf0e   : > { %v4742_v37 = vpop.eup %4741 }
 0xf0f   : > { %4318 = vmatmul.mubr.msk.bf16.vlgmr.msra.gmra.mrb[36].mxu0 %vm1987_vm11, %v2133_v36  ;;  %v4744_v38 = vpop.eup %4743  ;;  %v2255_v39 = vmul.f32 %v4742_v37, %v4730_v16  ;;  %v1754_v36 = vadd.f32 %v1752_v34, %v1524_v30  ;;  %v1755_v37 = vadd.f32 %v1753_v35, %v1525_v52  ;;  %v4703_v34 = vld [vmem:[%s5898_s3 + $0x20] sm:$0xff]   ;;  %v4704_v35 = vld [vmem:[%s5898_s3 + $0x28] sm:$0xff]  }
 0xf10   : > { %4328 = vmatpush3.bf16.msra.mxu0 %v2259_v4  ;;  %4329 = vmatprep.mubr.msk.bf16.mxu0 %vm4860_vm2, %v4859_v2  ;;  %v2256_v40 = vmul.f32 %v4744_v38, %v5576_v59 }
 0xf11   : > { %4339 = vmatprep.subr.bf16.mxu0 %v4859_v2  ;;  %v1756_v38 = vmax.f32 %v1754_v36, 0.0 }
 0xf12   : > { %v2257_v41 = vpack.c.bf16 %v2256_v40, %v2255_v39  ;;  %v4746_v42 = vpop.eup %4745 }
 0xf13   : > { %v4748_v44 = vpop.eup %4747  ;;  %v2378_v45 = vmul.f32 %v4746_v42, %v4732_v17  ;;  %v1757_v42 = vmax.f32 %v1755_v37, 0.0 }
 0xf14   : > { %v2379_v47 = vmul.f32 %v4748_v44, %v5581_v62 }
 0xf16   : > { %v2380_v49 = vpack.c.bf16 %v2379_v47, %v2378_v45 }
 0xf17   : > { %4330 = vmatmul.mubr.msk.bf16.vlgmr.msra.gmra.mrb[40].mxu0 %vm1987_vm11, %v2257_v41 }
 0xf18   : > { %4340 = vmatpush3.bf16.msra.mxu0 %v2382_v43  ;;  %4341 = vmatprep.mubr.msk.bf16.mxu0 %vm4860_vm2, %v4859_v2 }
 0xf19   : > { %4353 = vmatprep.subr.bf16.mxu0 %v4859_v2 }
 0xf1f   : > { %4342 = vmatmul.mubr.msk.bf16.vlgmr.msra.gmra.mrb[44].mxu0 %vm1987_vm11, %v2380_v49 }
 0xf20   : > { %4357 = vmatprep.mubr.msk.bf16.mxu0 %vm4860_vm2, %v4859_v2 }
 0xfaf   : > { %v2049_v56 = vpop.f32.mrb[32].mxu0 }
 0xfb0   : > { %v4307_v57 = vpop.f32.mrb[33].mxu0 }
 0xfb1   : > { %v2052_v46 = vpop.f32.mrb[34].mxu0 }
 0xfb2   : > { %v4308_v54 = vpop.f32.mrb[35].mxu0 }
 0xfb3   : > { %v4699_v54 = vld [vmem:[%s5898_s3 + $0x10] sm:$0xff]  }
 0xfe2   : > { %v2175_v55 = vpop.f32.mrb[36].mxu0 }
 0xfe3   : > { %v4319_v58 = vpop.f32.mrb[37].mxu0 }
 0xfe4   : > { %v2178_v59 = vpop.f32.mrb[38].mxu0 }
 0xfe5   : > { %v4601_v63 = vpack.i.bf16 %v2178_v59, %v2175_v55  ;;  %v4320_v0 = vpop.f32.mrb[39].mxu0  ;;  %v4700_v55 = vld [vmem:[%s5898_s3 + $0x18] sm:$0xff]  }
 0xfe6   : > { %v4702_v0 = vld [vmem:[%s5898_s3 + $0x8] sm:$0xff]  }
 0xfe7   : > { %4602 = vrot.lane.b32.xlu1 %v4601_v63, %s5916_s20  ;;  %s431_s20 = scalar_lea.vmem %s5928_s1, %s5927_s29  ;;  %v4701_v63 = vld [vmem:[%s5898_s3] sm:$0xff]  }
 0xfe8   : > { %v435_v58 = vld [vmem:[%s431_s20] sm:$0xff]  ;;  %v436_v59 = vld [vmem:[%s431_s20 + $0x8] sm:$0xff]  ;;  %4354 = vmatpush3.bf16.msra.mxu0 %v4701_v63  ;;  %s3974_s20 = sshll.u32 %s4957_s25, 8  ;;  %s5853_s25 = scalar_lea.sflag [#allocation3], %s419_s15 }
 0xfe9   : > { %v2636_v60 = vpack.c.bf16 %v436_v59, %v435_v58  ;;  %4355 = vmatprep.subr.bf16.mxu0 %v4859_v2  ;;  %s5847_s1 = scalar_lea.hbm %s5907_s12, %s3974_s20 }
 0xfea   : > { %v2298_v62 = vpop.f32.mrb[40].mxu0 }
 0xfeb   : > { %v4331_v3 = vpop.f32.mrb[41].mxu0 }
 0xfec   : > { %v2301_v8 = vpop.f32.mrb[42].mxu0  ;;  %4356 = vmatpush3.bf16.msra.mxu0 %v4702_v0 }
 0xfed   : > { %v4606_v9 = vpack.i.bf16 %v2301_v8, %v2298_v62  ;;  %v4332_v10 = vpop.f32.mrb[43].mxu0  ;;  %4369 = vmatprep.subr.bf16.mxu0 %v4859_v2 }
 0xfef   : > { %4607 = vrot.lane.b32.xlu0 %v4606_v9, %s5915_s23  ;;  %s5930_s23 = smov 16  }
 0xff2   : > { %v2421_v11 = vpop.f32.mrb[44].mxu0 }
 0xff3   : > { %v4343_v12 = vpop.f32.mrb[45].mxu0 }
 0xff4   : > { %v2424_v14 = vpop.f32.mrb[46].mxu0 }
 0xff5   : > { %v4611_v15 = vpack.i.bf16 %v2424_v14, %v2421_v11  ;;  %v4344_v16 = vpop.f32.mrb[47].mxu0  ;;  %v3914_v14 = vld [vmem:[%s5905_s10] ss:$0 sm:$0xff] }
 0xff7   : > { %4612 = vrot.lane.b32.xlu1 %v4611_v15, %s5914_s30  ;;  %s5931_s30 = smov 24  }
0x1059   : > { %v4603_v1 = vpop.permute.xlu1 %4602 }
0x105a   : > { %v4605_v13 = vunpack.i.h.bf16 %v4603_v1  ;;  %v4604_v18 = vunpack.i.l.bf16 %v4603_v1 }
0x105c   : > { %v2453_v22 = vsel %vm1937_vm10, %v2052_v46, %v4605_v13  ;;  %v2452_v23 = vsel %vm1937_vm10, %v2049_v56, %v4604_v18 }
0x1061   : > { %v4608_v17 = vpop.permute.xlu0 %4607 }
0x1062   : > { %v4610_v19 = vunpack.i.h.bf16 %v4608_v17  ;;  %v4609_v20 = vunpack.i.l.bf16 %v4608_v17  ;;  %v3915_v17 = vld [vmem:[%s5906_s11] ss:$0 sm:$0xff] }
0x1064   : > { %v2455_v26 = vsel %vm1987_vm11, %v2453_v22, %v4610_v19  ;;  %v2454_v27 = vsel %vm1987_vm11, %v2452_v23, %v4609_v20 }
0x1069   : > { %v4613_v21 = vpop.permute.xlu1 %4612 }
0x106a   : > { %v4615_v24 = vunpack.i.h.bf16 %v4613_v21  ;;  %v4614_v25 = vunpack.i.l.bf16 %v4613_v21 }
0x106c   : > { %v2458_v29 = vsel %vm2456_vm12, %v2455_v26, %v4615_v24  ;;  %v2457_v31 = vsel %vm2456_vm12, %v2454_v27, %v4614_v25 }
0x106d   : > { %v2464_v32 = vpack.c.bf16 %v2458_v29, %v2457_v31 }
0x106f   : > { %4350 = vmatmul.mubr.msk.bf16.vlgmr.msra.gmra.mrb[36].mxu1 %vm487_vm5, %v2464_v32 }
0x1070   : > { %4365 = vmatprep.mubr.msk.bf16.mxu1 %vm4860_vm2, %v4859_v2  ;;  %4362 = vmatpush3.bf16.msra.mxu1 %v4699_v54 }
0x1071   : > { %4363 = vmatprep.subr.bf16.mxu1 %v4859_v2 }
0x1074   : > { %4364 = vmatpush3.bf16.msra.mxu1 %v4700_v55 }
0x1075   : > { %4377 = vmatprep.subr.bf16.mxu1 %v4859_v2 }
0x1077   : > { %4366 = vmatmul.mubr.msk.bf16.vlgmr.msra.gmra.mrb[40].mxu1 %vm487_vm5, %v2636_v60 }
0x1078   : > { %4379 = vmatprep.mubr.msk.bf16.mxu1 %vm4860_vm2, %v4859_v2 }
0x1142   : > { %v2514_v4 = vpop.f32.mrb[36].mxu1 }
0x1143   : > { %v2521_v39 = vadd.f32 %v5457_v48, %v2514_v4  ;;  %v4351_v40 = vpop.f32.mrb[37].mxu1 }
0x1144   : > { %v2517_v41 = vpop.f32.mrb[38].mxu1 }
0x1145   : > { %v2522_v43 = vadd.f32 %v5460_v61, %v2517_v41  ;;  %v4352_v28 = vpop.f32.mrb[39].mxu1  ;;  %v2523_v44 = vadd.f32 %v2521_v39, %v1756_v38 }
0x1147   : > { %v2525_v53 = vsel %vm487_vm5, %v2523_v44, 0.0  ;;  %v2524_v45 = vadd.f32 %v2522_v43, %v1757_v42 }
0x1148   : > { %2526 = vadd.xlane.f32.xlu0 %v2525_v53 }
0x1149   : > { %v2528_v50 = vsel %vm487_vm5, %v2524_v45, 0.0 }
0x114a   : > { %2529 = vadd.xlane.f32.xlu1 %v2528_v50  ;;  %v2686_v21 = vpop.f32.mrb[40].mxu1 }
0x114b   : > { %v4367_v22 = vpop.f32.mrb[41].mxu1 }
0x114c   : > { %v2689_v23 = vpop.f32.mrb[42].mxu1 }
0x114d   : > { %v2752_v24 = vpack.c.bf16 %v2689_v23, %v2686_v21  ;;  %v4368_v25 = vpop.f32.mrb[43].mxu1 }
0x114f   : > { %v2757_v26 = vsel %vm1937_vm10, %v2752_v24, 0 }
0x1150   : > { %4378 = vmatpush3.bf16.xpose.msra.mxu1 %v2757_v26 }
0x1151   : > { %4389 = vmatprep.subr.bf16.mxu1 %v4859_v2 }
0x115b   : > { %2874 = vrot.lane.b32.xlu1 %v2752_v24, %s4863_s26 }
0x115f   : > { %2998 = vrot.lane.b32.xlu1 %v2752_v24, %s4864_s17 }
0x11d5   : > { %v2527_v51 = vpop.xlane.xlu0 %2526 }
0x11d6   : > { %v2532_v30 = vmul.f32 0.03125, %v2527_v51 }
0x11d7   : > { %v2530_v52 = vpop.xlane.xlu1 %2529 }
0x11d8   : > { %v2534_v47 = vsub.f32 %v2523_v44, %v2532_v30  ;;  %v2533_v48 = vmul.f32 0.03125, %v2530_v52 }
0x11da   : > { %v2535_v49 = vsub.f32 %v2524_v45, %v2533_v48  ;;  %v2536_v56 = vmul.f32 %v2534_v47, %v2534_v47 }
0x11db   : > { %v2875_v33 = vpop.permute.xlu1 %2874 }
0x11dc   : > { %v2538_v57 = vsel %vm487_vm5, %v2536_v56, 0.0  ;;  %v2537_v61 = vmul.f32 %v2535_v49, %v2535_v49  ;;  %v2880_v6 = vsel %vm1937_vm10, %v2875_v33, 0 }
0x11dd   : > { %2539 = vadd.xlane.f32.xlu0 %v2538_v57 }
0x11de   : > { %v2541_v46 = vsel %vm487_vm5, %v2537_v61, 0.0 }
0x11df   : > { %v2999_v36 = vpop.permute.xlu1 %2998 }
0x11e0   : > { %v3004_v4 = vsel %vm1937_vm10, %v2999_v36, 0 }
0x11e1   : > { %2542 = vadd.xlane.f32.xlu0 %v2541_v46 }
0x126a   : > { %v2540_v62 = vpop.xlane.xlu0 %2539 }
0x126b   : > { %v2544_v3 = vmul.f32 0.03125, %v2540_v62 }
0x126d   : > { %v2546_v7 = vadd.f32 1e-05, %v2544_v3 }
0x126e   : > { %v2543_v8 = vpop.xlane.xlu0 %2542 }
0x126f   : > { %4749 = vrsqrt.f32 %v2546_v7  ;;  %v2545_v9 = vmul.f32 0.03125, %v2543_v8 }
0x1271   : > { %v2547_v10 = vadd.f32 1e-05, %v2545_v9 }
0x1273   : > { %4751 = vrsqrt.f32 %v2547_v10 }
0x1279   : > { %v4750_v11 = vpop.eup %4749 }
0x127a   : > { %v2550_v12 = vmul.f32 %v4750_v11, %v2534_v47 }
0x127c   : > { %v2559_v16 = vmul.f32 %v3914_v14, %v2550_v12 }
0x127d   : > { %v4752_v15 = vpop.eup %4751 }
0x127e   : > { %v2551_v1 = vmul.f32 %v4752_v15, %v2535_v49  ;;  %v5674_v18 = vadd.f32 %v3915_v17, %v2559_v16 }
0x1280   : > { %v2560_v13 = vmul.f32 %v3914_v14, %v2551_v1 }
0x1282   : > { %v5676_v19 = vadd.f32 %v3915_v17, %v2560_v13 }
0x1284   : > { %v2574_v20 = vpack.c.bf16 %v5676_v19, %v5674_v18 }
0x1286   : > { %4358 = vmatmul.mubr.msk.bf16.vlgmr.msra.gmra.mrb[48].mxu0 %vm487_vm5, %v2574_v20 }
0x1287   : > { %4373 = vmatprep.mubr.msk.bf16.mxu0 %vm4860_vm2, %v4859_v2  ;;  %4370 = vmatpush3.bf16.msra.mxu0 %v4703_v34 }
0x1288   : > { %4371 = vmatprep.subr.bf16.mxu0 %v4859_v2 }
0x128b   : > { %4372 = vmatpush3.bf16.msra.mxu0 %v4704_v35 }
0x128c   : > { %4383 = vmatprep.subr.bf16.mxu0 %v4859_v2 }
0x128e   : > { %4374 = vmatmul.mubr.msk.bf16.vlgmr.msra.gmra.mrb[52].mxu0 %vm487_vm5, %v2636_v60 }
0x128f   : > { %4385 = vmatprep.mubr.msk.bf16.mxu0 %vm4860_vm2, %v4859_v2 }
0x1359   : > { %v2624_v27 = vpop.f32.mrb[48].mxu0 }
0x135a   : > { %v4359_v29 = vpop.f32.mrb[49].mxu0 }
0x135b   : > { %v2627_v31 = vpop.f32.mrb[50].mxu0 }
0x135c   : > { %v2751_v32 = vpack.c.bf16 %v2627_v31, %v2624_v27  ;;  %v4360_v5 = vpop.f32.mrb[51].mxu0 }
0x135e   : > { %2996 = vrot.lane.b32.xlu1 %v2751_v32, %s4864_s17  ;;  %2871 = vrot.lane.b32.xlu0 %v2751_v32, %s4863_s26 }
0x135f   : > { %4380 = vmatmul.mubr.msk.bf16.vlgmr.msra.gmra.mrb[44].mxu1 %vm1937_vm10, %v2751_v32 }
0x1360   : > { %4390 = vmatpush3.bf16.xpose.msra.mxu1 %v2880_v6  ;;  %4391 = vmatprep.mubr.msk.bf16.mxu1 %vm4860_vm2, %v4859_v2 }
0x1361   : > { %4401 = vmatprep.subr.bf16.mxu1 %v4859_v2  ;;  %v2744_v30 = vpop.f32.mrb[52].mxu0 }
0x1362   : > { %3119 = vrot.lane.b32.xlu1 %v2751_v32, %s4865_s28  ;;  %3121 = vrot.lane.b32.xlu0 %v2752_v24, %s4865_s28  ;;  %v4375_v52 = vpop.f32.mrb[53].mxu0 }
0x1363   : > { %v2747_v47 = vpop.f32.mrb[54].mxu0 }
0x1364   : > { %v5722_v48 = vpack.c.bf16 %v2747_v47, %v2744_v30  ;;  %v4376_v49 = vpop.f32.mrb[55].mxu0 }
0x1366   : > { %4384 = vmatpush3.bf16.msra.mxu0 %v5722_v48 }
0x1367   : > { %4395 = vmatprep.subr.bf16.mxu0 %v4859_v2 }
0x13d0   : > { %v2872_v37 = vpop.permute.xlu0 %2871  ;;  %v2997_v39 = vpop.permute.xlu1 %2996 }
0x13d1   : > { %4392 = vmatmul.mubr.msk.bf16.vlgmr.msra.gmra.mrb[48].mxu1 %vm1937_vm10, %v2872_v37 }
0x13d2   : > { %4402 = vmatpush3.bf16.xpose.msra.mxu1 %v3004_v4  ;;  %4403 = vmatprep.mubr.msk.bf16.mxu1 %vm4860_vm2, %v4859_v2 }
0x13d3   : > { %4413 = vmatprep.subr.bf16.mxu1 %v4859_v2 }
0x13d4   : > { %v3122_v38 = vpop.permute.xlu0 %3121  ;;  %v3120_v41 = vpop.permute.xlu1 %3119 }
0x13d5   : > { %v3127_v40 = vsel %vm1937_vm10, %v3122_v38, 0 }
0x13d9   : > { %4404 = vmatmul.mubr.msk.bf16.vlgmr.msra.gmra.mrb[52].mxu1 %vm1937_vm10, %v2997_v39 }
0x13da   : > { %4414 = vmatpush3.bf16.xpose.msra.mxu1 %v3127_v40  ;;  %4415 = vmatprep.mubr.msk.bf16.mxu1 %vm4860_vm2, %v4859_v2 }
0x13db   : > { %4425 = vmatprep.subr.bf16.mxu1 %v4859_v2 }
0x13e1   : > { %4416 = vmatmul.mubr.msk.bf16.vlgmr.msra.gmra.mrb[56].mxu1 %vm1937_vm10, %v3120_v41 }
0x13e2   : > { %4429 = vmatprep.mubr.msk.bf16.mxu1 %vm4860_vm2, %v4859_v2 }
0x1432   : > { %v2793_v42 = vpop.f32.mrb[44].mxu1 }
0x1433   : > { %v2800_v43 = vmul.f32 0.35355338, %v2793_v42  ;;  %v4381_v28 = vpop.f32.mrb[45].mxu1 }
0x1434   : > { %v2796_v44 = vpop.f32.mrb[46].mxu1 }
0x1435   : > { %v2801_v53 = vmul.f32 0.35355338, %v2796_v44  ;;  %v4382_v45 = vpop.f32.mrb[47].mxu1  ;;  %v2802_v50 = vsel %vm1987_vm11, %v2800_v43, -inf }
0x1436   : > { %2803 = vmax.xlane.f32.xlu0 %v2802_v50 }
0x1437   : > { %v2805_v51 = vsel %vm1987_vm11, %v2801_v53, -inf }
0x1438   : > { %2806 = vmax.xlane.f32.xlu1 %v2805_v51 }
0x14a4   : > { %v2916_v56 = vpop.f32.mrb[48].mxu1 }
0x14a5   : > { %v2923_v57 = vmul.f32 0.35355338, %v2916_v56  ;;  %v4393_v61 = vpop.f32.mrb[49].mxu1 }
0x14a6   : > { %v2919_v46 = vpop.f32.mrb[50].mxu1 }
0x14a7   : > { %v2924_v54 = vmul.f32 0.35355338, %v2919_v46  ;;  %v4394_v55 = vpop.f32.mrb[51].mxu1  ;;  %v2925_v58 = vsel %vm1987_vm11, %v2923_v57, -inf }
0x14a8   : > { %2926 = vmax.xlane.f32.xlu0 %v2925_v58 }
0x14a9   : > { %v2928_v59 = vsel %vm1987_vm11, %v2924_v54, -inf }
0x14ac   : > { %2929 = vmax.xlane.f32.xlu0 %v2928_v59  ;;  %v3040_v60 = vpop.f32.mrb[52].mxu1 }
0x14ad   : > { %v3047_v63 = vmul.f32 0.35355338, %v3040_v60  ;;  %v4405_v0 = vpop.f32.mrb[53].mxu1 }
0x14ae   : > { %v3043_v62 = vpop.f32.mrb[54].mxu1 }
0x14af   : > { %v3048_v3 = vmul.f32 0.35355338, %v3043_v62  ;;  %v4406_v7 = vpop.f32.mrb[55].mxu1  ;;  %v3049_v8 = vsel %vm1987_vm11, %v3047_v63, -inf }
0x14b0   : > { %3050 = vmax.xlane.f32.xlu1 %v3049_v8 }
0x14b1   : > { %v3052_v9 = vsel %vm1987_vm11, %v3048_v3, -inf }
0x14b2   : > { %3053 = vmax.xlane.f32.xlu0 %v3052_v9 }
0x14b4   : > { %v3163_v10 = vpop.f32.mrb[56].mxu1 }
0x14b5   : > { %v3170_v11 = vmul.f32 0.35355338, %v3163_v10  ;;  %v4417_v12 = vpop.f32.mrb[57].mxu1 }
0x14b6   : > { %v3166_v14 = vpop.f32.mrb[58].mxu1 }
0x14b7   : > { %v3171_v15 = vmul.f32 0.35355338, %v3166_v14  ;;  %v4418_v16 = vpop.f32.mrb[59].mxu1  ;;  %v3172_v1 = vsel %vm1987_vm11, %v3170_v11, -inf }
0x14b8   : > { %3173 = vmax.xlane.f32.xlu1 %v3172_v1 }
0x14b9   : > { %v3175_v17 = vsel %vm1987_vm11, %v3171_v15, -inf }
0x14ba   : > { %3176 = vmax.xlane.f32.xlu0 %v3175_v17 }
0x14c3   : > { %v2804_v13 = vpop.xlane.xlu0 %2803 }
0x14c4   : > { %v2808_v20 = vsub.f32 %v2800_v43, %v2804_v13 }
0x14c5   : > { %v2807_v21 = vpop.xlane.xlu1 %2806 }
0x14c6   : > { %v2810_v22 = vmul.f32 1.442695, %v2808_v20  ;;  %v2809_v23 = vsub.f32 %v2801_v53, %v2807_v21 }
0x14c8   : > { %4753 = vpow2.f32 %v2810_v22  ;;  %v2812_v24 = vmul.f32 1.442695, %v2809_v23 }
0x14ca   : > { %4755 = vpow2.f32 %v2812_v24 }
0x14d2   : > { %v4754_v25 = vpop.eup %4753 }
0x14d3   : > { %v2814_v26 = vsel %vm1987_vm11, %v4754_v25, 0.0 }
0x14d4   : > { %v4756_v27 = vpop.eup %4755  ;;  %2815 = vadd.xlane.f32.xlu1 %v2814_v26 }
0x14d5   : > { %v2817_v29 = vsel %vm1987_vm11, %v4756_v27, 0.0 }
0x14d6   : > { %2818 = vadd.xlane.f32.xlu0 %v2817_v29 }
0x14e5   : > { %2949 = vrot.lane.b32.xlu1 %v5722_v48, %s4863_s26  ;;  %s4799_s26 = sshll.u32 %s4869_s19, 4  ;;  %s4800_s26 = int_to_ptr.vmem [resolvable:$false] %s4799_s26 }
0x1535   : > { %v2927_v31 = vpop.xlane.xlu0 %2926 }
0x1536   : > { %v2931_v32 = vsub.f32 %v2923_v57, %v2927_v31 }
0x1538   : > { %v2933_v5 = vmul.f32 1.442695, %v2931_v32 }
0x1539   : > { %v2930_v33 = vpop.xlane.xlu0 %2929 }
0x153a   : > { %4757 = vpow2.f32 %v2933_v5  ;;  %v2932_v6 = vsub.f32 %v2924_v54, %v2930_v33 }
0x153c   : > { %v2935_v34 = vmul.f32 1.442695, %v2932_v6 }
0x153d   : > { %v3051_v35 = vpop.xlane.xlu1 %3050 }
0x153e   : > { %4759 = vpow2.f32 %v2935_v34  ;;  %v3055_v36 = vsub.f32 %v3047_v63, %v3051_v35 }
0x153f   : > { %v3054_v37 = vpop.xlane.xlu0 %3053 }
0x1540   : > { %v3057_v4 = vmul.f32 1.442695, %v3055_v36  ;;  %v3056_v38 = vsub.f32 %v3048_v3, %v3054_v37  ;;  %v4705_v36 = vld [vmem:[%s5898_s3 + $0x30] sm:$0xff]  }
0x1541   : > { %4426 = vmatpush3.bf16.msra.mxu1 %v4705_v36 }
0x1542   : > { %4761 = vpow2.f32 %v3057_v4  ;;  %v3059_v39 = vmul.f32 1.442695, %v3056_v38  ;;  %4427 = vmatprep.subr.bf16.mxu1 %v4859_v2 }
0x1544   : > { %v4758_v40 = vpop.eup %4757  ;;  %4763 = vpow2.f32 %v3059_v39 }
0x1545   : > { %v3174_v41 = vpop.xlane.xlu1 %3173  ;;  %v2937_v42 = vsel %vm1987_vm11, %v4758_v40, 0.0 }
0x1546   : > { %v3178_v43 = vsub.f32 %v3170_v11, %v3174_v41  ;;  %2938 = vadd.xlane.f32.xlu1 %v2937_v42 }
0x1547   : > { %v3177_v28 = vpop.xlane.xlu0 %3176 }
0x1548   : > { %v4760_v44 = vpop.eup %4759  ;;  %v3180_v53 = vmul.f32 1.442695, %v3178_v43  ;;  %v3179_v45 = vsub.f32 %v3171_v15, %v3177_v28 }
0x1549   : > { %v2940_v50 = vsel %vm1987_vm11, %v4760_v44, 0.0 }
0x154a   : > { %4765 = vpow2.f32 %v3180_v53  ;;  %v3182_v51 = vmul.f32 1.442695, %v3179_v45  ;;  %2941 = vadd.xlane.f32.xlu0 %v2940_v50 }
0x154c   : > { %v4762_v30 = vpop.eup %4761  ;;  %4767 = vpow2.f32 %v3182_v51 }
0x154d   : > { %v3061_v52 = vsel %vm1987_vm11, %v4762_v30, 0.0 }
0x154e   : > { %v4764_v47 = vpop.eup %4763  ;;  %3062 = vadd.xlane.f32.xlu1 %v3061_v52 }
0x154f   : > { %v3064_v49 = vsel %vm1987_vm11, %v4764_v47, 0.0 }
0x1550   : > { %3065 = vadd.xlane.f32.xlu0 %v3064_v49 }
0x1554   : > { %v4766_v56 = vpop.eup %4765 }
0x1555   : > { %v3184_v57 = vsel %vm1987_vm11, %v4766_v56, 0.0 }
0x1556   : > { %v4768_v61 = vpop.eup %4767  ;;  %3185 = vadd.xlane.f32.xlu1 %v3184_v57 }
0x1557   : > { %v3187_v46 = vsel %vm1987_vm11, %v4768_v61, 0.0 }
0x1558   : > { %3188 = vadd.xlane.f32.xlu0 %v3187_v46 }
0x1561   : > { %v2816_v54 = vpop.xlane.xlu1 %2815 }
0x1562   : > { %4769 = vrcp.f32 %v2816_v54 }
0x1563   : > { %v2819_v55 = vpop.xlane.xlu0 %2818 }
0x1564   : > { %4771 = vrcp.f32 %v2819_v55 }
0x1565   : > { %v2950_v62 = vpop.permute.xlu1 %2949 }
0x1567   : > { %3195 = vrot.lane.b32.xlu1 %v5722_v48, %s4865_s28  ;;  %s5929_s28 = smov 8  }
0x156c   : > { %v4770_v58 = vpop.eup %4769 }
0x156d   : > { %v2822_v60 = vmul.f32 %v4770_v58, %v4754_v25 }
0x156e   : > { %v4772_v59 = vpop.eup %4771  ;;  %3072 = vrot.lane.b32.xlu0 %v5722_v48, %s4864_s17  ;;  %s4801_s17 = scalar_lea.vmem %s4800_s26, 512 }
0x156f   : > { %v2823_v63 = vmul.f32 %v4772_v59, %v4756_v27 }
0x1571   : > { %v2824_v0 = vpack.c.bf16 %v2823_v63, %v2822_v60 }
0x1573   : > { %4386 = vmatmul.mubr.msk.bf16.vlgmr.msra.gmra.mrb[56].mxu0 %vm1987_vm11, %v2824_v0 }
0x1574   : > { %4396 = vmatpush3.bf16.msra.mxu0 %v2950_v62  ;;  %4397 = vmatprep.mubr.msk.bf16.mxu0 %vm4860_vm2, %v4859_v2 }
0x1575   : > { %4407 = vmatprep.subr.bf16.mxu0 %v4859_v2 }
0x15d3   : > { %v2939_v3 = vpop.xlane.xlu1 %2938 }
0x15d4   : > { %4773 = vrcp.f32 %v2939_v3 }
0x15d7   : > { %v2942_v7 = vpop.xlane.xlu0 %2941 }
0x15d8   : > { %4775 = vrcp.f32 %v2942_v7 }
0x15db   : > { %v3063_v8 = vpop.xlane.xlu1 %3062 }
0x15dc   : > { %4777 = vrcp.f32 %v3063_v8 }
0x15dd   : > { %v3066_v9 = vpop.xlane.xlu0 %3065 }
0x15de   : > { %4779 = vrcp.f32 %v3066_v9  ;;  %v4774_v48 = vpop.eup %4773 }
0x15df   : > { %v2945_v11 = vmul.f32 %v4774_v48, %v4758_v40  ;;  %v4706_v40 = vld [vmem:[%s5898_s3 + $0x38] sm:$0xff]  }
0x15e0   : > { %4428 = vmatpush3.bf16.msra.mxu1 %v4706_v40  ;;  %v3951_v40 = vld [vmem:[%s5906_s11 + $0x1] ss:$0 sm:$0xff] }
0x15e1   : > { %4441 = vmatprep.subr.bf16.mxu1 %v4859_v2 }
0x15e2   : > { %v4776_v10 = vpop.eup %4775 }
0x15e3   : > { %v2946_v12 = vmul.f32 %v4776_v10, %v4760_v44  ;;  %v3186_v14 = vpop.xlane.xlu1 %3185 }
0x15e4   : > { %4781 = vrcp.f32 %v3186_v14 }
0x15e5   : > { %v3189_v15 = vpop.xlane.xlu0 %3188  ;;  %v2947_v16 = vpack.c.bf16 %v2946_v12, %v2945_v11 }
0x15e6   : > { %4783 = vrcp.f32 %v3189_v15  ;;  %v4778_v1 = vpop.eup %4777 }
0x15e7   : > { %4398 = vmatmul.mubr.msk.bf16.vlgmr.msra.gmra.mrb[60].mxu0 %vm1987_vm11, %v2947_v16  ;;  %v3069_v21 = vmul.f32 %v4778_v1, %v4762_v30  ;;  %v3196_v24 = vpop.permute.xlu1 %3195 }
0x15e8   : > { %v4780_v17 = vpop.eup %4779  ;;  %4409 = vmatprep.mubr.msk.bf16.mxu0 %vm4860_vm2, %v4859_v2 }
0x15e9   : > { %v3070_v13 = vmul.f32 %v4780_v17, %v4764_v47  ;;  %v3073_v20 = vpop.permute.xlu0 %3072 }
0x15ea   : > { %4408 = vmatpush3.bf16.msra.mxu0 %v3073_v20 }
0x15eb   : > { %4419 = vmatprep.subr.bf16.mxu0 %v4859_v2  ;;  %v3071_v22 = vpack.c.bf16 %v3070_v13, %v3069_v21  ;;  %v4707_v21 = vld [vmem:[%s5903_s8] sm:$0xff]  }
0x15ee   : > { %v4782_v23 = vpop.eup %4781 }
0x15ef   : > { %4410 = vmatmul.mubr.msk.bf16.vlgmr.msra.gmra.mrb[64].mxu0 %vm1987_vm11, %v3071_v22  ;;  %v3192_v27 = vmul.f32 %v4782_v23, %v4766_v56  ;;  %v4708_v22 = vld [vmem:[%s5903_s8 + $0x8] sm:$0xff]   ;;  %v4709_v23 = vld [vmem:[%s5904_s9] sm:$0xff]  }
0x15f0   : > { %v4784_v25 = vpop.eup %4783  ;;  %4420 = vmatpush3.bf16.msra.mxu0 %v3196_v24  ;;  %4421 = vmatprep.mubr.msk.bf16.mxu0 %vm4860_vm2, %v4859_v2  ;;  %v4710_v24 = vld [vmem:[%s5904_s9 + $0x8] sm:$0xff]  }
0x15f1   : > { %v3193_v26 = vmul.f32 %v4784_v25, %v4768_v61  ;;  %4433 = vmatprep.subr.bf16.mxu0 %v4859_v2  ;;  %v4711_v25 = vld [vmem:[%s5904_s9 + $0x10] sm:$0xff]  }
0x15f3   : > { %v3194_v29 = vpack.c.bf16 %v3193_v26, %v3192_v27  ;;  %v4712_v26 = vld [vmem:[%s5904_s9 + $0x18] sm:$0xff]   ;;  %v4713_v27 = vld [vmem:[%s5904_s9 + $0x20] sm:$0xff]  }
0x15f7   : > { %4422 = vmatmul.mubr.msk.bf16.vlgmr.msra.gmra.mrb[68].mxu0 %vm1987_vm11, %v3194_v29  ;;  %v4714_v29 = vld [vmem:[%s5904_s9 + $0x28] sm:$0xff]  }
0x15f8   : > { %4437 = vmatprep.mubr.msk.bf16.mxu0 %vm4860_vm2, %v4859_v2  ;;  %4434 = vmatpush3.bf16.msra.mxu0 %v4707_v21 }
0x15f9   : > { %4435 = vmatprep.subr.bf16.mxu0 %v4859_v2 }
0x15fc   : > { %4436 = vmatpush3.bf16.msra.mxu0 %v4708_v22 }
0x1646   : > { %v2863_v31 = vpop.f32.mrb[56].mxu0 }
0x1647   : > { %v4387_v32 = vpop.f32.mrb[57].mxu0 }
0x1648   : > { %v2866_v5 = vpop.f32.mrb[58].mxu0 }
0x1649   : > { %v4388_v33 = vpop.f32.mrb[59].mxu0 }
0x16ba   : > { %v2989_v6 = vpop.f32.mrb[60].mxu0 }
0x16bb   : > { %v4399_v34 = vpop.f32.mrb[61].mxu0 }
0x16bc   : > { %v2992_v35 = vpop.f32.mrb[62].mxu0 }
0x16bd   : > { %v4616_v37 = vpack.i.bf16 %v2992_v35, %v2989_v6  ;;  %v4400_v4 = vpop.f32.mrb[63].mxu0 }
0x16bf   : > { %4617 = vrot.lane.b32.xlu1 %v4616_v37, %s5929_s28  ;;  %v3949_v37 = vld [vmem:[%s5905_s10 + $0x1] ss:$0 sm:$0xff] }
0x16c2   : > { %v3112_v38 = vpop.f32.mrb[64].mxu0 }
0x16c3   : > { %v4411_v39 = vpop.f32.mrb[65].mxu0 }
0x16c4   : > { %v3115_v41 = vpop.f32.mrb[66].mxu0 }
0x16c5   : > { %v4621_v42 = vpack.i.bf16 %v3115_v41, %v3112_v38  ;;  %v4412_v43 = vpop.f32.mrb[67].mxu0 }
0x16c7   : > { %4622 = vrot.lane.b32.xlu0 %v4621_v42, %s5930_s23  ;;  %s421_s23 = scalar_lea.vmem [#allocation2], %s3693_s18 }
0x16ca   : > { %v3235_v28 = vpop.f32.mrb[68].mxu0 }
0x16cb   : > { %v4423_v44 = vpop.f32.mrb[69].mxu0 }
0x16cc   : > { %v3238_v53 = vpop.f32.mrb[70].mxu0  ;;  %v4715_v44 = vld [vmem:[%s5904_s9 + $0x30] sm:$0xff]  }
0x16cd   : > { %v4626_v45 = vpack.i.bf16 %v3238_v53, %v3235_v28  ;;  %v4424_v50 = vpop.f32.mrb[71].mxu0  ;;  %v4716_v53 = vld [vmem:[%s5904_s9 + $0x38] sm:$0xff]  }
0x16cf   : > { %4627 = vrot.lane.b32.xlu1 %v4626_v45, %s5931_s30  ;;  %s3615_s30 = sshll.u32 %s421_s23, 4  ;;  %s5850_s30 = int_to_ptr.vmem [resolvable:$true] %s3615_s30 }
0x16d0   : > { %s4795_s18 = scalar_lea.vmem %s5850_s30, 256  ;;  %p4802_p0 = scmp.lt.s32.totalorder %s5850_s30, %s4800_s26 }
0x16d1   : > { %p4796_p11 = scmp.ne.s32.totalorder %s5850_s30, %s4795_s18  ;;  %p4803_p1 = scmp.lt.s32.totalorder %s4801_s17, %s4795_s18 }
0x16d3   : > { %p4797_p12 = pnand %p4796_p11, %p4974_p5  ;;  %p4804_p2 = por %p4803_p1, %p4802_p0 }
0x16d5   : > { %p4798_p13 = pneg %p4797_p12 }
0x16d7   : > { %p4805_p3 = pnand %p4804_p2, %p4798_p13 }
0x1731   : > { %v4618_v51 = vpop.permute.xlu1 %4617 }
0x1732   : > { %v4620_v52 = vunpack.i.h.bf16 %v4618_v51  ;;  %v4619_v47 = vunpack.i.l.bf16 %v4618_v51 }
0x1734   : > { %v3267_v61 = vsel %vm1937_vm10, %v2866_v5, %v4620_v52  ;;  %v3266_v46 = vsel %vm1937_vm10, %v2863_v31, %v4619_v47 }
0x1739   : > { %v4623_v30 = vpop.permute.xlu0 %4622 }
0x173a   : > { %v4625_v49 = vunpack.i.h.bf16 %v4623_v30  ;;  %v4624_v56 = vunpack.i.l.bf16 %v4623_v30 }
0x173c   : > { %v3269_v58 = vsel %vm1987_vm11, %v3267_v61, %v4625_v49  ;;  %v3268_v59 = vsel %vm1987_vm11, %v3266_v46, %v4624_v56 }
0x1741   : > { %v4628_v57 = vpop.permute.xlu1 %4627 }
0x1742   : > { %v4630_v54 = vunpack.i.h.bf16 %v4628_v57  ;;  %v4629_v55 = vunpack.i.l.bf16 %v4628_v57 }
0x1744   : > { %v3271_v60 = vsel %vm2456_vm12, %v3269_v58, %v4630_v54  ;;  %v3270_v63 = vsel %vm2456_vm12, %v3268_v59, %v4629_v55 }
0x1745   : > { %v3277_v0 = vpack.c.bf16 %v3271_v60, %v3270_v63 }
0x1747   : > { %4430 = vmatmul.mubr.msk.bf16.vlgmr.msra.gmra.mrb[60].mxu1 %vm487_vm5, %v3277_v0 }
0x1748   : > { %4457 = vmatprep.mubr.msk.bf16.mxu1 %vm4860_vm2, %v4859_v2  ;;  %4442 = vmatpush3.bf16.msra.mxu1 %v4709_v23 }
0x1749   : > { %4443 = vmatprep.subr.bf16.mxu1 %v4859_v2 }
0x174c   : > { %4444 = vmatpush3.bf16.msra.mxu1 %v4710_v24 }
0x174d   : > { %4445 = vmatprep.subr.bf16.mxu1 %v4859_v2 }
0x1750   : > { %4446 = vmatpush3.bf16.msra.mxu1 %v4711_v25 }
0x1751   : > { %4447 = vmatprep.subr.bf16.mxu1 %v4859_v2 }
0x1754   : > { %4448 = vmatpush3.bf16.msra.mxu1 %v4712_v26 }
0x1755   : > { %4449 = vmatprep.subr.bf16.mxu1 %v4859_v2 }
0x1758   : > { %4450 = vmatpush3.bf16.msra.mxu1 %v4713_v27 }
0x1759   : > { %4451 = vmatprep.subr.bf16.mxu1 %v4859_v2 }
0x175c   : > { %4452 = vmatpush3.bf16.msra.mxu1 %v4714_v29 }
0x175d   : > { %4453 = vmatprep.subr.bf16.mxu1 %v4859_v2 }
0x1760   : > { %4454 = vmatpush3.bf16.msra.mxu1 %v4715_v44 }
0x1761   : > { %4455 = vmatprep.subr.bf16.mxu1 %v4859_v2 }
0x1764   : > { %4456 = vmatpush3.bf16.msra.mxu1 %v4716_v53 }
0x181a   : > { %v3327_v62 = vpop.f32.mrb[60].mxu1 }
0x181b   : > { %v3334_v3 = vadd.f32 %v3327_v62, %v5674_v18  ;;  %v4431_v7 = vpop.f32.mrb[61].mxu1 }
0x181c   : > { %v3330_v8 = vpop.f32.mrb[62].mxu1 }
0x181d   : > { %v3335_v9 = vadd.f32 %v3330_v8, %v5676_v19  ;;  %v4432_v48 = vpop.f32.mrb[63].mxu1  ;;  %v3336_v10 = vsel %vm487_vm5, %v3334_v3, 0.0 }
0x181e   : > { %3337 = vadd.xlane.f32.xlu0 %v3336_v10 }
0x181f   : > { %v3339_v11 = vsel %vm487_vm5, %v3335_v9, 0.0 }
0x1820   : > { %3340 = vadd.xlane.f32.xlu1 %v3339_v11 }
0x18ab   : > { %v3338_v12 = vpop.xlane.xlu0 %3337 }
0x18ac   : > { %v3342_v14 = vmul.f32 0.03125, %v3338_v12 }
0x18ad   : > { %v3341_v15 = vpop.xlane.xlu1 %3340 }
0x18ae   : > { %v3344_v16 = vsub.f32 %v3334_v3, %v3342_v14  ;;  %v3343_v1 = vmul.f32 0.03125, %v3341_v15 }
0x18b0   : > { %v3345_v17 = vsub.f32 %v3335_v9, %v3343_v1  ;;  %v3346_v13 = vmul.f32 %v3344_v16, %v3344_v16 }
0x18b2   : > { %v3348_v18 = vsel %vm487_vm5, %v3346_v13, 0.0  ;;  %v3347_v20 = vmul.f32 %v3345_v17, %v3345_v17 }
0x18b3   : > { %3349 = vadd.xlane.f32.xlu0 %v3348_v18 }
0x18b4   : > { %v3351_v19 = vsel %vm487_vm5, %v3347_v20, 0.0  ;;  %v3966_v20 = vld [vmem:[%s5906_s11 + $0x2] ss:$0 sm:$0xff] }
0x18b7   : > { %3352 = vadd.xlane.f32.xlu0 %v3351_v19 }
0x1940   : > { %v3350_v31 = vpop.xlane.xlu0 %3349 }
0x1941   : > { %v3354_v32 = vmul.f32 0.03125, %v3350_v31 }
0x1943   : > { %v3356_v5 = vadd.f32 1e-05, %v3354_v32 }
0x1944   : > { %v3353_v33 = vpop.xlane.xlu0 %3352 }
0x1945   : > { %4785 = vrsqrt.f32 %v3356_v5  ;;  %v3355_v6 = vmul.f32 0.03125, %v3353_v33 }
0x1947   : > { %v3357_v34 = vadd.f32 1e-05, %v3355_v6 }
0x1949   : > { %4787 = vrsqrt.f32 %v3357_v34 }
0x194f   : > { %v4786_v35 = vpop.eup %4785 }
0x1950   : > { %v3360_v36 = vmul.f32 %v4786_v35, %v3344_v16 }
0x1952   : > { %v3370_v38 = vmul.f32 %v3949_v37, %v3360_v36 }
0x1953   : > { %v4788_v4 = vpop.eup %4787 }
0x1954   : > { %v3361_v39 = vmul.f32 %v4788_v4, %v3345_v17  ;;  %v3380_v42 = vadd.f32 %v3951_v40, %v3370_v38  ;;  %v3964_v17 = vld [vmem:[%s5905_s10 + $0x2] ss:$0 sm:$0xff] }
0x1956   : > { %v3371_v41 = vmul.f32 %v3949_v37, %v3361_v39 }
0x1958   : > { %v3381_v43 = vadd.f32 %v3951_v40, %v3371_v41 }
0x195a   : > { %v3386_v28 = vpack.c.bf16 %v3381_v43, %v3380_v42 }
0x195c   : > { %4438 = vmatmul.mubr.msk.bf16.vlgmr.msra.gmra.mrb[72].mxu0 %vm487_vm5, %v3386_v28 }
0x1a2f   : > { %v3436_v45 = vpop.f32.mrb[72].mxu0 }
0x1a30   : > { %v4439_v50 = vpop.f32.mrb[73].mxu0  ;;  %v3443_v30 = vmax.f32 %v3436_v45, 0.0 }
0x1a31   : > { %v3439_v51 = vpop.f32.mrb[74].mxu0 }
0x1a32   : > { %v3444_v52 = vmax.f32 %v3439_v51, 0.0  ;;  %v4440_v47 = vpop.f32.mrb[75].mxu0 }
0x1a34   : > { %v3461_v49 = vpack.c.bf16 %v3444_v52, %v3443_v30 }
0x1a36   : > { %4458 = vmatmul.mubr.bf16.vlgmr.msra.gmra.mrb[64].mxu1 %v3461_v49 }
0x1b09   : > { %v3544_v56 = vpop.f32.mrb[64].mxu1 }
0x1b0a   : > { %v3551_v57 = vadd.f32 %v3544_v56, %v3380_v42  ;;  %v4459_v61 = vpop.f32.mrb[65].mxu1 }
0x1b0b   : > { %v3547_v46 = vpop.f32.mrb[66].mxu1 }
0x1b0c   : > { %v3552_v54 = vadd.f32 %v3547_v46, %v3381_v43  ;;  %v4460_v55 = vpop.f32.mrb[67].mxu1  ;;  %v3553_v2 = vsel %vm487_vm5, %v3551_v57, 0.0 }
0x1b0d   : > { %3554 = vadd.xlane.f32.xlu1 %v3553_v2 }
0x1b0e   : > { %v3556_v58 = vsel %vm487_vm5, %v3552_v54, 0.0 }
0x1b0f   : > { %3557 = vadd.xlane.f32.xlu0 %v3556_v58 }
0x1b9a   : > { %v3555_v59 = vpop.xlane.xlu1 %3554 }
0x1b9b   : > { %v3559_v60 = vmul.f32 0.03125, %v3555_v59 }
0x1b9c   : > { %v3558_v63 = vpop.xlane.xlu0 %3557 }
0x1b9d   : > { %v3561_v0 = vsub.f32 %v3551_v57, %v3559_v60  ;;  %v3560_v62 = vmul.f32 0.03125, %v3558_v63 }
0x1b9f   : > { %v3562_v3 = vsub.f32 %v3552_v54, %v3560_v62  ;;  %v3563_v7 = vmul.f32 %v3561_v0, %v3561_v0 }
0x1ba1   : > { %v3565_v8 = vsel %vm487_vm5, %v3563_v7, 0.0  ;;  %v3564_v9 = vmul.f32 %v3562_v3, %v3562_v3 }
0x1ba2   : > { %3566 = vadd.xlane.f32.xlu1 %v3565_v8 }
0x1ba3   : > { %v3568_v48 = vsel %vm487_vm5, %v3564_v9, 0.0 }
0x1ba4   : > { %3569 = vadd.xlane.f32.xlu0 %v3568_v48 }
0x1c2f   : > { %v3567_v10 = vpop.xlane.xlu1 %3566 }
0x1c30   : > { %v3571_v11 = vmul.f32 0.03125, %v3567_v10 }
0x1c31   : > { %v3570_v12 = vpop.xlane.xlu0 %3569 }
0x1c32   : > { %v3573_v14 = vadd.f32 1e-05, %v3571_v11  ;;  %v3572_v15 = vmul.f32 0.03125, %v3570_v12 }
0x1c34   : > { %4789 = vrsqrt.f32 %v3573_v14  ;;  %v3574_v16 = vadd.f32 1e-05, %v3572_v15 }
0x1c36   : > { %4791 = vrsqrt.f32 %v3574_v16 }
0x1c3e   : > { %v4790_v1 = vpop.eup %4789 }
0x1c3f   : > { %v3577_v13 = vmul.f32 %v4790_v1, %v3561_v0 }
0x1c40   : > { %v4792_v18 = vpop.eup %4791 }
0x1c41   : > { %v3587_v19 = vmul.f32 %v3964_v17, %v3577_v13  ;;  %v3578_v21 = vmul.f32 %v4792_v18, %v3562_v3 }
0x1c43   : > { %v3597_v22 = vadd.f32 %v3966_v20, %v3587_v19  ;;  %v3588_v23 = vmul.f32 %v3964_v17, %v3578_v21 }
0x1c45   : > { %v3598_v24 = vadd.f32 %v3966_v20, %v3588_v23  ;;  %3599 = vst.msk [vmem:[%s421_s23] sm:$0xff] %vm487_vm5, %v3597_v22 }
0x1c47   : > { %3600 = vst.msk [vmem:[%s421_s23 + $0x8] sm:$0xff] %vm487_vm5, %v3598_v24 }
0x1c48   : > { %4808 = shalt.err (!%p4805_p3)
}
0x1c49   : > { %s4809_s15 = scalar_lea.hbm %s5847_s1, 256  ;;  %s4813_s23 = scalar_lea.hbm %s5907_s12, 512 }
0x1c4a   : > { %p4810_p4 = scmp.ne.s32.totalorder %s5847_s1, %s4809_s15  ;;  %p4814_p9 = scmp.lt.u32.totalorder %s5847_s1, %s5907_s12 }
0x1c4b   : > { %p4815_p10 = scmp.lt.u32.totalorder %s4813_s23, %s4809_s15  ;;  %p4817_p12 = scmp.lt.u32.totalorder %s4809_s15, %s5847_s1 }
0x1c4c   : > { %p4811_p7 = pnand %p4810_p4, %p4974_p5 }
0x1c4d   : > { %p4816_p11 = por %p4815_p10, %p4814_p9 }
0x1c4e   : > { %p4812_p8 = pneg %p4811_p7 }
0x1c4f   : > { %p4818_p13 = por %p4817_p12, %p4816_p11 }
0x1c51   : > { %p4819_p0 = pnand %p4818_p13, %p4812_p8 }
0x1c53   : > { %4822 = shalt.err (!%p4819_p0)
}
0x1c54   : > { %s4870_s18 = smov 128  }
0x1c55   : > { %4461 = dma.vmem_to_hbm [thread:$0]  (%p4974_p5), %s5850_s30, 256, %s5847_s1, %s5853_s25, %s4870_s18, %s4870_s18, %s5929_s28  }
0x1c56 PF: > { %p4467_p1 = scmp.ge.s32.totalorder %s4857_s24, 2  ;;  %s3630_s19 = sand.u32 1, %s4845_s21  }
0x1c57   : > { %s3631_s26 = scalar_lea.sflag [#allocation3], %s3630_s19 }
0x1c58   : > { %p4464_p2 = pnand %p4467_p1, %p4978_p6 }
0x1c5a   : > { %4840 = dma.done.wait (!%p4464_p2), %s3631_s26, 256  }
0x1c5b   : > { %4842 = vsyncadd (!%p4464_p2), %s3631_s26, 4294967040  ;;  %s5932_s17 = sld [smem:[#allocation5_spill]]  ;;  %s5933_s23 = sld [smem:[#allocation6_spill]] }
0x1c5c   : > { %p22_p3 = scmp.ge.s32.totalorder %s4961_s27, 4   ;;  %s5934_s21 = smov %s4849_s22 }
0x1c5d   : > { %s5936_s24 = smov %s4961_s27 }
0x1c5e   :  { %24 = sbr.rel (!%p22_p3) target bundleno = 6 (0x6), region = 132 }
0x1c61   : > { %s5935_s22 = smov %s5932_s17 }
0x1c65   :  { %3636 = vsyncpa [#allocation3], 1 }
0x1c66   :  { %3638 = vsyncpa [#allocation3 + $0x1], 1 }

</bundles_post_ra>
